<compile_context>
chip_gen: v7x
topology: tpu7x:2x2x1
jax: 0.10.0
libtpu: 0.0.40
codegen_flags: <defaults>
</compile_context>

<pallas_src>
import math
import functools

import jax
import jax.numpy as jnp
from jax import lax
from jax.experimental import pallas as pl
from jax.experimental.pallas import tpu as pltpu  # noqa: F401  (TPU backend assumed)


# ----------------------------------------------------------------------------
# Fused forward kernel (single invocation, whole network, all weights in VMEM)
# ----------------------------------------------------------------------------
def _forecaster_kernel(x_ref,          # (B*S, Din)
                       front_w_ref,    # (Din, H)        folded  emb_w @ in_emb_w
                       front_add_ref,  # (B*S, H)        folded  (emb_b+pos)@Win + bin + pe
                       wqkv_ref,       # (L, H, 3H)      [Wq*scale | Wk | Wv]
                       bqkv_ref,       # (L, 1, 3H)
                       wo_ref,         # (L, H, H)
                       wfan_ref,       # (L, H, H)       [Wp | Wp | Wg]
                       misc_ref,       # (L, 8, H)       bo, ln1_g, ln1_b, bfan, fan_scale, ln2_g, ln2_b, 0
                       tail_w_ref,     # (H, Ppad)       folded  Wproj @ Wout (lane-padded)
                       tail_b_ref,     # (1, Ppad)
                       o_ref,          # (B, Ppad)
                       *, batch, seq_len, hidden, num_heads, num_layers):
    B, S, H = batch, seq_len, hidden
    BS = B * S
    nh = num_heads
    dh = H // nh
    p_dim = H // 4
    din = x_ref.shape[1]
    eps = 1e-5
    inv_sqrt2 = 1.0 / math.sqrt(2.0)

    def layernorm(z, g, b):
        mu = jnp.mean(z, axis=-1, keepdims=True)
        d = z - mu
        var = jnp.mean(d * d, axis=-1, keepdims=True)
        return d * lax.rsqrt(var + eps) * g + b

    # ---- fused front end: (x@We+be+pos)@Win+bin+pe == x@(We@Win) + front_add ----
    x = x_ref[...]
    if din == 1:
        h = x * front_w_ref[...] + front_add_ref[...]          # VPU broadcast FMA
    else:
        h = jnp.dot(x, front_w_ref[...],
                    preferred_element_type=jnp.float32) + front_add_ref[...]

    # lane selector for the fused FAN output: first 2*Pd lanes -> sin, rest -> GELU
    lane = lax.broadcasted_iota(jnp.int32, (BS, H), 1)
    sin_lanes = lane < 2 * p_dim

    for l in range(num_layers):                                 # statically unrolled
        m = misc_ref[l]                                         # (8, H)
        bo, ln1_g, ln1_b = m[0:1], m[1:2], m[2:3]
        bfan, fan_scale = m[3:4], m[4:5]
        ln2_g, ln2_b = m[5:6], m[6:7]

        # ---- fused QKV projection (scale already folded into the Q columns) ----
        qkv = jnp.dot(h, wqkv_ref[l],
                      preferred_element_type=jnp.float32) + bqkv_ref[l]    # (BS, 3H)
        qkv3 = qkv.reshape(B, S, 3 * H)
        wo_l = wo_ref[l]

        # ---- full (non-causal) self-attention, batched over B, unrolled over heads ----
        attn = None
        for n in range(nh):
            c0 = n * dh
            qn = qkv3[:, :, c0:c0 + dh]                          # (B, S, dh)
            kn = qkv3[:, :, H + c0:H + c0 + dh]
            vn = qkv3[:, :, 2 * H + c0:2 * H + c0 + dh]
            s = jnp.einsum("bsd,btd->bst", qn, kn,
                           preferred_element_type=jnp.float32)   # (B, S, S)
            s = s - jnp.max(s, axis=-1, keepdims=True)
            e = jnp.exp(s)
            a = e / jnp.sum(e, axis=-1, keepdims=True)           # exact softmax
            ctx = jnp.einsum("bst,btd->bsd", a, vn,
                             preferred_element_type=jnp.float32) # (B, S, dh)
            part = jnp.dot(ctx.reshape(BS, dh), wo_l[c0:c0 + dh, :],
                           preferred_element_type=jnp.float32)   # (BS, H)
            attn = part if attn is None else attn + part

        # ---- residual + LayerNorm 1 ----
        h1 = layernorm(h + attn + bo, ln1_g, ln1_b)

        # ---- fused FAN phase-offset block ----
        # columns: [p + off (Pd) | p + pi - off (Pd) | g (Gd)]; cos(z+pi/2-off)==sin(z+pi-off)
        fan_lin = jnp.dot(h1, wfan_ref[l],
                          preferred_element_type=jnp.float32) + bfan       # (BS, H)
        sin_v = jnp.sin(fan_lin)
        gelu_v = 0.5 * fan_lin * (1.0 + lax.erf(fan_lin * inv_sqrt2))      # exact GELU
        fan = jnp.where(sin_lanes, sin_v, gelu_v) * fan_scale              # gate pre-folded

        # ---- residual + LayerNorm 2 ----
        h = layernorm(h1 + fan, ln2_g, ln2_b)

    # ---- folded output_projection + output_layer, LAST timestep only ----
    h_last = h.reshape(B, S, H)[:, S - 1, :]                     # (B, H)
    y = jnp.dot(h_last, tail_w_ref[...],
                preferred_element_type=jnp.float32) + tail_b_ref[...]
    o_ref[...] = y.astype(o_ref.dtype)                           # (B, Ppad), lane-dense


# ----------------------------------------------------------------------------
# Parameter construction (deterministic, PyTorch-equivalent layout)
# ----------------------------------------------------------------------------
def _sinusoidal_pe(seq_len, hidden):
    position = jnp.arange(seq_len, dtype=jnp.float32)[:, None]
    div_term = jnp.exp(jnp.arange(0, hidden, 2, dtype=jnp.float32)
                       * (-math.log(10000.0) / hidden))
    pe = jnp.zeros((seq_len, hidden), jnp.float32)
    pe = pe.at[:, 0::2].set(jnp.sin(position * div_term))
    pe = pe.at[:, 1::2].set(jnp.cos(position * div_term))
    return pe[None]                                              # (1, S, H)


def init_params(key, *, input_dim, seq_len, pred_len, hidden, num_layers):
    keys = iter(jax.random.split(key, 256))

    def lin(din, dout):
        w = jax.random.normal(next(keys), (din, dout), jnp.float32) * 0.05
        b = jax.random.normal(next(keys), (1, dout), jnp.float32) * 0.05
        return w, b

    p = {}
    p["emb_w"], p["emb_b"] = lin(input_dim, hidden)              # forecaster.embedding
    p["pos_fc"] = jax.random.normal(next(keys), (1, seq_len, hidden), jnp.float32) * 0.05
    p["in_emb_w"], p["in_emb_b"] = lin(hidden, hidden)           # transformer.input_embedding
    p["pe_sin"] = _sinusoidal_pe(seq_len, hidden)

    layers = []
    for _ in range(num_layers):
        lp = {}
        lp["wq"], lp["bq"] = lin(hidden, hidden)
        lp["wk"], lp["bk"] = lin(hidden, hidden)
        lp["wv"], lp["bv"] = lin(hidden, hidden)
        lp["wo"], lp["bo"] = lin(hidden, hidden)
        lp["ln1_g"] = jnp.ones((1, hidden), jnp.float32)
        lp["ln1_b"] = jnp.zeros((1, hidden), jnp.float32)
        lp["wp"], lp["bp"] = lin(hidden, hidden // 4)
        lp["wg"], lp["bg"] = lin(hidden, hidden // 2)
        lp["offset"] = jnp.full((1, hidden // 4), math.pi / 4.0, jnp.float32)
        lp["gate"] = jax.random.normal(next(keys), (1, 1), jnp.float32)
        lp["ln2_g"] = jnp.ones((1, hidden), jnp.float32)
        lp["ln2_b"] = jnp.zeros((1, hidden), jnp.float32)
        layers.append(lp)
    p["layers"] = layers

    p["out_proj_w"], p["out_proj_b"] = lin(hidden, hidden)       # transformer.output_projection
    p["out_layer_w"], p["out_layer_b"] = lin(hidden, pred_len)   # forecaster.output_layer
    return p


# ----------------------------------------------------------------------------
# Host-side folding / packing into 9 dense weight arrays
# ----------------------------------------------------------------------------
def pack_inputs(params, *, batch, seq_len, num_heads, ppad):
    H = params["in_emb_w"].shape[0]
    B = batch
    dh = H // num_heads
    p_dim = H // 4
    g_dim = H // 2
    scale = 1.0 / math.sqrt(dh)

    # front end fold: (x@We+be+pos)@Win+bin+pe == x@(We@Win) + ((be+pos)@Win+bin+pe)
    front_w = params["emb_w"] @ params["in_emb_w"]                                # (Din, H)
    front_add = ((params["emb_b"] + params["pos_fc"][0]) @ params["in_emb_w"]
                 + params["in_emb_b"] + params["pe_sin"][0])                      # (S, H)
    front_add = jnp.tile(front_add, (B, 1))                                       # (B*S, H)

    wqkv, bqkv, wo, wfan, misc = [], [], [], [], []
    for lp in params["layers"]:
        wqkv.append(jnp.concatenate([lp["wq"] * scale, lp["wk"], lp["wv"]], axis=1))
        bqkv.append(jnp.concatenate([lp["bq"] * scale, lp["bk"], lp["bv"]], axis=1))
        wo.append(lp["wo"])
        wfan.append(jnp.concatenate([lp["wp"], lp["wp"], lp["wg"]], axis=1))
        # cos(p + pi/2 - off) == sin(p + pi - off): fold offsets/phase into the bias
        bfan = jnp.concatenate([lp["bp"] + lp["offset"],
                                lp["bp"] + math.pi - lp["offset"],
                                lp["bg"]], axis=1)
        gate_val = jax.nn.sigmoid(lp["gate"][0, 0])
        fan_scale = jnp.concatenate(
            [jnp.ones((1, 2 * p_dim), jnp.float32) * gate_val,
             jnp.ones((1, g_dim), jnp.float32) * (1.0 - gate_val)], axis=1)
        misc.append(jnp.concatenate(
            [lp["bo"], lp["ln1_g"], lp["ln1_b"], bfan, fan_scale,
             lp["ln2_g"], lp["ln2_b"], jnp.zeros((1, H), jnp.float32)], axis=0))

    pred_len = params["out_layer_w"].shape[1]
    pad = ppad - pred_len
    # tail fold: (h@Wproj+bproj)@Wout+bout == h@(Wproj@Wout) + (bproj@Wout+bout)
    tail_w = jnp.pad(params["out_proj_w"] @ params["out_layer_w"], ((0, 0), (0, pad)))
    tail_b = jnp.pad(params["out_proj_b"] @ params["out_layer_w"] + params["out_layer_b"],
                     ((0, 0), (0, pad)))

    return dict(front_w=front_w, front_add=front_add,
                wqkv=jnp.stack(wqkv), bqkv=jnp.stack(bqkv), wo=jnp.stack(wo),
                wfan=jnp.stack(wfan), misc=jnp.stack(misc),
                tail_w=tail_w, tail_b=tail_b)


# ----------------------------------------------------------------------------
# Full forward pass (single grid-less pallas_call)
# ----------------------------------------------------------------------------
def forecaster_forward(params, x, *, seq_len, input_dim, hidden, num_heads):
    B = x.shape[0]
    num_layers = len(params["layers"])
    pred_len = params["out_layer_w"].shape[1]
    ppad = ((pred_len + 127) // 128) * 128                       # lane-dense final store

    pk = pack_inputs(params, batch=B, seq_len=seq_len, num_heads=num_heads, ppad=ppad)
    x_flat = x.reshape(B * seq_len, input_dim)                   # row-major (b, s, din)

    kernel = functools.partial(_forecaster_kernel, batch=B, seq_len=seq_len,
                               hidden=hidden, num_heads=num_heads,
                               num_layers=num_layers)

    # Grid-less single invocation: every operand is a whole-array VMEM block,
    # DMA'd exactly once (no double-buffering of the constant weights).
    out = pl.pallas_call(
        kernel,
        out_shape=jax.ShapeDtypeStruct((B, ppad), jnp.float32),
    )(x_flat, pk["front_w"], pk["front_add"], pk["wqkv"], pk["bqkv"],
      pk["wo"], pk["wfan"], pk["misc"], pk["tail_w"], pk["tail_b"])
    return out[:, :pred_len]


# ----------------------------------------------------------------------------
# Pure-JAX (unfused) reference for validation of the host-side folds
# ----------------------------------------------------------------------------
def _layernorm_ref(z, g, b, eps=1e-5):
    mu = jnp.mean(z, axis=-1, keepdims=True)
    var = jnp.mean((z - mu) ** 2, axis=-1, keepdims=True)
    return (z - mu) / jnp.sqrt(var + eps) * g + b


def reference_forward(params, x, *, seq_len, input_dim, hidden, num_heads):
    B = x.shape[0]
    S, H, Din = seq_len, hidden, input_dim
    nh = num_heads
    dh = H // nh
    scale = 1.0 / math.sqrt(dh)

    xv = x.reshape(B, S, Din)
    h = xv @ params["emb_w"] + params["emb_b"] + params["pos_fc"]
    h = h @ params["in_emb_w"] + params["in_emb_b"] + params["pe_sin"]
    for lp in params["layers"]:
        q = (h @ lp["wq"] + lp["bq"]).reshape(B, S, nh, dh)
        k = (h @ lp["wk"] + lp["bk"]).reshape(B, S, nh, dh)
        v = (h @ lp["wv"] + lp["bv"]).reshape(B, S, nh, dh)
        s = jnp.einsum("bsnd,btnd->bnst", q, k) * scale
        a = jax.nn.softmax(s, axis=-1)
        ctx = jnp.einsum("bnst,btnd->bsnd", a, v).reshape(B, S, H)
        attn = ctx @ lp["wo"] + lp["bo"]
        h = _layernorm_ref(h + attn, lp["ln1_g"], lp["ln1_b"])
        p = h @ lp["wp"] + lp["bp"]
        g = jax.nn.gelu(h @ lp["wg"] + lp["bg"], approximate=False)
        gate = jax.nn.sigmoid(lp["gate"][0, 0])
        fourier = gate * jnp.concatenate(
            [jnp.sin(p + lp["offset"]), jnp.cos(p + math.pi / 2 - lp["offset"])], axis=-1)
        fan = jnp.concatenate([fourier, (1.0 - gate) * g], axis=-1)
        h = _layernorm_ref(h + fan, lp["ln2_g"], lp["ln2_b"])
    h = h @ params["out_proj_w"] + params["out_proj_b"]
    return h[:, -1, :] @ params["out_layer_w"] + params["out_layer_b"]


if __name__ == "__main__":
    # small, module-consistent shapes
    B = 2
    input_dim = 1
    seq_len = 16
    pred_len = 8
    hidden = 32
    num_layers = 2
    num_heads = 4          # hidden % num_heads == 0, head_dim = 8

    root = jax.random.PRNGKey(0)
    pkey, xkey = jax.random.split(root)
    params = init_params(pkey, input_dim=input_dim, seq_len=seq_len,
                         pred_len=pred_len, hidden=hidden, num_layers=num_layers)
    # forecaster input: (batch, seq_len * input_dim)
    x = jax.random.normal(xkey, (B, seq_len * input_dim), jnp.float32)

    out = forecaster_forward(params, x, seq_len=seq_len, input_dim=input_dim,
                             hidden=hidden, num_heads=num_heads)
    out = jax.block_until_ready(out)
    assert out.shape == (B, pred_len), out.shape
    assert bool(jnp.all(jnp.isfinite(out)))

    # validate host-side folds (QKV fusion, FAN bias/phase fold, front/tail folds)
    ref = reference_forward(params, x, seq_len=seq_len, input_dim=input_dim,
                            hidden=hidden, num_heads=num_heads)
    err = float(jnp.max(jnp.abs(out - ref)))
    assert err < 1e-3, f"kernel vs reference mismatch: max abs err = {err}"
    print("KERNEL_OK")
</pallas_src>

<mosaic_0001>
module attributes {stable_mosaic.version = 11 : i64} {
  func.func @_forecaster_kernel(%arg0: memref<32x1xf32, #tpu.memory_space<vmem>>, %arg1: memref<1x32xf32, #tpu.memory_space<vmem>>, %arg2: memref<32x32xf32, #tpu.memory_space<vmem>>, %arg3: memref<2x32x96xf32, #tpu.memory_space<vmem>>, %arg4: memref<2x1x96xf32, #tpu.memory_space<vmem>>, %arg5: memref<2x32x32xf32, #tpu.memory_space<vmem>>, %arg6: memref<2x32x32xf32, #tpu.memory_space<vmem>>, %arg7: memref<2x8x32xf32, #tpu.memory_space<vmem>>, %arg8: memref<32x128xf32, #tpu.memory_space<vmem>>, %arg9: memref<1x128xf32, #tpu.memory_space<vmem>>, %arg10: memref<2x128xf32, #tpu.memory_space<vmem>>) attributes {dimension_semantics = [], scalar_prefetch = 0 : i64, scratch_operands = 0 : i64, tpu.core_type = #tpu.core_type<tc>} {
    %c0 = arith.constant 0 : index
    %c0_0 = arith.constant 0 : index
    %0 = vector.load %arg0[%c0, %c0_0] : memref<32x1xf32, #tpu.memory_space<vmem>>, vector<32x1xf32>
    %c0_1 = arith.constant 0 : index
    %c0_2 = arith.constant 0 : index
    %1 = vector.load %arg1[%c0_1, %c0_2] : memref<1x32xf32, #tpu.memory_space<vmem>>, vector<1x32xf32>
    %2 = vector.broadcast %0 : vector<32x1xf32> to vector<32x32xf32>
    %3 = vector.broadcast %1 : vector<1x32xf32> to vector<32x32xf32>
    %4 = arith.mulf %2, %3 : vector<32x32xf32>
    %c0_3 = arith.constant 0 : index
    %c0_4 = arith.constant 0 : index
    %5 = vector.load %arg2[%c0_3, %c0_4] : memref<32x32xf32, #tpu.memory_space<vmem>>, vector<32x32xf32>
    %6 = arith.addf %4, %5 : vector<32x32xf32>
    %7 = tpu.iota {dimensions = array<i32: 1>} : vector<32x32xi32>
    %c16_i32 = arith.constant 16 : i32
    %8 = vector.broadcast %c16_i32 : i32 to vector<32x32xi32>
    %9 = arith.cmpi slt, %7, %8 : vector<32x32xi32>
    %c0_5 = arith.constant 0 : index
    %c0_6 = arith.constant 0 : index
    %c0_7 = arith.constant 0 : index
    %10 = vector.load %arg7[%c0_5, %c0_6, %c0_7] : memref<2x8x32xf32, #tpu.memory_space<vmem>>, vector<1x8x32xf32>
    %11 = vector.shape_cast %10 : vector<1x8x32xf32> to vector<8x32xf32>
    %12 = vector.extract_strided_slice %11 {offsets = [0, 0], sizes = [1, 32], strides = [1, 1]} : vector<8x32xf32> to vector<1x32xf32>
    %13 = vector.extract_strided_slice %11 {offsets = [1, 0], sizes = [1, 32], strides = [1, 1]} : vector<8x32xf32> to vector<1x32xf32>
    %14 = vector.extract_strided_slice %11 {offsets = [2, 0], sizes = [1, 32], strides = [1, 1]} : vector<8x32xf32> to vector<1x32xf32>
    %15 = vector.extract_strided_slice %11 {offsets = [3, 0], sizes = [1, 32], strides = [1, 1]} : vector<8x32xf32> to vector<1x32xf32>
    %16 = vector.extract_strided_slice %11 {offsets = [4, 0], sizes = [1, 32], strides = [1, 1]} : vector<8x32xf32> to vector<1x32xf32>
    %17 = vector.extract_strided_slice %11 {offsets = [5, 0], sizes = [1, 32], strides = [1, 1]} : vector<8x32xf32> to vector<1x32xf32>
    %18 = vector.extract_strided_slice %11 {offsets = [6, 0], sizes = [1, 32], strides = [1, 1]} : vector<8x32xf32> to vector<1x32xf32>
    %c0_8 = arith.constant 0 : index
    %c0_9 = arith.constant 0 : index
    %c0_10 = arith.constant 0 : index
    %19 = vector.load %arg3[%c0_8, %c0_9, %c0_10] : memref<2x32x96xf32, #tpu.memory_space<vmem>>, vector<1x32x96xf32>
    %20 = vector.shape_cast %19 : vector<1x32x96xf32> to vector<32x96xf32>
    %cst = arith.constant dense<0.000000e+00> : vector<32x96xf32>
    %21 = tpu.matmul %6, %20, %cst {dimension_numbers = #tpu.dot_dimension_numbers<[1], [0], [0], [1], [0, 0, 1, 1], [], []>} : vector<32x32xf32>, vector<32x96xf32>, vector<32x96xf32> -> vector<32x96xf32>
    %c0_11 = arith.constant 0 : index
    %c0_12 = arith.constant 0 : index
    %c0_13 = arith.constant 0 : index
    %22 = vector.load %arg4[%c0_11, %c0_12, %c0_13] : memref<2x1x96xf32, #tpu.memory_space<vmem>>, vector<1x1x96xf32>
    %23 = vector.shape_cast %22 : vector<1x1x96xf32> to vector<1x96xf32>
    %24 = vector.broadcast %23 : vector<1x96xf32> to vector<32x96xf32>
    %25 = arith.addf %21, %24 : vector<32x96xf32>
    %26 = vector.shape_cast %25 : vector<32x96xf32> to vector<2x16x96xf32>
    %c0_14 = arith.constant 0 : index
    %c0_15 = arith.constant 0 : index
    %c0_16 = arith.constant 0 : index
    %27 = vector.load %arg5[%c0_14, %c0_15, %c0_16] : memref<2x32x32xf32, #tpu.memory_space<vmem>>, vector<1x32x32xf32>
    %28 = vector.shape_cast %27 : vector<1x32x32xf32> to vector<32x32xf32>
    %29 = vector.extract_strided_slice %26 {offsets = [0, 0, 0], sizes = [2, 16, 8], strides = [1, 1, 1]} : vector<2x16x96xf32> to vector<2x16x8xf32>
    %30 = vector.extract_strided_slice %26 {offsets = [0, 0, 32], sizes = [2, 16, 8], strides = [1, 1, 1]} : vector<2x16x96xf32> to vector<2x16x8xf32>
    %31 = vector.extract_strided_slice %26 {offsets = [0, 0, 64], sizes = [2, 16, 8], strides = [1, 1, 1]} : vector<2x16x96xf32> to vector<2x16x8xf32>
    "tpu.trace_start"() <{level = 10 : i32, message = "bsd,btd->bst"}> : () -> ()
    %cst_17 = arith.constant dense<0.000000e+00> : vector<2x16x16xf32>
    %32 = tpu.matmul %29, %30, %cst_17 {dimension_numbers = #tpu.dot_dimension_numbers<[2], [2], [1], [1], [0, 0, 0, 1, 1, 1], [0], [0]>} : vector<2x16x8xf32>, vector<2x16x8xf32>, vector<2x16x16xf32> -> vector<2x16x16xf32>
    "tpu.trace_stop"() : () -> ()
    %cst_18 = arith.constant dense<0xFF800000> : vector<2x16xf32>
    %33 = vector.multi_reduction <maximumf>, %32, %cst_18 [2] : vector<2x16x16xf32> to vector<2x16xf32>
    %34 = vector.shape_cast %33 : vector<2x16xf32> to vector<2x16x1xf32>
    %35 = vector.broadcast %34 : vector<2x16x1xf32> to vector<2x16x16xf32>
    %36 = arith.subf %32, %35 : vector<2x16x16xf32>
    %37 = math.exp %36 : vector<2x16x16xf32>
    %cst_19 = arith.constant dense<0.000000e+00> : vector<2x16xf32>
    %38 = vector.multi_reduction <add>, %37, %cst_19 [2] : vector<2x16x16xf32> to vector<2x16xf32>
    %39 = vector.shape_cast %38 : vector<2x16xf32> to vector<2x16x1xf32>
    %40 = vector.broadcast %39 : vector<2x16x1xf32> to vector<2x16x16xf32>
    %41 = arith.divf %37, %40 : vector<2x16x16xf32>
    "tpu.trace_start"() <{level = 10 : i32, message = "bst,btd->bsd"}> : () -> ()
    %cst_20 = arith.constant dense<0.000000e+00> : vector<2x16x8xf32>
    %42 = tpu.matmul %41, %31, %cst_20 {dimension_numbers = #tpu.dot_dimension_numbers<[2], [1], [1], [2], [0, 0, 0, 1, 1, 2], [0], [0]>} : vector<2x16x16xf32>, vector<2x16x8xf32>, vector<2x16x8xf32> -> vector<2x16x8xf32>
    "tpu.trace_stop"() : () -> ()
    %43 = vector.shape_cast %42 : vector<2x16x8xf32> to vector<32x8xf32>
    %44 = vector.extract_strided_slice %28 {offsets = [0, 0], sizes = [8, 32], strides = [1, 1]} : vector<32x32xf32> to vector<8x32xf32>
    %cst_21 = arith.constant dense<0.000000e+00> : vector<32x32xf32>
    %45 = tpu.matmul %43, %44, %cst_21 {dimension_numbers = #tpu.dot_dimension_numbers<[1], [0], [0], [1], [0, 0, 1, 1], [], []>} : vector<32x8xf32>, vector<8x32xf32>, vector<32x32xf32> -> vector<32x32xf32>
    %46 = vector.extract_strided_slice %26 {offsets = [0, 0, 8], sizes = [2, 16, 8], strides = [1, 1, 1]} : vector<2x16x96xf32> to vector<2x16x8xf32>
    %47 = vector.extract_strided_slice %26 {offsets = [0, 0, 40], sizes = [2, 16, 8], strides = [1, 1, 1]} : vector<2x16x96xf32> to vector<2x16x8xf32>
    %48 = vector.extract_strided_slice %26 {offsets = [0, 0, 72], sizes = [2, 16, 8], strides = [1, 1, 1]} : vector<2x16x96xf32> to vector<2x16x8xf32>
    "tpu.trace_start"() <{level = 10 : i32, message = "bsd,btd->bst"}> : () -> ()
    %cst_22 = arith.constant dense<0.000000e+00> : vector<2x16x16xf32>
    %49 = tpu.matmul %46, %47, %cst_22 {dimension_numbers = #tpu.dot_dimension_numbers<[2], [2], [1], [1], [0, 0, 0, 1, 1, 1], [0], [0]>} : vector<2x16x8xf32>, vector<2x16x8xf32>, vector<2x16x16xf32> -> vector<2x16x16xf32>
    "tpu.trace_stop"() : () -> ()
    %cst_23 = arith.constant dense<0xFF800000> : vector<2x16xf32>
    %50 = vector.multi_reduction <maximumf>, %49, %cst_23 [2] : vector<2x16x16xf32> to vector<2x16xf32>
    %51 = vector.shape_cast %50 : vector<2x16xf32> to vector<2x16x1xf32>
    %52 = vector.broadcast %51 : vector<2x16x1xf32> to vector<2x16x16xf32>
    %53 = arith.subf %49, %52 : vector<2x16x16xf32>
    %54 = math.exp %53 : vector<2x16x16xf32>
    %cst_24 = arith.constant dense<0.000000e+00> : vector<2x16xf32>
    %55 = vector.multi_reduction <add>, %54, %cst_24 [2] : vector<2x16x16xf32> to vector<2x16xf32>
    %56 = vector.shape_cast %55 : vector<2x16xf32> to vector<2x16x1xf32>
    %57 = vector.broadcast %56 : vector<2x16x1xf32> to vector<2x16x16xf32>
    %58 = arith.divf %54, %57 : vector<2x16x16xf32>
    "tpu.trace_start"() <{level = 10 : i32, message = "bst,btd->bsd"}> : () -> ()
    %cst_25 = arith.constant dense<0.000000e+00> : vector<2x16x8xf32>
    %59 = tpu.matmul %58, %48, %cst_25 {dimension_numbers = #tpu.dot_dimension_numbers<[2], [1], [1], [2], [0, 0, 0, 1, 1, 2], [0], [0]>} : vector<2x16x16xf32>, vector<2x16x8xf32>, vector<2x16x8xf32> -> vector<2x16x8xf32>
    "tpu.trace_stop"() : () -> ()
    %60 = vector.shape_cast %59 : vector<2x16x8xf32> to vector<32x8xf32>
    %61 = vector.extract_strided_slice %28 {offsets = [8, 0], sizes = [8, 32], strides = [1, 1]} : vector<32x32xf32> to vector<8x32xf32>
    %cst_26 = arith.constant dense<0.000000e+00> : vector<32x32xf32>
    %62 = tpu.matmul %60, %61, %cst_26 {dimension_numbers = #tpu.dot_dimension_numbers<[1], [0], [0], [1], [0, 0, 1, 1], [], []>} : vector<32x8xf32>, vector<8x32xf32>, vector<32x32xf32> -> vector<32x32xf32>
    %63 = arith.addf %45, %62 : vector<32x32xf32>
    %64 = vector.extract_strided_slice %26 {offsets = [0, 0, 16], sizes = [2, 16, 8], strides = [1, 1, 1]} : vector<2x16x96xf32> to vector<2x16x8xf32>
    %65 = vector.extract_strided_slice %26 {offsets = [0, 0, 48], sizes = [2, 16, 8], strides = [1, 1, 1]} : vector<2x16x96xf32> to vector<2x16x8xf32>
    %66 = vector.extract_strided_slice %26 {offsets = [0, 0, 80], sizes = [2, 16, 8], strides = [1, 1, 1]} : vector<2x16x96xf32> to vector<2x16x8xf32>
    "tpu.trace_start"() <{level = 10 : i32, message = "bsd,btd->bst"}> : () -> ()
    %cst_27 = arith.constant dense<0.000000e+00> : vector<2x16x16xf32>
    %67 = tpu.matmul %64, %65, %cst_27 {dimension_numbers = #tpu.dot_dimension_numbers<[2], [2], [1], [1], [0, 0, 0, 1, 1, 1], [0], [0]>} : vector<2x16x8xf32>, vector<2x16x8xf32>, vector<2x16x16xf32> -> vector<2x16x16xf32>
    "tpu.trace_stop"() : () -> ()
    %cst_28 = arith.constant dense<0xFF800000> : vector<2x16xf32>
    %68 = vector.multi_reduction <maximumf>, %67, %cst_28 [2] : vector<2x16x16xf32> to vector<2x16xf32>
    %69 = vector.shape_cast %68 : vector<2x16xf32> to vector<2x16x1xf32>
    %70 = vector.broadcast %69 : vector<2x16x1xf32> to vector<2x16x16xf32>
    %71 = arith.subf %67, %70 : vector<2x16x16xf32>
    %72 = math.exp %71 : vector<2x16x16xf32>
    %cst_29 = arith.constant dense<0.000000e+00> : vector<2x16xf32>
    %73 = vector.multi_reduction <add>, %72, %cst_29 [2] : vector<2x16x16xf32> to vector<2x16xf32>
    %74 = vector.shape_cast %73 : vector<2x16xf32> to vector<2x16x1xf32>
    %75 = vector.broadcast %74 : vector<2x16x1xf32> to vector<2x16x16xf32>
    %76 = arith.divf %72, %75 : vector<2x16x16xf32>
    "tpu.trace_start"() <{level = 10 : i32, message = "bst,btd->bsd"}> : () -> ()
    %cst_30 = arith.constant dense<0.000000e+00> : vector<2x16x8xf32>
    %77 = tpu.matmul %76, %66, %cst_30 {dimension_numbers = #tpu.dot_dimension_numbers<[2], [1], [1], [2], [0, 0, 0, 1, 1, 2], [0], [0]>} : vector<2x16x16xf32>, vector<2x16x8xf32>, vector<2x16x8xf32> -> vector<2x16x8xf32>
    "tpu.trace_stop"() : () -> ()
    %78 = vector.shape_cast %77 : vector<2x16x8xf32> to vector<32x8xf32>
    %79 = vector.extract_strided_slice %28 {offsets = [16, 0], sizes = [8, 32], strides = [1, 1]} : vector<32x32xf32> to vector<8x32xf32>
    %cst_31 = arith.constant dense<0.000000e+00> : vector<32x32xf32>
    %80 = tpu.matmul %78, %79, %cst_31 {dimension_numbers = #tpu.dot_dimension_numbers<[1], [0], [0], [1], [0, 0, 1, 1], [], []>} : vector<32x8xf32>, vector<8x32xf32>, vector<32x32xf32> -> vector<32x32xf32>
    %81 = arith.addf %63, %80 : vector<32x32xf32>
    %82 = vector.extract_strided_slice %26 {offsets = [0, 0, 24], sizes = [2, 16, 8], strides = [1, 1, 1]} : vector<2x16x96xf32> to vector<2x16x8xf32>
    %83 = vector.extract_strided_slice %26 {offsets = [0, 0, 56], sizes = [2, 16, 8], strides = [1, 1, 1]} : vector<2x16x96xf32> to vector<2x16x8xf32>
    %84 = vector.extract_strided_slice %26 {offsets = [0, 0, 88], sizes = [2, 16, 8], strides = [1, 1, 1]} : vector<2x16x96xf32> to vector<2x16x8xf32>
    "tpu.trace_start"() <{level = 10 : i32, message = "bsd,btd->bst"}> : () -> ()
    %cst_32 = arith.constant dense<0.000000e+00> : vector<2x16x16xf32>
    %85 = tpu.matmul %82, %83, %cst_32 {dimension_numbers = #tpu.dot_dimension_numbers<[2], [2], [1], [1], [0, 0, 0, 1, 1, 1], [0], [0]>} : vector<2x16x8xf32>, vector<2x16x8xf32>, vector<2x16x16xf32> -> vector<2x16x16xf32>
    "tpu.trace_stop"() : () -> ()
    %cst_33 = arith.constant dense<0xFF800000> : vector<2x16xf32>
    %86 = vector.multi_reduction <maximumf>, %85, %cst_33 [2] : vector<2x16x16xf32> to vector<2x16xf32>
    %87 = vector.shape_cast %86 : vector<2x16xf32> to vector<2x16x1xf32>
    %88 = vector.broadcast %87 : vector<2x16x1xf32> to vector<2x16x16xf32>
    %89 = arith.subf %85, %88 : vector<2x16x16xf32>
    %90 = math.exp %89 : vector<2x16x16xf32>
    %cst_34 = arith.constant dense<0.000000e+00> : vector<2x16xf32>
    %91 = vector.multi_reduction <add>, %90, %cst_34 [2] : vector<2x16x16xf32> to vector<2x16xf32>
    %92 = vector.shape_cast %91 : vector<2x16xf32> to vector<2x16x1xf32>
    %93 = vector.broadcast %92 : vector<2x16x1xf32> to vector<2x16x16xf32>
    %94 = arith.divf %90, %93 : vector<2x16x16xf32>
    "tpu.trace_start"() <{level = 10 : i32, message = "bst,btd->bsd"}> : () -> ()
    %cst_35 = arith.constant dense<0.000000e+00> : vector<2x16x8xf32>
    %95 = tpu.matmul %94, %84, %cst_35 {dimension_numbers = #tpu.dot_dimension_numbers<[2], [1], [1], [2], [0, 0, 0, 1, 1, 2], [0], [0]>} : vector<2x16x16xf32>, vector<2x16x8xf32>, vector<2x16x8xf32> -> vector<2x16x8xf32>
    "tpu.trace_stop"() : () -> ()
    %96 = vector.shape_cast %95 : vector<2x16x8xf32> to vector<32x8xf32>
    %97 = vector.extract_strided_slice %28 {offsets = [24, 0], sizes = [8, 32], strides = [1, 1]} : vector<32x32xf32> to vector<8x32xf32>
    %cst_36 = arith.constant dense<0.000000e+00> : vector<32x32xf32>
    %98 = tpu.matmul %96, %97, %cst_36 {dimension_numbers = #tpu.dot_dimension_numbers<[1], [0], [0], [1], [0, 0, 1, 1], [], []>} : vector<32x8xf32>, vector<8x32xf32>, vector<32x32xf32> -> vector<32x32xf32>
    %99 = arith.addf %81, %98 : vector<32x32xf32>
    %100 = arith.addf %6, %99 : vector<32x32xf32>
    %101 = vector.broadcast %12 : vector<1x32xf32> to vector<32x32xf32>
    %102 = arith.addf %100, %101 : vector<32x32xf32>
    %cst_37 = arith.constant dense<0.000000e+00> : vector<32xf32>
    %103 = vector.multi_reduction <add>, %102, %cst_37 [1] : vector<32x32xf32> to vector<32xf32>
    %104 = vector.shape_cast %103 : vector<32xf32> to vector<32x1xf32>
    %cst_38 = arith.constant 3.200000e+01 : f32
    %105 = vector.broadcast %cst_38 : f32 to vector<32x1xf32>
    %106 = arith.divf %104, %105 : vector<32x1xf32>
    %107 = vector.broadcast %106 : vector<32x1xf32> to vector<32x32xf32>
    %108 = arith.subf %102, %107 : vector<32x32xf32>
    %109 = arith.mulf %108, %108 : vector<32x32xf32>
    %cst_39 = arith.constant dense<0.000000e+00> : vector<32xf32>
    %110 = vector.multi_reduction <add>, %109, %cst_39 [1] : vector<32x32xf32> to vector<32xf32>
    %111 = vector.shape_cast %110 : vector<32xf32> to vector<32x1xf32>
    %cst_40 = arith.constant 3.200000e+01 : f32
    %112 = vector.broadcast %cst_40 : f32 to vector<32x1xf32>
    %113 = arith.divf %111, %112 : vector<32x1xf32>
    %cst_41 = arith.constant 9.99999974E-6 : f32
    %114 = vector.broadcast %cst_41 : f32 to vector<32x1xf32>
    %115 = arith.addf %113, %114 : vector<32x1xf32>
    %116 = math.rsqrt %115 : vector<32x1xf32>
    %117 = vector.broadcast %116 : vector<32x1xf32> to vector<32x32xf32>
    %118 = arith.mulf %108, %117 : vector<32x32xf32>
    %119 = vector.broadcast %13 : vector<1x32xf32> to vector<32x32xf32>
    %120 = arith.mulf %118, %119 : vector<32x32xf32>
    %121 = vector.broadcast %14 : vector<1x32xf32> to vector<32x32xf32>
    %122 = arith.addf %120, %121 : vector<32x32xf32>
    %c0_42 = arith.constant 0 : index
    %c0_43 = arith.constant 0 : index
    %c0_44 = arith.constant 0 : index
    %123 = vector.load %arg6[%c0_42, %c0_43, %c0_44] : memref<2x32x32xf32, #tpu.memory_space<vmem>>, vector<1x32x32xf32>
    %124 = vector.shape_cast %123 : vector<1x32x32xf32> to vector<32x32xf32>
    %cst_45 = arith.constant dense<0.000000e+00> : vector<32x32xf32>
    %125 = tpu.matmul %122, %124, %cst_45 {dimension_numbers = #tpu.dot_dimension_numbers<[1], [0], [0], [1], [0, 0, 1, 1], [], []>} : vector<32x32xf32>, vector<32x32xf32>, vector<32x32xf32> -> vector<32x32xf32>
    %126 = vector.broadcast %15 : vector<1x32xf32> to vector<32x32xf32>
    %127 = arith.addf %125, %126 : vector<32x32xf32>
    %128 = math.sin %127 : vector<32x32xf32>
    %cst_46 = arith.constant 5.000000e-01 : f32
    %129 = vector.broadcast %cst_46 : f32 to vector<32x32xf32>
    %130 = arith.mulf %129, %127 : vector<32x32xf32>
    %cst_47 = arith.constant 0.707106769 : f32
    %131 = vector.broadcast %cst_47 : f32 to vector<32x32xf32>
    %132 = arith.mulf %127, %131 : vector<32x32xf32>
    %133 = math.erf %132 : vector<32x32xf32>
    %cst_48 = arith.constant 1.000000e+00 : f32
    %134 = vector.broadcast %cst_48 : f32 to vector<32x32xf32>
    %135 = arith.addf %134, %133 : vector<32x32xf32>
    %136 = arith.mulf %130, %135 : vector<32x32xf32>
    %137 = arith.select %9, %128, %136 : vector<32x32xi1>, vector<32x32xf32>
    %138 = vector.broadcast %16 : vector<1x32xf32> to vector<32x32xf32>
    %139 = arith.mulf %137, %138 : vector<32x32xf32>
    %140 = arith.addf %122, %139 : vector<32x32xf32>
    %cst_49 = arith.constant dense<0.000000e+00> : vector<32xf32>
    %141 = vector.multi_reduction <add>, %140, %cst_49 [1] : vector<32x32xf32> to vector<32xf32>
    %142 = vector.shape_cast %141 : vector<32xf32> to vector<32x1xf32>
    %cst_50 = arith.constant 3.200000e+01 : f32
    %143 = vector.broadcast %cst_50 : f32 to vector<32x1xf32>
    %144 = arith.divf %142, %143 : vector<32x1xf32>
    %145 = vector.broadcast %144 : vector<32x1xf32> to vector<32x32xf32>
    %146 = arith.subf %140, %145 : vector<32x32xf32>
    %147 = arith.mulf %146, %146 : vector<32x32xf32>
    %cst_51 = arith.constant dense<0.000000e+00> : vector<32xf32>
    %148 = vector.multi_reduction <add>, %147, %cst_51 [1] : vector<32x32xf32> to vector<32xf32>
    %149 = vector.shape_cast %148 : vector<32xf32> to vector<32x1xf32>
    %cst_52 = arith.constant 3.200000e+01 : f32
    %150 = vector.broadcast %cst_52 : f32 to vector<32x1xf32>
    %151 = arith.divf %149, %150 : vector<32x1xf32>
    %cst_53 = arith.constant 9.99999974E-6 : f32
    %152 = vector.broadcast %cst_53 : f32 to vector<32x1xf32>
    %153 = arith.addf %151, %152 : vector<32x1xf32>
    %154 = math.rsqrt %153 : vector<32x1xf32>
    %155 = vector.broadcast %154 : vector<32x1xf32> to vector<32x32xf32>
    %156 = arith.mulf %146, %155 : vector<32x32xf32>
    %157 = vector.broadcast %17 : vector<1x32xf32> to vector<32x32xf32>
    %158 = arith.mulf %156, %157 : vector<32x32xf32>
    %159 = vector.broadcast %18 : vector<1x32xf32> to vector<32x32xf32>
    %160 = arith.addf %158, %159 : vector<32x32xf32>
    %c1 = arith.constant 1 : index
    %c0_54 = arith.constant 0 : index
    %c0_55 = arith.constant 0 : index
    %161 = vector.load %arg7[%c1, %c0_54, %c0_55] : memref<2x8x32xf32, #tpu.memory_space<vmem>>, vector<1x8x32xf32>
    %162 = vector.shape_cast %161 : vector<1x8x32xf32> to vector<8x32xf32>
    %163 = vector.extract_strided_slice %162 {offsets = [0, 0], sizes = [1, 32], strides = [1, 1]} : vector<8x32xf32> to vector<1x32xf32>
    %164 = vector.extract_strided_slice %162 {offsets = [1, 0], sizes = [1, 32], strides = [1, 1]} : vector<8x32xf32> to vector<1x32xf32>
    %165 = vector.extract_strided_slice %162 {offsets = [2, 0], sizes = [1, 32], strides = [1, 1]} : vector<8x32xf32> to vector<1x32xf32>
    %166 = vector.extract_strided_slice %162 {offsets = [3, 0], sizes = [1, 32], strides = [1, 1]} : vector<8x32xf32> to vector<1x32xf32>
    %167 = vector.extract_strided_slice %162 {offsets = [4, 0], sizes = [1, 32], strides = [1, 1]} : vector<8x32xf32> to vector<1x32xf32>
    %168 = vector.extract_strided_slice %162 {offsets = [5, 0], sizes = [1, 32], strides = [1, 1]} : vector<8x32xf32> to vector<1x32xf32>
    %169 = vector.extract_strided_slice %162 {offsets = [6, 0], sizes = [1, 32], strides = [1, 1]} : vector<8x32xf32> to vector<1x32xf32>
    %c1_56 = arith.constant 1 : index
    %c0_57 = arith.constant 0 : index
    %c0_58 = arith.constant 0 : index
    %170 = vector.load %arg3[%c1_56, %c0_57, %c0_58] : memref<2x32x96xf32, #tpu.memory_space<vmem>>, vector<1x32x96xf32>
    %171 = vector.shape_cast %170 : vector<1x32x96xf32> to vector<32x96xf32>
    %cst_59 = arith.constant dense<0.000000e+00> : vector<32x96xf32>
    %172 = tpu.matmul %160, %171, %cst_59 {dimension_numbers = #tpu.dot_dimension_numbers<[1], [0], [0], [1], [0, 0, 1, 1], [], []>} : vector<32x32xf32>, vector<32x96xf32>, vector<32x96xf32> -> vector<32x96xf32>
    %c1_60 = arith.constant 1 : index
    %c0_61 = arith.constant 0 : index
    %c0_62 = arith.constant 0 : index
    %173 = vector.load %arg4[%c1_60, %c0_61, %c0_62] : memref<2x1x96xf32, #tpu.memory_space<vmem>>, vector<1x1x96xf32>
    %174 = vector.shape_cast %173 : vector<1x1x96xf32> to vector<1x96xf32>
    %175 = vector.broadcast %174 : vector<1x96xf32> to vector<32x96xf32>
    %176 = arith.addf %172, %175 : vector<32x96xf32>
    %177 = vector.shape_cast %176 : vector<32x96xf32> to vector<2x16x96xf32>
    %c1_63 = arith.constant 1 : index
    %c0_64 = arith.constant 0 : index
    %c0_65 = arith.constant 0 : index
    %178 = vector.load %arg5[%c1_63, %c0_64, %c0_65] : memref<2x32x32xf32, #tpu.memory_space<vmem>>, vector<1x32x32xf32>
    %179 = vector.shape_cast %178 : vector<1x32x32xf32> to vector<32x32xf32>
    %180 = vector.extract_strided_slice %177 {offsets = [0, 0, 0], sizes = [2, 16, 8], strides = [1, 1, 1]} : vector<2x16x96xf32> to vector<2x16x8xf32>
    %181 = vector.extract_strided_slice %177 {offsets = [0, 0, 32], sizes = [2, 16, 8], strides = [1, 1, 1]} : vector<2x16x96xf32> to vector<2x16x8xf32>
    %182 = vector.extract_strided_slice %177 {offsets = [0, 0, 64], sizes = [2, 16, 8], strides = [1, 1, 1]} : vector<2x16x96xf32> to vector<2x16x8xf32>
    "tpu.trace_start"() <{level = 10 : i32, message = "bsd,btd->bst"}> : () -> ()
    %cst_66 = arith.constant dense<0.000000e+00> : vector<2x16x16xf32>
    %183 = tpu.matmul %180, %181, %cst_66 {dimension_numbers = #tpu.dot_dimension_numbers<[2], [2], [1], [1], [0, 0, 0, 1, 1, 1], [0], [0]>} : vector<2x16x8xf32>, vector<2x16x8xf32>, vector<2x16x16xf32> -> vector<2x16x16xf32>
    "tpu.trace_stop"() : () -> ()
    %cst_67 = arith.constant dense<0xFF800000> : vector<2x16xf32>
    %184 = vector.multi_reduction <maximumf>, %183, %cst_67 [2] : vector<2x16x16xf32> to vector<2x16xf32>
    %185 = vector.shape_cast %184 : vector<2x16xf32> to vector<2x16x1xf32>
    %186 = vector.broadcast %185 : vector<2x16x1xf32> to vector<2x16x16xf32>
    %187 = arith.subf %183, %186 : vector<2x16x16xf32>
    %188 = math.exp %187 : vector<2x16x16xf32>
    %cst_68 = arith.constant dense<0.000000e+00> : vector<2x16xf32>
    %189 = vector.multi_reduction <add>, %188, %cst_68 [2] : vector<2x16x16xf32> to vector<2x16xf32>
    %190 = vector.shape_cast %189 : vector<2x16xf32> to vector<2x16x1xf32>
    %191 = vector.broadcast %190 : vector<2x16x1xf32> to vector<2x16x16xf32>
    %192 = arith.divf %188, %191 : vector<2x16x16xf32>
    "tpu.trace_start"() <{level = 10 : i32, message = "bst,btd->bsd"}> : () -> ()
    %cst_69 = arith.constant dense<0.000000e+00> : vector<2x16x8xf32>
    %193 = tpu.matmul %192, %182, %cst_69 {dimension_numbers = #tpu.dot_dimension_numbers<[2], [1], [1], [2], [0, 0, 0, 1, 1, 2], [0], [0]>} : vector<2x16x16xf32>, vector<2x16x8xf32>, vector<2x16x8xf32> -> vector<2x16x8xf32>
    "tpu.trace_stop"() : () -> ()
    %194 = vector.shape_cast %193 : vector<2x16x8xf32> to vector<32x8xf32>
    %195 = vector.extract_strided_slice %179 {offsets = [0, 0], sizes = [8, 32], strides = [1, 1]} : vector<32x32xf32> to vector<8x32xf32>
    %cst_70 = arith.constant dense<0.000000e+00> : vector<32x32xf32>
    %196 = tpu.matmul %194, %195, %cst_70 {dimension_numbers = #tpu.dot_dimension_numbers<[1], [0], [0], [1], [0, 0, 1, 1], [], []>} : vector<32x8xf32>, vector<8x32xf32>, vector<32x32xf32> -> vector<32x32xf32>
    %197 = vector.extract_strided_slice %177 {offsets = [0, 0, 8], sizes = [2, 16, 8], strides = [1, 1, 1]} : vector<2x16x96xf32> to vector<2x16x8xf32>
    %198 = vector.extract_strided_slice %177 {offsets = [0, 0, 40], sizes = [2, 16, 8], strides = [1, 1, 1]} : vector<2x16x96xf32> to vector<2x16x8xf32>
    %199 = vector.extract_strided_slice %177 {offsets = [0, 0, 72], sizes = [2, 16, 8], strides = [1, 1, 1]} : vector<2x16x96xf32> to vector<2x16x8xf32>
    "tpu.trace_start"() <{level = 10 : i32, message = "bsd,btd->bst"}> : () -> ()
    %cst_71 = arith.constant dense<0.000000e+00> : vector<2x16x16xf32>
    %200 = tpu.matmul %197, %198, %cst_71 {dimension_numbers = #tpu.dot_dimension_numbers<[2], [2], [1], [1], [0, 0, 0, 1, 1, 1], [0], [0]>} : vector<2x16x8xf32>, vector<2x16x8xf32>, vector<2x16x16xf32> -> vector<2x16x16xf32>
    "tpu.trace_stop"() : () -> ()
    %cst_72 = arith.constant dense<0xFF800000> : vector<2x16xf32>
    %201 = vector.multi_reduction <maximumf>, %200, %cst_72 [2] : vector<2x16x16xf32> to vector<2x16xf32>
    %202 = vector.shape_cast %201 : vector<2x16xf32> to vector<2x16x1xf32>
    %203 = vector.broadcast %202 : vector<2x16x1xf32> to vector<2x16x16xf32>
    %204 = arith.subf %200, %203 : vector<2x16x16xf32>
    %205 = math.exp %204 : vector<2x16x16xf32>
    %cst_73 = arith.constant dense<0.000000e+00> : vector<2x16xf32>
    %206 = vector.multi_reduction <add>, %205, %cst_73 [2] : vector<2x16x16xf32> to vector<2x16xf32>
    %207 = vector.shape_cast %206 : vector<2x16xf32> to vector<2x16x1xf32>
    %208 = vector.broadcast %207 : vector<2x16x1xf32> to vector<2x16x16xf32>
    %209 = arith.divf %205, %208 : vector<2x16x16xf32>
    "tpu.trace_start"() <{level = 10 : i32, message = "bst,btd->bsd"}> : () -> ()
    %cst_74 = arith.constant dense<0.000000e+00> : vector<2x16x8xf32>
    %210 = tpu.matmul %209, %199, %cst_74 {dimension_numbers = #tpu.dot_dimension_numbers<[2], [1], [1], [2], [0, 0, 0, 1, 1, 2], [0], [0]>} : vector<2x16x16xf32>, vector<2x16x8xf32>, vector<2x16x8xf32> -> vector<2x16x8xf32>
    "tpu.trace_stop"() : () -> ()
    %211 = vector.shape_cast %210 : vector<2x16x8xf32> to vector<32x8xf32>
    %212 = vector.extract_strided_slice %179 {offsets = [8, 0], sizes = [8, 32], strides = [1, 1]} : vector<32x32xf32> to vector<8x32xf32>
    %cst_75 = arith.constant dense<0.000000e+00> : vector<32x32xf32>
    %213 = tpu.matmul %211, %212, %cst_75 {dimension_numbers = #tpu.dot_dimension_numbers<[1], [0], [0], [1], [0, 0, 1, 1], [], []>} : vector<32x8xf32>, vector<8x32xf32>, vector<32x32xf32> -> vector<32x32xf32>
    %214 = arith.addf %196, %213 : vector<32x32xf32>
    %215 = vector.extract_strided_slice %177 {offsets = [0, 0, 16], sizes = [2, 16, 8], strides = [1, 1, 1]} : vector<2x16x96xf32> to vector<2x16x8xf32>
    %216 = vector.extract_strided_slice %177 {offsets = [0, 0, 48], sizes = [2, 16, 8], strides = [1, 1, 1]} : vector<2x16x96xf32> to vector<2x16x8xf32>
    %217 = vector.extract_strided_slice %177 {offsets = [0, 0, 80], sizes = [2, 16, 8], strides = [1, 1, 1]} : vector<2x16x96xf32> to vector<2x16x8xf32>
    "tpu.trace_start"() <{level = 10 : i32, message = "bsd,btd->bst"}> : () -> ()
    %cst_76 = arith.constant dense<0.000000e+00> : vector<2x16x16xf32>
    %218 = tpu.matmul %215, %216, %cst_76 {dimension_numbers = #tpu.dot_dimension_numbers<[2], [2], [1], [1], [0, 0, 0, 1, 1, 1], [0], [0]>} : vector<2x16x8xf32>, vector<2x16x8xf32>, vector<2x16x16xf32> -> vector<2x16x16xf32>
    "tpu.trace_stop"() : () -> ()
    %cst_77 = arith.constant dense<0xFF800000> : vector<2x16xf32>
    %219 = vector.multi_reduction <maximumf>, %218, %cst_77 [2] : vector<2x16x16xf32> to vector<2x16xf32>
    %220 = vector.shape_cast %219 : vector<2x16xf32> to vector<2x16x1xf32>
    %221 = vector.broadcast %220 : vector<2x16x1xf32> to vector<2x16x16xf32>
    %222 = arith.subf %218, %221 : vector<2x16x16xf32>
    %223 = math.exp %222 : vector<2x16x16xf32>
    %cst_78 = arith.constant dense<0.000000e+00> : vector<2x16xf32>
    %224 = vector.multi_reduction <add>, %223, %cst_78 [2] : vector<2x16x16xf32> to vector<2x16xf32>
    %225 = vector.shape_cast %224 : vector<2x16xf32> to vector<2x16x1xf32>
    %226 = vector.broadcast %225 : vector<2x16x1xf32> to vector<2x16x16xf32>
    %227 = arith.divf %223, %226 : vector<2x16x16xf32>
    "tpu.trace_start"() <{level = 10 : i32, message = "bst,btd->bsd"}> : () -> ()
    %cst_79 = arith.constant dense<0.000000e+00> : vector<2x16x8xf32>
    %228 = tpu.matmul %227, %217, %cst_79 {dimension_numbers = #tpu.dot_dimension_numbers<[2], [1], [1], [2], [0, 0, 0, 1, 1, 2], [0], [0]>} : vector<2x16x16xf32>, vector<2x16x8xf32>, vector<2x16x8xf32> -> vector<2x16x8xf32>
    "tpu.trace_stop"() : () -> ()
    %229 = vector.shape_cast %228 : vector<2x16x8xf32> to vector<32x8xf32>
    %230 = vector.extract_strided_slice %179 {offsets = [16, 0], sizes = [8, 32], strides = [1, 1]} : vector<32x32xf32> to vector<8x32xf32>
    %cst_80 = arith.constant dense<0.000000e+00> : vector<32x32xf32>
    %231 = tpu.matmul %229, %230, %cst_80 {dimension_numbers = #tpu.dot_dimension_numbers<[1], [0], [0], [1], [0, 0, 1, 1], [], []>} : vector<32x8xf32>, vector<8x32xf32>, vector<32x32xf32> -> vector<32x32xf32>
    %232 = arith.addf %214, %231 : vector<32x32xf32>
    %233 = vector.extract_strided_slice %177 {offsets = [0, 0, 24], sizes = [2, 16, 8], strides = [1, 1, 1]} : vector<2x16x96xf32> to vector<2x16x8xf32>
    %234 = vector.extract_strided_slice %177 {offsets = [0, 0, 56], sizes = [2, 16, 8], strides = [1, 1, 1]} : vector<2x16x96xf32> to vector<2x16x8xf32>
    %235 = vector.extract_strided_slice %177 {offsets = [0, 0, 88], sizes = [2, 16, 8], strides = [1, 1, 1]} : vector<2x16x96xf32> to vector<2x16x8xf32>
    "tpu.trace_start"() <{level = 10 : i32, message = "bsd,btd->bst"}> : () -> ()
    %cst_81 = arith.constant dense<0.000000e+00> : vector<2x16x16xf32>
    %236 = tpu.matmul %233, %234, %cst_81 {dimension_numbers = #tpu.dot_dimension_numbers<[2], [2], [1], [1], [0, 0, 0, 1, 1, 1], [0], [0]>} : vector<2x16x8xf32>, vector<2x16x8xf32>, vector<2x16x16xf32> -> vector<2x16x16xf32>
    "tpu.trace_stop"() : () -> ()
    %cst_82 = arith.constant dense<0xFF800000> : vector<2x16xf32>
    %237 = vector.multi_reduction <maximumf>, %236, %cst_82 [2] : vector<2x16x16xf32> to vector<2x16xf32>
    %238 = vector.shape_cast %237 : vector<2x16xf32> to vector<2x16x1xf32>
    %239 = vector.broadcast %238 : vector<2x16x1xf32> to vector<2x16x16xf32>
    %240 = arith.subf %236, %239 : vector<2x16x16xf32>
    %241 = math.exp %240 : vector<2x16x16xf32>
    %cst_83 = arith.constant dense<0.000000e+00> : vector<2x16xf32>
    %242 = vector.multi_reduction <add>, %241, %cst_83 [2] : vector<2x16x16xf32> to vector<2x16xf32>
    %243 = vector.shape_cast %242 : vector<2x16xf32> to vector<2x16x1xf32>
    %244 = vector.broadcast %243 : vector<2x16x1xf32> to vector<2x16x16xf32>
    %245 = arith.divf %241, %244 : vector<2x16x16xf32>
    "tpu.trace_start"() <{level = 10 : i32, message = "bst,btd->bsd"}> : () -> ()
    %cst_84 = arith.constant dense<0.000000e+00> : vector<2x16x8xf32>
    %246 = tpu.matmul %245, %235, %cst_84 {dimension_numbers = #tpu.dot_dimension_numbers<[2], [1], [1], [2], [0, 0, 0, 1, 1, 2], [0], [0]>} : vector<2x16x16xf32>, vector<2x16x8xf32>, vector<2x16x8xf32> -> vector<2x16x8xf32>
    "tpu.trace_stop"() : () -> ()
    %247 = vector.shape_cast %246 : vector<2x16x8xf32> to vector<32x8xf32>
    %248 = vector.extract_strided_slice %179 {offsets = [24, 0], sizes = [8, 32], strides = [1, 1]} : vector<32x32xf32> to vector<8x32xf32>
    %cst_85 = arith.constant dense<0.000000e+00> : vector<32x32xf32>
    %249 = tpu.matmul %247, %248, %cst_85 {dimension_numbers = #tpu.dot_dimension_numbers<[1], [0], [0], [1], [0, 0, 1, 1], [], []>} : vector<32x8xf32>, vector<8x32xf32>, vector<32x32xf32> -> vector<32x32xf32>
    %250 = arith.addf %232, %249 : vector<32x32xf32>
    %251 = arith.addf %160, %250 : vector<32x32xf32>
    %252 = vector.broadcast %163 : vector<1x32xf32> to vector<32x32xf32>
    %253 = arith.addf %251, %252 : vector<32x32xf32>
    %cst_86 = arith.constant dense<0.000000e+00> : vector<32xf32>
    %254 = vector.multi_reduction <add>, %253, %cst_86 [1] : vector<32x32xf32> to vector<32xf32>
    %255 = vector.shape_cast %254 : vector<32xf32> to vector<32x1xf32>
    %cst_87 = arith.constant 3.200000e+01 : f32
    %256 = vector.broadcast %cst_87 : f32 to vector<32x1xf32>
    %257 = arith.divf %255, %256 : vector<32x1xf32>
    %258 = vector.broadcast %257 : vector<32x1xf32> to vector<32x32xf32>
    %259 = arith.subf %253, %258 : vector<32x32xf32>
    %260 = arith.mulf %259, %259 : vector<32x32xf32>
    %cst_88 = arith.constant dense<0.000000e+00> : vector<32xf32>
    %261 = vector.multi_reduction <add>, %260, %cst_88 [1] : vector<32x32xf32> to vector<32xf32>
    %262 = vector.shape_cast %261 : vector<32xf32> to vector<32x1xf32>
    %cst_89 = arith.constant 3.200000e+01 : f32
    %263 = vector.broadcast %cst_89 : f32 to vector<32x1xf32>
    %264 = arith.divf %262, %263 : vector<32x1xf32>
    %cst_90 = arith.constant 9.99999974E-6 : f32
    %265 = vector.broadcast %cst_90 : f32 to vector<32x1xf32>
    %266 = arith.addf %264, %265 : vector<32x1xf32>
    %267 = math.rsqrt %266 : vector<32x1xf32>
    %268 = vector.broadcast %267 : vector<32x1xf32> to vector<32x32xf32>
    %269 = arith.mulf %259, %268 : vector<32x32xf32>
    %270 = vector.broadcast %164 : vector<1x32xf32> to vector<32x32xf32>
    %271 = arith.mulf %269, %270 : vector<32x32xf32>
    %272 = vector.broadcast %165 : vector<1x32xf32> to vector<32x32xf32>
    %273 = arith.addf %271, %272 : vector<32x32xf32>
    %c1_91 = arith.constant 1 : index
    %c0_92 = arith.constant 0 : index
    %c0_93 = arith.constant 0 : index
    %274 = vector.load %arg6[%c1_91, %c0_92, %c0_93] : memref<2x32x32xf32, #tpu.memory_space<vmem>>, vector<1x32x32xf32>
    %275 = vector.shape_cast %274 : vector<1x32x32xf32> to vector<32x32xf32>
    %cst_94 = arith.constant dense<0.000000e+00> : vector<32x32xf32>
    %276 = tpu.matmul %273, %275, %cst_94 {dimension_numbers = #tpu.dot_dimension_numbers<[1], [0], [0], [1], [0, 0, 1, 1], [], []>} : vector<32x32xf32>, vector<32x32xf32>, vector<32x32xf32> -> vector<32x32xf32>
    %277 = vector.broadcast %166 : vector<1x32xf32> to vector<32x32xf32>
    %278 = arith.addf %276, %277 : vector<32x32xf32>
    %279 = math.sin %278 : vector<32x32xf32>
    %cst_95 = arith.constant 5.000000e-01 : f32
    %280 = vector.broadcast %cst_95 : f32 to vector<32x32xf32>
    %281 = arith.mulf %280, %278 : vector<32x32xf32>
    %cst_96 = arith.constant 0.707106769 : f32
    %282 = vector.broadcast %cst_96 : f32 to vector<32x32xf32>
    %283 = arith.mulf %278, %282 : vector<32x32xf32>
    %284 = math.erf %283 : vector<32x32xf32>
    %cst_97 = arith.constant 1.000000e+00 : f32
    %285 = vector.broadcast %cst_97 : f32 to vector<32x32xf32>
    %286 = arith.addf %285, %284 : vector<32x32xf32>
    %287 = arith.mulf %281, %286 : vector<32x32xf32>
    %288 = arith.select %9, %279, %287 : vector<32x32xi1>, vector<32x32xf32>
    %289 = vector.broadcast %167 : vector<1x32xf32> to vector<32x32xf32>
    %290 = arith.mulf %288, %289 : vector<32x32xf32>
    %291 = arith.addf %273, %290 : vector<32x32xf32>
    %cst_98 = arith.constant dense<0.000000e+00> : vector<32xf32>
    %292 = vector.multi_reduction <add>, %291, %cst_98 [1] : vector<32x32xf32> to vector<32xf32>
    %293 = vector.shape_cast %292 : vector<32xf32> to vector<32x1xf32>
    %cst_99 = arith.constant 3.200000e+01 : f32
    %294 = vector.broadcast %cst_99 : f32 to vector<32x1xf32>
    %295 = arith.divf %293, %294 : vector<32x1xf32>
    %296 = vector.broadcast %295 : vector<32x1xf32> to vector<32x32xf32>
    %297 = arith.subf %291, %296 : vector<32x32xf32>
    %298 = arith.mulf %297, %297 : vector<32x32xf32>
    %cst_100 = arith.constant dense<0.000000e+00> : vector<32xf32>
    %299 = vector.multi_reduction <add>, %298, %cst_100 [1] : vector<32x32xf32> to vector<32xf32>
    %300 = vector.shape_cast %299 : vector<32xf32> to vector<32x1xf32>
    %cst_101 = arith.constant 3.200000e+01 : f32
    %301 = vector.broadcast %cst_101 : f32 to vector<32x1xf32>
    %302 = arith.divf %300, %301 : vector<32x1xf32>
    %cst_102 = arith.constant 9.99999974E-6 : f32
    %303 = vector.broadcast %cst_102 : f32 to vector<32x1xf32>
    %304 = arith.addf %302, %303 : vector<32x1xf32>
    %305 = math.rsqrt %304 : vector<32x1xf32>
    %306 = vector.broadcast %305 : vector<32x1xf32> to vector<32x32xf32>
    %307 = arith.mulf %297, %306 : vector<32x32xf32>
    %308 = vector.broadcast %168 : vector<1x32xf32> to vector<32x32xf32>
    %309 = arith.mulf %307, %308 : vector<32x32xf32>
    %310 = vector.broadcast %169 : vector<1x32xf32> to vector<32x32xf32>
    %311 = arith.addf %309, %310 : vector<32x32xf32>
    %312 = vector.shape_cast %311 : vector<32x32xf32> to vector<2x16x32xf32>
    %313 = vector.extract_strided_slice %312 {offsets = [0, 15, 0], sizes = [2, 1, 32], strides = [1, 1, 1]} : vector<2x16x32xf32> to vector<2x1x32xf32>
    %314 = vector.shape_cast %313 : vector<2x1x32xf32> to vector<2x32xf32>
    %c0_103 = arith.constant 0 : index
    %c0_104 = arith.constant 0 : index
    %315 = vector.load %arg8[%c0_103, %c0_104] : memref<32x128xf32, #tpu.memory_space<vmem>>, vector<32x128xf32>
    %cst_105 = arith.constant dense<0.000000e+00> : vector<2x128xf32>
    %316 = tpu.matmul %314, %315, %cst_105 {dimension_numbers = #tpu.dot_dimension_numbers<[1], [0], [0], [1], [0, 0, 1, 1], [], []>} : vector<2x32xf32>, vector<32x128xf32>, vector<2x128xf32> -> vector<2x128xf32>
    %c0_106 = arith.constant 0 : index
    %c0_107 = arith.constant 0 : index
    %317 = vector.load %arg9[%c0_106, %c0_107] : memref<1x128xf32, #tpu.memory_space<vmem>>, vector<1x128xf32>
    %318 = vector.broadcast %317 : vector<1x128xf32> to vector<2x128xf32>
    %319 = arith.addf %316, %318 : vector<2x128xf32>
    %c0_108 = arith.constant 0 : index
    %c0_109 = arith.constant 0 : index
    %320 = vector.load %arg10[%c0_108, %c0_109] : memref<2x128xf32, #tpu.memory_space<vmem>>, vector<2x128xf32>
    tpu.vector_store %arg10[%c0_108, %c0_109], %319 {strides = array<i32>} : memref<2x128xf32, #tpu.memory_space<vmem>>, vector<2x128xf32>,
    return
  }
}

</mosaic_0001>

<bundles_post_ra>
// kernel: tpu_custom_call.1
= control target key start
LH: loop header
LB: loop body
LE: loop exit
PB: predicated region body
PF: predicated region fallthrough
CT: control target
= control target key end

     0   :  { %15 = vsyncpa [#allocation3], 0  ;;  %s8403_s0 = inlined_call_operand.vmem [shape: f32[32,1], index: 0, kind: input, shape index: {}]   ;;  %s8404_s1 = inlined_call_operand.hbm [shape: f32[1,32], index: 1, kind: input, shape index: {}]   ;;  %s8405_s2 = inlined_call_operand.vmem [shape: f32[32,32], index: 2, kind: input, shape index: {}]   ;;  %s8406_s3 = inlined_call_operand.hbm [shape: f32[2,32,96], index: 3, kind: input, shape index: {}]   ;;  %s8407_s4 = inlined_call_operand.hbm [shape: f32[2,1,96], index: 4, kind: input, shape index: {}]   ;;  %s8408_s5 = inlined_call_operand.hbm [shape: f32[2,32,32], index: 5, kind: input, shape index: {}]   ;;  %s8409_s6 = inlined_call_operand.hbm [shape: f32[2,32,32], index: 6, kind: input, shape index: {}]   ;;  %s8410_s7 = inlined_call_operand.vmem [shape: f32[2,8,32], index: 7, kind: input, shape index: {}]   ;;  %s8411_s8 = inlined_call_operand.hbm [shape: f32[32,128], index: 8, kind: input, shape index: {}]   ;;  %s8412_s9 = inlined_call_operand.vmem [shape: f32[1,128], index: 9, kind: input, shape index: {}]   ;;  %s8413_s10 = inlined_call_operand.hbm [shape: f32[2,128], index: 10, kind: output, shape index: {}]  }
   0x1   :  { %16 = vsyncpa [#allocation6], 0 }
   0x2   :  { %17 = vsyncpa [#allocation9], 0 }
   0x3   :  { %18 = vsyncpa [#allocation12], 0 }
   0x4   :  { %19 = vsyncpa [#allocation4], 0  ;;  %s7174_s13 = smov [#allocation5]   ;;  %s7010_s17 = scalar_lea.hbm %s8406_s3, 1024 }
   0x5   :  { %s39_s14 = sshll.u32 %s7174_s13, 4  ;;  %p7011_p0 = scmp.ne.s32.totalorder %s8406_s3, %s7010_s17  ;;  %s40_s14 = int_to_ptr.vmem [resolvable:$true] %s39_s14 }
   0x6   :  { %p7014_p1 = scmp.lt.u32.totalorder %s7010_s17, %s8406_s3 }
   0x8   :  { %p7016_p2 = pnand %p7014_p1, %p7011_p0 }
   0xa   :  { %7019 = shalt.err (!%p7016_p2)
}
   0xb   :  { %s7020_s22 = scalar_lea.vmem %s40_s14, 1024  ;;  %p7025_p4 = scmp.lt.s32.totalorder %s40_s14, %s40_s14 }
   0xc   :  { %p7021_p3 = scmp.ne.s32.totalorder %s40_s14, %s7020_s22  ;;  %p7026_p5 = scmp.lt.s32.totalorder %s7020_s22, %s7020_s22 }
   0xe   :  { %p7027_p6 = por %p7026_p5, %p7025_p4 }
  0x10   :  { %p7028_p7 = pnand %p7027_p6, %p7021_p3 }
  0x12   :  { %7031 = shalt.err (!%p7028_p7)
}
  0x13   :  { %s7175_s23 = smov 128   ;;  %s7176_s24 = smov 8  }
  0x14   :  { %45 = dma.hbm_to_vmem [thread:$0]  %s8406_s3, 1024, %s40_s14, [#allocation6], %s7175_s23, %s7175_s23, %s7176_s24  }
  0x15   :  { %s7177_s27 = smov [#allocation8]   ;;  %s7178_s29 = smov [#allocation2]  }
  0x16   :  { %s63_s28 = sshll.u32 %s7177_s27, 4  ;;  %s28_s30 = sshll.u32 %s7178_s29, 4  ;;  %s64_s28 = int_to_ptr.vmem [resolvable:$true] %s63_s28  ;;  %s29_s30 = int_to_ptr.vmem [resolvable:$true] %s28_s30 }
  0x17   :  { %s7032_s13 = scalar_lea.hbm %s8408_s5, 1024 }
  0x18   :  { %p7033_p8 = scmp.ne.s32.totalorder %s8408_s5, %s7032_s13  ;;  %p7036_p9 = scmp.lt.u32.totalorder %s7032_s13, %s8408_s5 }
  0x1a   :  { %p7038_p10 = pnand %p7036_p9, %p7033_p8 }
  0x1c   :  { %7041 = shalt.err (!%p7038_p10)
}
  0x1d   :  { %s7042_s3 = scalar_lea.vmem %s64_s28, 1024  ;;  %p7047_p12 = scmp.lt.s32.totalorder %s64_s28, %s64_s28 }
  0x1e   :  { %p7043_p11 = scmp.ne.s32.totalorder %s64_s28, %s7042_s3  ;;  %p7048_p13 = scmp.lt.s32.totalorder %s7042_s3, %s7042_s3 }
  0x20   :  { %p7049_p0 = por %p7048_p13, %p7047_p12 }
  0x22   :  { %p7050_p1 = pnand %p7049_p0, %p7043_p11 }
  0x24   :  { %7053 = shalt.err (!%p7050_p1)
}
  0x25   :  { %69 = dma.hbm_to_vmem [thread:$0]  %s8408_s5, 1024, %s64_s28, [#allocation9], %s7175_s23, %s7175_s23, %s7176_s24  }
  0x26   :  { %s7054_s22 = scalar_lea.hbm %s8404_s1, 16 }
  0x27   :  { %p7055_p2 = scmp.ne.s32.totalorder %s8404_s1, %s7054_s22  ;;  %p7058_p3 = scmp.lt.u32.totalorder %s7054_s22, %s8404_s1 }
  0x29   :  { %p7060_p4 = pnand %p7058_p3, %p7055_p2 }
  0x2b   :  { %7063 = shalt.err (!%p7060_p4)
}
  0x2c   :  { %s7064_s11 = scalar_lea.vmem %s29_s30, 16  ;;  %s7068_s12 = scalar_lea.vmem %s29_s30, 32 }
  0x2d   :  { %p7065_p5 = scmp.ne.s32.totalorder %s29_s30, %s7064_s11  ;;  %p7069_p6 = scmp.lt.s32.totalorder %s29_s30, %s29_s30 }
  0x2e   :  { %p7070_p7 = scmp.lt.s32.totalorder %s7068_s12, %s7064_s11 }
  0x30   :  { %p7071_p8 = por %p7070_p7, %p7069_p6 }
  0x32   :  { %p7072_p9 = pnand %p7071_p8, %p7065_p5 }
  0x34   :  { %7075 = shalt.err (!%p7072_p9)
}
  0x35   :  { %31 = dma.hbm_to_vmem [thread:$0]  %s8404_s1, 16, %s29_s30, [#allocation3]  }
  0x36   :  { %s7179_s13 = smov [#allocation7]   ;;  %s7076_s18 = scalar_lea.hbm %s8407_s4, 32 }
  0x37   :  { %s51_s15 = sshll.u32 %s7179_s13, 4  ;;  %p7077_p10 = scmp.ne.s32.totalorder %s8407_s4, %s7076_s18  ;;  %s52_s15 = int_to_ptr.vmem [resolvable:$true] %s51_s15 }
  0x38   :  { %p7080_p11 = scmp.lt.u32.totalorder %s7076_s18, %s8407_s4 }
  0x3a   :  { %p7082_p12 = pnand %p7080_p11, %p7077_p10 }
  0x3c   :  { %7085 = shalt.err (!%p7082_p12)
}
  0x3d   :  { %s7086_s21 = scalar_lea.vmem %s52_s15, 32  ;;  %p7091_p0 = scmp.lt.s32.totalorder %s52_s15, %s52_s15 }
  0x3e   :  { %p7087_p13 = scmp.ne.s32.totalorder %s52_s15, %s7086_s21  ;;  %p7092_p1 = scmp.lt.s32.totalorder %s7086_s21, %s7086_s21 }
  0x40   :  { %p7093_p2 = por %p7092_p1, %p7091_p0 }
  0x42   :  { %p7094_p3 = pnand %p7093_p2, %p7087_p13 }
  0x44   :  { %7097 = shalt.err (!%p7094_p3)
}
  0x45   :  { %s7180_s1 = smov 16   ;;  %s7181_s30 = smov 1  }
  0x46   :  { %57 = dma.hbm_to_vmem [thread:$0]  %s8407_s4, 32, %s52_s15, [#allocation6], %s7180_s1, %s7180_s1, %s7181_s30  }
  0x47   :  { %s7182_s26 = smov [#allocation10]   ;;  %s7183_s29 = smov [#allocation11]  }
  0x48   :  { %s75_s27 = sshll.u32 %s7182_s26, 4  ;;  %s89_s11 = sshll.u32 %s7183_s29, 4  ;;  %s76_s27 = int_to_ptr.vmem [resolvable:$true] %s75_s27  ;;  %s7315_s11 = int_to_ptr.vmem [resolvable:$true] %s89_s11 }
  0x49   :  { %s7098_s28 = scalar_lea.hbm %s8409_s6, 1024 }
  0x4a   :  { %p7099_p4 = scmp.ne.s32.totalorder %s8409_s6, %s7098_s28  ;;  %p7102_p5 = scmp.lt.u32.totalorder %s7098_s28, %s8409_s6 }
  0x4c   :  { %p7104_p6 = pnand %p7102_p5, %p7099_p4 }
  0x4e   :  { %7107 = shalt.err (!%p7104_p6)
}
  0x4f   :  { %s7108_s4 = scalar_lea.vmem %s76_s27, 1024  ;;  %p7113_p8 = scmp.lt.s32.totalorder %s76_s27, %s76_s27 }
  0x50   :  { %p7109_p7 = scmp.ne.s32.totalorder %s76_s27, %s7108_s4  ;;  %p7114_p9 = scmp.lt.s32.totalorder %s7108_s4, %s7108_s4 }
  0x52   :  { %p7115_p10 = por %p7114_p9, %p7113_p8 }
  0x54   :  { %p7116_p11 = pnand %p7115_p10, %p7109_p7 }
  0x56   :  { %7119 = shalt.err (!%p7116_p11)
}
  0x57   :  { %81 = dma.hbm_to_vmem [thread:$0]  %s8409_s6, 1024, %s76_s27, [#allocation9], %s7175_s23, %s7175_s23, %s7176_s24  }
  0x58   :  { %s7120_s20 = scalar_lea.hbm %s8411_s8, 512 }
  0x59   :  { %p7121_p12 = scmp.ne.s32.totalorder %s8411_s8, %s7120_s20  ;;  %p7124_p13 = scmp.lt.u32.totalorder %s7120_s20, %s8411_s8 }
  0x5b   :  { %p7126_p0 = pnand %p7124_p13, %p7121_p12 }
  0x5d   :  { %7129 = shalt.err (!%p7126_p0)
}
  0x5e   :  { %s7130_s25 = scalar_lea.vmem %s7315_s11, 512  ;;  %p7135_p2 = scmp.lt.s32.totalorder %s7315_s11, %s7315_s11 }
  0x5f   :  { %p7131_p1 = scmp.ne.s32.totalorder %s7315_s11, %s7130_s25  ;;  %p7136_p3 = scmp.lt.s32.totalorder %s7130_s25, %s7130_s25 }
  0x61   :  { %p7137_p4 = por %p7136_p3, %p7135_p2 }
  0x63   :  { %p7138_p5 = pnand %p7137_p4, %p7131_p1 }
  0x65   :  { %7141 = shalt.err (!%p7138_p5)
}
  0x66   :  { %95 = dma.hbm_to_vmem [thread:$0]  %s8411_s8, 512, %s7315_s11, [#allocation12], %s7175_s23, %s7175_s23, %s7176_s24  }
  0x67   :  { %7164 = dma.done.wait [#allocation3], 16  }
  0x68   :  { %7165 = vsyncadd [#allocation3], 4294967280 }
  0x69   :  { %7166 = dma.done.wait [#allocation6], 1056  }
  0x6a   :  { %7167 = vsyncadd [#allocation6], 4294966240 }
  0x6b   :  { %7168 = dma.done.wait [#allocation9], 2048  }
  0x6c   :  { %7169 = vsyncadd [#allocation9], 4294965248 }
  0x6d   :  { %7170 = dma.done.wait [#allocation12], 512  }
  0x6e   :  { %7171 = vsyncadd [#allocation12], 4294966784  ;;  %v7184_v0 = vmov 0   ;;  %v116_v1 = vld [vmem:[%s8403_s0] sm:$0xff]  ;;  %v118_v2 = vld [vmem:[%s8403_s0 + $0x10] sm:$0xff]  ;;  %vm174_vm0 = vcmask 261120  }
  0x6f   :  { %6655 = vset.pattern.permute.xlu0 %v7184_v0  ;;  %6656 = vset.pattern.permute.xlu1 %v7184_v0  ;;  %v117_v3 = vld [vmem:[%s8403_s0 + $0x8] sm:$0xff]  ;;  %v163_v4 = vld [vmem:[#allocation5] sm:$0xff]  ;;  %v166_v9 = vld [vmem:[#allocation5 + $0x18] sm:$0xff]  ;;  %vm282_vm1 = vcmask 64512   ;;  %vm455_vm3 = vcmask 130048   ;;  %s7186_s3 = smov 64  }
  0x70   :  { %123 = vperm.xlu0 %6655, %v116_v1   ;;  %133 = vperm.xlu1 %6656, %v118_v2   ;;  %v119_v5 = vld [vmem:[%s8403_s0 + $0x18] sm:$0xff]  ;;  %v164_v6 = vld [vmem:[#allocation5 + $0x8] sm:$0xff]  ;;  %v165_v7 = vld [vmem:[#allocation5 + $0x10] sm:$0xff]  ;;  %s7187_s14 = smov 88   ;;  %s7188_s19 = smov 120  }
  0x71   :  { %v6377_v8 = vpack.c.bf16 %v164_v6, %v163_v4  ;;  %v6381_v10 = vpack.c.bf16 %v166_v9, %v165_v7  ;;  %v5643_v11 = vld [vmem:[#allocation2] ss:$0 sm:$0xff]  ;;  %v151_v14 = vld [vmem:[%s8405_s2] sm:$0xff]  ;;  %v153_v17 = vld [vmem:[%s8405_s2 + $0x10] sm:$0xff]  ;;  %s7189_s20 = smov 56   ;;  %s7190_s21 = smov 80  }
  0x72   :  { %v152_v19 = vld [vmem:[%s8405_s2 + $0x8] sm:$0xff]  ;;  %v154_v25 = vld [vmem:[%s8405_s2 + $0x18] sm:$0xff]  ;;  %s7185_s2 = smov 96   ;;  %vm7418_vm2 = vmpackc.low %vm282_vm1, %vm282_vm1  ;;  %s7191_s1 = smov 112  }
  0x73   :  { %6378 = vmatprep.subr.bf16.mxu0 %v6377_v8  ;;  %v5644_v28 = vld [vmem:[#allocation7] ss:$0 sm:$0xff]  ;;  %s7192_s30 = smov 48   ;;  %s7193_s22 = smov 104  }
  0x74   :  { %128 = vperm.xlu0 %6655, %v117_v3   ;;  %138 = vperm.xlu1 %6656, %v119_v5   ;;  %s7194_s25 = smov 72   ;;  %s7195_s6 = smov 40  }
  0x75   :  { %6380 = vmatpush3.bf16.msra.mxu0 %v6377_v8  ;;  %s7205_s24 = smov [#allocation13]  }
  0x76   :  { %6382 = vmatprep.subr.bf16.mxu0 %v6381_v10  ;;  %s5631_s11 = sshll.u32 %s7205_s24, 4  ;;  %s5632_s11 = int_to_ptr.vmem [resolvable:$true] %s5631_s11 }
  0x77   :  { %s7142_s28 = scalar_lea.vmem %s5632_s11, 32  ;;  %p7147_p7 = scmp.lt.s32.totalorder %s5632_s11, %s5632_s11 }
  0x78   :  { %p7143_p6 = scmp.ne.s32.totalorder %s5632_s11, %s7142_s28  ;;  %p7148_p8 = scmp.lt.s32.totalorder %s7142_s28, %s7142_s28 }
  0x79   :  { %6384 = vmatpush3.bf16.msra.mxu0 %v6381_v10 }
  0x7a   :  { %p7149_p9 = por %p7148_p8, %p7147_p7 }
  0x7c   :  { %p7150_p10 = pnand %p7149_p9, %p7143_p6 }
  0xef   :  { %v124_v12 = vpop.permute.xlu0 %123  ;;  %v134_v13 = vpop.permute.xlu1 %133 }
  0xf0   :  { %v147_v15 = vmul.f32 %v5643_v11, %v124_v12  ;;  %v149_v16 = vmul.f32 %v5643_v11, %v134_v13 }
  0xf2   :  { %v7370_v18 = vadd.f32 %v151_v14, %v147_v15  ;;  %v7377_v24 = vadd.f32 %v153_v17, %v149_v16 }
  0xf3   :  { %v129_v20 = vpop.permute.xlu0 %128  ;;  %v139_v21 = vpop.permute.xlu1 %138 }
  0xf4   :  { %v148_v22 = vmul.f32 %v5643_v11, %v129_v20  ;;  %6030 = vmatprep.mubr.msk.f32.mxu0 %vm174_vm0, %v7370_v18  ;;  %v150_v23 = vmul.f32 %v5643_v11, %v139_v21 }
  0xf6   :  { %v7382_v26 = vadd.f32 %v152_v19, %v148_v22  ;;  %v7384_v27 = vadd.f32 %v154_v25, %v150_v23 }
  0xf8   :  { %6031 = vmatmul.mubr.msk.f32.vlgmr.msra.gmra.mrb[0].mxu0 %vm174_vm0, %v7382_v26 }
  0xf9   :  { %6033 = vmatprep.mubr.msk.f32.mxu0 %vm174_vm0, %v7377_v24 }
  0xfc   :  { %6034 = vmatmul.mubr.msk.f32.gmra.mrb[2].mxu0 %vm174_vm0, %v7384_v27 }
 0x1cb   :  { %v6032_v29 = vpop.f32.mrb[0].mxu0 }
 0x1cc   :  { %v7392_v30 = vadd.f32 %v6032_v29, %v5644_v28  ;;  %v253_v31 = vpop.f32.mrb[1].mxu0 }
 0x1cd   :  { %v7394_v32 = vadd.f32 %v5644_v28, %v253_v31 }
 0x1cf   :  { %v6035_v33 = vpop.f32.mrb[2].mxu0  ;;  %6040 = vmatprep.mubr.msk.f32.mxu1 %vm282_vm1, %v7394_v32  ;;  %v7400_v34 = vpack.i.bf16 %v7392_v30, %v7394_v32 }
 0x1d0   :  { %v7402_v35 = vadd.f32 %v6035_v33, %v5644_v28  ;;  %v263_v36 = vpop.f32.mrb[3].mxu0 }
 0x1d1   :  { %v7404_v37 = vadd.f32 %v5644_v28, %v263_v36  ;;  %6658 = vrot.lane.b32.xlu0 %v7400_v34, %s7185_s2 }
 0x1d3   :  { %v7410_v38 = vpack.i.bf16 %v7402_v35, %v7404_v37  ;;  %6047 = vmatprep.mubr.msk.f32.mxu0 %vm282_vm1, %v7404_v37 }
 0x1d5   :  { %6663 = vrot.lane.b32.xlu1 %v7410_v38, %s7185_s2 }
 0x243   :  { %v6659_v39 = vpop.permute.xlu0 %6658 }
 0x244   :  { %v6661_v40 = vunpack.i.h.bf16 %v6659_v39  ;;  %v6660_v41 = vunpack.i.l.bf16 %v6659_v39 }
 0x246   :  { %v6385_v43 = vpack.c.bf16 %v6661_v40, %v6660_v41 }
 0x247   :  { %v6664_v44 = vpop.permute.xlu1 %6663 }
 0x248   :  { %v6666_v45 = vunpack.i.h.bf16 %v6664_v44  ;;  %v6665_v46 = vunpack.i.l.bf16 %v6664_v44  ;;  %6387 = vmatprep.subr.msk.bf16.mxu1 %vm7418_vm2, %v6385_v43 }
 0x249   :  { %6390 = vmatpush3.bf16.xpose.msk.msra.mxu1 %vm7418_vm2, %v6385_v43 }
 0x24a   :  { %v6391_v47 = vpack.c.bf16 %v6666_v45, %v6665_v46 }
 0x24c   :  { %6393 = vmatprep.subr.msk.bf16.mxu0 %vm7418_vm2, %v6391_v47 }
 0x24d   :  { %6396 = vmatpush3.bf16.xpose.msk.msra.mxu0 %vm7418_vm2, %v6391_v47 }
 0x250   :  { %6041 = vmatmul.mubr.msk.f32.vlgmr.msra.gmra.mrb[0].mxu1 %vm282_vm1, %v7392_v30 }
 0x254   :  { %6048 = vmatmul.mubr.msk.f32.vlgmr.msra.gmra.mrb[4].mxu0 %vm282_vm1, %v7402_v35 }
 0x323   :  { %v6042_v48 = vpop.f32.mrb[0].mxu1 }
 0x324   :  { %v357_v49 = vpop.f32.mrb[1].mxu1  ;;  %v459_v50 = vsel %vm455_vm3, %v6042_v48, -inf }
 0x325   :  { %460 = vmax.xlane.f32.xlu1 %v459_v50  ;;  %v456_v51 = vsel %vm455_vm3, %v357_v49, -inf }
 0x326   :  { %457 = vmax.xlane.f32.xlu0 %v456_v51 }
 0x327   :  { %v6049_v52 = vpop.f32.mrb[4].mxu0 }
 0x328   :  { %v446_v53 = vpop.f32.mrb[5].mxu0  ;;  %v465_v55 = vsel %vm455_vm3, %v6049_v52, -inf }
 0x329   :  { %v462_v54 = vsel %vm455_vm3, %v446_v53, -inf }
 0x32a   :  { %463 = vmax.xlane.f32.xlu0 %v462_v54 }
 0x32e   :  { %466 = vmax.xlane.f32.xlu0 %v465_v55 }
 0x336   :  { %6668 = vrot.lane.b32.xlu1 %v7400_v34, %s7186_s3 }
 0x3b2   :  { %v461_v56 = vpop.xlane.xlu1 %460 }
 0x3b3   :  { %v469_v57 = vsub.f32 %v6042_v48, %v461_v56  ;;  %v458_v58 = vpop.xlane.xlu0 %457 }
 0x3b4   :  { %v468_v59 = vsub.f32 %v357_v49, %v458_v58 }
 0x3b5   :  { %v474_v60 = vmul.f32 1.442695, %v469_v57 }
 0x3b6   :  { %v472_v61 = vmul.f32 1.442695, %v468_v59  ;;  %v6669_v62 = vpop.permute.xlu1 %6668 }
 0x3b7   :  { %6817 = vpow2.f32 %v474_v60  ;;  %v6671_v63 = vunpack.i.h.bf16 %v6669_v62  ;;  %v6670_v0 = vunpack.i.l.bf16 %v6669_v62  ;;  %v464_v1 = vpop.xlane.xlu0 %463 }
 0x3b8   :  { %6819 = vpow2.f32 %v472_v61  ;;  %v470_v12 = vsub.f32 %v446_v53, %v464_v1 }
 0x3b9   :  { %v6397_v2 = vpack.c.bf16 %v6671_v63, %v6670_v0 }
 0x3ba   :  { %v476_v13 = vmul.f32 1.442695, %v470_v12 }
 0x3bb   :  { %6398 = vmatprep.subr.bf16.mxu1 %v6397_v2  ;;  %v467_v3 = vpop.xlane.xlu0 %466 }
 0x3bc   :  { %v471_v4 = vsub.f32 %v6049_v52, %v467_v3  ;;  %6400 = vmatpush3.bf16.msra.mxu1 %v6397_v2 }
 0x3be   :  { %v478_v5 = vmul.f32 1.442695, %v471_v4 }
 0x3c0   :  { %6821 = vpow2.f32 %v478_v5 }
 0x3c1   :  { %v6818_v6 = vpop.eup %6817  ;;  %6823 = vpow2.f32 %v476_v13 }
 0x3c2   :  { %v6820_v7 = vpop.eup %6819  ;;  %v483_v8 = vsel %vm455_vm3, %v6818_v6, 0.0 }
 0x3c3   :  { %484 = vadd.xlane.f32.xlu0 %v483_v8  ;;  %v480_v9 = vsel %vm455_vm3, %v6820_v7, 0.0 }
 0x3c4   :  { %481 = vadd.xlane.f32.xlu1 %v480_v9 }
 0x3ca   :  { %v6822_v10 = vpop.eup %6821 }
 0x3cb   :  { %v489_v11 = vsel %vm455_vm3, %v6822_v10, 0.0  ;;  %v6824_v14 = vpop.eup %6823 }
 0x3cc   :  { %490 = vadd.xlane.f32.xlu0 %v489_v11  ;;  %v486_v15 = vsel %vm455_vm3, %v6824_v14, 0.0 }
 0x3d5   :  { %6678 = vrot.lane.b32.xlu1 %v7410_v38, %s7187_s14 }
 0x3e2   :  { %6673 = vrot.lane.b32.xlu0 %v7410_v38, %s7186_s3 }
 0x3e6   :  { %767 = vrot.lane.b32.xlu0 %v7402_v35, %s7188_s19 }
 0x3ea   :  { %674 = vrot.lane.b32.xlu0 %v7394_v32, %s7188_s19 }
 0x3f9   :  { %487 = vadd.xlane.f32.xlu1 %v486_v15 }
 0x40a   :  { %765 = vrot.lane.b32.xlu1 %v7404_v37, %s7188_s19 }
 0x40e   :  { %6683 = vrot.lane.b32.xlu1 %v7400_v34, %s7187_s14 }
 0x412   :  { %676 = vrot.lane.b32.xlu1 %v7392_v30, %s7188_s19 }
 0x450   :  { %v485_v16 = vpop.xlane.xlu0 %484 }
 0x451   :  { %6825 = vrcp.f32 %v485_v16  ;;  %v482_v17 = vpop.xlane.xlu1 %481 }
 0x452   :  { %6827 = vrcp.f32 %v482_v17 }
 0x455   :  { %v6679_v20 = vpop.permute.xlu1 %6678 }
 0x456   :  { %v6681_v23 = vunpack.i.h.bf16 %v6679_v20  ;;  %v6680_v29 = vunpack.i.l.bf16 %v6679_v20 }
 0x458   :  { %v6411_v41 = vpack.c.bf16 %v6681_v23, %v6680_v29 }
 0x459   :  { %v491_v19 = vpop.xlane.xlu0 %490 }
 0x45a   :  { %6829 = vrcp.f32 %v491_v19 }
 0x45b   :  { %v6826_v21 = vpop.eup %6825 }
 0x45c   :  { %v6828_v22 = vpop.eup %6827  ;;  %v495_v36 = vmul.f32 %v6826_v21, %v6818_v6 }
 0x45d   :  { %v6674_v25 = vpop.permute.xlu0 %6673  ;;  %v493_v28 = vmul.f32 %v6828_v22, %v6820_v7 }
 0x45e   :  { %v6676_v31 = vunpack.i.h.bf16 %v6674_v25  ;;  %v6675_v33 = vunpack.i.l.bf16 %v6674_v25 }
 0x45f   :  { %6054 = vmatprep.mubr.msk.f32.mxu1 %vm455_vm3, %v493_v28 }
 0x460   :  { %6055 = vmatmul.mubr.msk.f32.vlgmr.msra.gmra.mrb[2].mxu1 %vm455_vm3, %v495_v36  ;;  %v6401_v39 = vpack.c.bf16 %v6676_v31, %v6675_v33 }
 0x461   :  { %v768_v40 = vpop.permute.xlu0 %767 }
 0x462   :  { %6402 = vmatprep.subr.bf16.mxu1 %v6401_v39 }
 0x463   :  { %6404 = vmatpush3.bf16.msra.mxu1 %v6401_v39 }
 0x464   :  { %6413 = vmatprep.subr.msk.bf16.mxu1 %vm7418_vm2, %v6411_v41  ;;  %v6830_v49 = vpop.eup %6829 }
 0x465   :  { %v675_v43 = vpop.permute.xlu0 %674  ;;  %v499_v53 = vmul.f32 %v6830_v49, %v6822_v10 }
 0x466   :  { %6068 = vmatprep.mubr.msk.f32.mxu0 %vm282_vm1, %v675_v43 }
 0x486   :  { %v488_v44 = vpop.xlane.xlu1 %487 }
 0x487   :  { %6831 = vrcp.f32 %v488_v44 }
 0x48a   :  { %v766_v45 = vpop.permute.xlu1 %765 }
 0x48e   :  { %v6684_v46 = vpop.permute.xlu1 %6683 }
 0x48f   :  { %v6686_v47 = vunpack.i.h.bf16 %v6684_v46  ;;  %v6685_v48 = vunpack.i.l.bf16 %v6684_v46 }
 0x491   :  { %v6832_v50 = vpop.eup %6831  ;;  %v6405_v51 = vpack.c.bf16 %v6686_v47, %v6685_v48 }
 0x492   :  { %v497_v52 = vmul.f32 %v6832_v50, %v6824_v14  ;;  %v677_v54 = vpop.permute.xlu1 %676 }
 0x493   :  { %6407 = vmatprep.subr.msk.bf16.mxu0 %vm7418_vm2, %v6405_v51 }
 0x494   :  { %6061 = vmatprep.mubr.msk.f32.mxu1 %vm455_vm3, %v497_v52  ;;  %6410 = vmatpush3.bf16.xpose.msk.msra.mxu0 %vm7418_vm2, %v6405_v51 }
 0x495   :  { %6062 = vmatmul.mubr.msk.f32.vlgmr.msra.gmra.mrb[4].mxu1 %vm455_vm3, %v499_v53 }
 0x496   :  { %6416 = vmatpush3.bf16.xpose.msk.msra.mxu1 %vm7418_vm2, %v6411_v41  ;;  %6075 = vmatprep.mubr.msk.f32.mxu1 %vm282_vm1, %v766_v45 }
 0x49b   :  { %6069 = vmatmul.mubr.msk.f32.vlgmr.msra.gmra.mrb[6].mxu0 %vm282_vm1, %v677_v54 }
 0x49d   :  { %6076 = vmatmul.mubr.msk.f32.vlgmr.msra.gmra.mrb[6].mxu1 %vm282_vm1, %v768_v40 }
 0x533   :  { %v7474_v55 = vpop.f32.mrb[2].mxu1 }
 0x534   :  { %v7476_v56 = vpop.f32.mrb[3].mxu1 }
 0x568   :  { %v7478_v57 = vpop.f32.mrb[4].mxu1 }
 0x569   :  { %v7480_v58 = vpop.f32.mrb[5].mxu1 }
 0x56e   :  { %v7482_v59 = vpop.f32.mrb[6].mxu0 }
 0x56f   :  { %v756_v60 = vpop.f32.mrb[7].mxu0  ;;  %v859_v23 = vsel %vm455_vm3, %v7482_v59, -inf }
 0x570   :  { %v6077_v61 = vpop.f32.mrb[6].mxu1  ;;  %v856_v1 = vsel %vm455_vm3, %v756_v60, -inf }
 0x571   :  { %v847_v62 = vpop.f32.mrb[7].mxu1  ;;  %v865_v63 = vsel %vm455_vm3, %v6077_v61, -inf }
 0x572   :  { %866 = vmax.xlane.f32.xlu1 %v865_v63  ;;  %v862_v0 = vsel %vm455_vm3, %v847_v62, -inf }
 0x573   :  { %863 = vmax.xlane.f32.xlu0 %v862_v0 }
 0x583   :  { %6688 = vrot.lane.b32.xlu1 %v7410_v38, %s7189_s20 }
 0x587   :  { %6698 = vrot.lane.b32.xlu1 %v7410_v38, %s7190_s21 }
 0x58b   :  { %1268 = vrot.lane.b32.xlu1 %v7394_v32, %s7191_s1 }
 0x58f   :  { %1359 = vrot.lane.b32.xlu1 %v7404_v37, %s7191_s1 }
 0x5b3   :  { %857 = vmax.xlane.f32.xlu1 %v856_v1 }
 0x5ff   :  { %v867_v2 = vpop.xlane.xlu1 %866 }
 0x600   :  { %v871_v3 = vsub.f32 %v6077_v61, %v867_v2  ;;  %v864_v4 = vpop.xlane.xlu0 %863 }
 0x601   :  { %v870_v5 = vsub.f32 %v847_v62, %v864_v4 }
 0x602   :  { %v878_v6 = vmul.f32 1.442695, %v871_v3 }
 0x603   :  { %v876_v7 = vmul.f32 1.442695, %v870_v5  ;;  %v6689_v8 = vpop.permute.xlu1 %6688 }
 0x604   :  { %6833 = vpow2.f32 %v878_v6  ;;  %v6691_v9 = vunpack.i.h.bf16 %v6689_v8  ;;  %v6690_v10 = vunpack.i.l.bf16 %v6689_v8 }
 0x605   :  { %6835 = vpow2.f32 %v876_v7 }
 0x606   :  { %v6421_v11 = vpack.c.bf16 %v6691_v9, %v6690_v10 }
 0x607   :  { %v6699_v16 = vpop.permute.xlu1 %6698 }
 0x608   :  { %6422 = vmatprep.subr.bf16.mxu1 %v6421_v11  ;;  %v6701_v44 = vunpack.i.h.bf16 %v6699_v16  ;;  %v6700_v45 = vunpack.i.l.bf16 %v6699_v16  ;;  %v273_v16 = vld [vmem:[#allocation8 + $0x8] sm:$0xff] }
 0x609   :  { %6424 = vmatpush3.bf16.msra.mxu1 %v6421_v11 }
 0x60a   :  { %v6431_v48 = vpack.c.bf16 %v6701_v44, %v6700_v45 }
 0x60b   :  { %v1269_v17 = vpop.permute.xlu1 %1268 }
 0x60e   :  { %v6834_v12 = vpop.eup %6833 }
 0x60f   :  { %v889_v13 = vsel %vm455_vm3, %v6834_v12, 0.0  ;;  %v6836_v14 = vpop.eup %6835  ;;  %v1360_v19 = vpop.permute.xlu1 %1359 }
 0x610   :  { %890 = vadd.xlane.f32.xlu0 %v889_v13  ;;  %v886_v15 = vsel %vm455_vm3, %v6836_v14, 0.0 }
 0x614   :  { %887 = vadd.xlane.f32.xlu0 %v886_v15 }
 0x62a   :  { %6693 = vrot.lane.b32.xlu0 %v7400_v34, %s7190_s21 }
 0x62e   :  { %1270 = vrot.lane.b32.xlu0 %v7392_v30, %s7191_s1 }
 0x632   :  { %1361 = vrot.lane.b32.xlu0 %v7402_v35, %s7191_s1 }
 0x640   :  { %v858_v20 = vpop.xlane.xlu1 %857 }
 0x641   :  { %v868_v21 = vsub.f32 %v756_v60, %v858_v20 }
 0x643   :  { %v872_v22 = vmul.f32 1.442695, %v868_v21 }
 0x645   :  { %6837 = vpow2.f32 %v872_v22 }
 0x64f   :  { %v6838_v25 = vpop.eup %6837 }
 0x650   :  { %v880_v28 = vsel %vm455_vm3, %v6838_v25, 0.0 }
 0x651   :  { %860 = vmax.xlane.f32.xlu0 %v859_v23 }
 0x655   :  { %881 = vadd.xlane.f32.xlu0 %v880_v28 }
 0x66b   :  { %6703 = vrot.lane.b32.xlu0 %v7400_v34, %s7189_s20 }
 0x69d   :  { %v891_v29 = vpop.xlane.xlu0 %890 }
 0x69e   :  { %6839 = vrcp.f32 %v891_v29 }
 0x6a1   :  { %v888_v31 = vpop.xlane.xlu0 %887 }
 0x6a2   :  { %6841 = vrcp.f32 %v888_v31 }
 0x6a5   :  { %v6694_v33 = vpop.permute.xlu0 %6693 }
 0x6a6   :  { %v6696_v36 = vunpack.i.h.bf16 %v6694_v33  ;;  %v6695_v39 = vunpack.i.l.bf16 %v6694_v33 }
 0x6a8   :  { %v6425_v40 = vpack.c.bf16 %v6696_v36, %v6695_v39  ;;  %v6840_v41 = vpop.eup %6839 }
 0x6a9   :  { %v899_v47 = vmul.f32 %v6840_v41, %v6834_v12  ;;  %v1271_v49 = vpop.permute.xlu0 %1270 }
 0x6aa   :  { %6427 = vmatprep.subr.msk.bf16.mxu1 %vm7418_vm2, %v6425_v40 }
 0x6ac   :  { %v6842_v43 = vpop.eup %6841 }
 0x6ad   :  { %v897_v46 = vmul.f32 %v6842_v43, %v6836_v14  ;;  %v1362_v50 = vpop.permute.xlu0 %1361 }
 0x6af   :  { %6089 = vmatprep.mubr.msk.f32.mxu1 %vm455_vm3, %v897_v46 }
 0x6b0   :  { %6090 = vmatmul.mubr.msk.f32.vlgmr.msra.gmra.mrb[8].mxu1 %vm455_vm3, %v899_v47 }
 0x6b1   :  { %6430 = vmatpush3.bf16.xpose.msk.msra.mxu1 %vm7418_vm2, %v6425_v40  ;;  %6112 = vmatprep.mubr.msk.f32.mxu1 %vm282_vm1, %v1269_v17  ;;  %v272_v17 = vld [vmem:[#allocation8] sm:$0xff] }
 0x6b2   :  { %6433 = vmatprep.subr.msk.bf16.mxu1 %vm7418_vm2, %v6431_v48 }
 0x6b8   :  { %6113 = vmatmul.mubr.msk.f32.vlgmr.msra.gmra.mrb[10].mxu1 %vm282_vm1, %v1271_v49 }
 0x6b9   :  { %6436 = vmatpush3.bf16.xpose.msk.msra.mxu1 %vm7418_vm2, %v6431_v48  ;;  %6119 = vmatprep.mubr.msk.f32.mxu1 %vm282_vm1, %v1360_v19 }
 0x6c0   :  { %6120 = vmatmul.mubr.msk.f32.vlgmr.msra.gmra.mrb[12].mxu1 %vm282_vm1, %v1362_v50 }
 0x6de   :  { %v861_v51 = vpop.xlane.xlu0 %860 }
 0x6df   :  { %v869_v52 = vsub.f32 %v7482_v59, %v861_v51 }
 0x6e1   :  { %v874_v53 = vmul.f32 1.442695, %v869_v52 }
 0x6e2   :  { %v882_v54 = vpop.xlane.xlu0 %881 }
 0x6e3   :  { %6843 = vpow2.f32 %v874_v53 }
 0x6e4   :  { %6845 = vrcp.f32 %v882_v54 }
 0x6e6   :  { %v6704_v60 = vpop.permute.xlu0 %6703 }
 0x6e7   :  { %v6706_v61 = vunpack.i.h.bf16 %v6704_v60  ;;  %v6705_v62 = vunpack.i.l.bf16 %v6704_v60 }
 0x6e9   :  { %v6417_v63 = vpack.c.bf16 %v6706_v61, %v6705_v62  ;;  %v274_v62 = vld [vmem:[#allocation8 + $0x10] sm:$0xff] }
 0x6eb   :  { %6418 = vmatprep.subr.bf16.mxu0 %v6417_v63 }
 0x6ec   :  { %6420 = vmatpush3.bf16.msra.mxu0 %v6417_v63 }
 0x6ed   :  { %v6844_v0 = vpop.eup %6843  ;;  %6092 = vmatprep.subr.mxu0 %v273_v16 }
 0x6ee   :  { %v6846_v1 = vpop.eup %6845  ;;  %v883_v2 = vsel %vm455_vm3, %v6844_v0, 0.0 }
 0x6ef   :  { %884 = vadd.xlane.f32.xlu1 %v883_v2  ;;  %v893_v3 = vmul.f32 %v6846_v1, %v6838_v25 }
 0x6f1   :  { %6082 = vmatprep.mubr.msk.f32.mxu0 %vm455_vm3, %v893_v3 }
 0x77c   :  { %v885_v4 = vpop.xlane.xlu1 %884 }
 0x77d   :  { %6847 = vrcp.f32 %v885_v4 }
 0x783   :  { %v7525_v59 = vpop.f32.mrb[8].mxu1 }
 0x784   :  { %v7527_v5 = vpop.f32.mrb[9].mxu1 }
 0x787   :  { %v6848_v6 = vpop.eup %6847 }
 0x788   :  { %v895_v7 = vmul.f32 %v6848_v6, %v6844_v0 }
 0x78a   :  { %6083 = vmatmul.mubr.msk.f32.vlgmr.msra.gmra.mrb[8].mxu0 %vm455_vm3, %v895_v7 }
 0x78b   :  { %v6114_v8 = vpop.f32.mrb[10].mxu1  ;;  %6093 = vmatpush3.msra.mxu0 %v273_v16 }
 0x78c   :  { %v1350_v9 = vpop.f32.mrb[11].mxu1  ;;  %v1453_v10 = vsel %vm455_vm3, %v6114_v8, -inf  ;;  %6100 = vmatprep.subr.mxu0 %v272_v17 }
 0x78d   :  { %1454 = vmax.xlane.f32.xlu1 %v1453_v10  ;;  %v1450_v11 = vsel %vm455_vm3, %v1350_v9, -inf }
 0x791   :  { %1451 = vmax.xlane.f32.xlu1 %v1450_v11 }
 0x793   :  { %v6121_v12 = vpop.f32.mrb[12].mxu1 }
 0x794   :  { %v1441_v13 = vpop.f32.mrb[13].mxu1  ;;  %v1459_v15 = vsel %vm455_vm3, %v6121_v12, -inf }
 0x795   :  { %v1456_v14 = vsel %vm455_vm3, %v1441_v13, -inf }
 0x796   :  { %1457 = vmax.xlane.f32.xlu1 %v1456_v14 }
 0x79a   :  { %1460 = vmax.xlane.f32.xlu1 %v1459_v15 }
 0x81a   :  { %v1455_v19 = vpop.xlane.xlu1 %1454 }
 0x81b   :  { %v1463_v20 = vsub.f32 %v6114_v8, %v1455_v19 }
 0x81d   :  { %v1468_v21 = vmul.f32 1.442695, %v1463_v20 }
 0x81e   :  { %v1452_v22 = vpop.xlane.xlu1 %1451 }
 0x81f   :  { %6849 = vpow2.f32 %v1468_v21  ;;  %v1462_v23 = vsub.f32 %v1350_v9, %v1452_v22 }
 0x821   :  { %v1466_v25 = vmul.f32 1.442695, %v1462_v23 }
 0x823   :  { %6851 = vpow2.f32 %v1466_v25  ;;  %v1458_v28 = vpop.xlane.xlu1 %1457 }
 0x824   :  { %v1464_v29 = vsub.f32 %v1441_v13, %v1458_v28 }
 0x826   :  { %v1470_v31 = vmul.f32 1.442695, %v1464_v29 }
 0x827   :  { %v1461_v33 = vpop.xlane.xlu1 %1460 }
 0x828   :  { %6853 = vpow2.f32 %v1470_v31  ;;  %v1465_v36 = vsub.f32 %v6121_v12, %v1461_v33 }
 0x829   :  { %v6850_v39 = vpop.eup %6849 }
 0x82a   :  { %v1472_v40 = vmul.f32 1.442695, %v1465_v36  ;;  %v1477_v41 = vsel %vm455_vm3, %v6850_v39, 0.0 }
 0x82b   :  { %1478 = vadd.xlane.f32.xlu1 %v1477_v41 }
 0x82c   :  { %6855 = vpow2.f32 %v1472_v40 }
 0x82d   :  { %v6852_v43 = vpop.eup %6851 }
 0x82e   :  { %v1474_v44 = vsel %vm455_vm3, %v6852_v43, 0.0 }
 0x82f   :  { %1475 = vadd.xlane.f32.xlu1 %v1474_v44 }
 0x832   :  { %v6854_v45 = vpop.eup %6853 }
 0x833   :  { %v1480_v46 = vsel %vm455_vm3, %v6854_v45, 0.0 }
 0x834   :  { %1481 = vadd.xlane.f32.xlu0 %v1480_v46 }
 0x836   :  { %v6856_v47 = vpop.eup %6855 }
 0x837   :  { %v1483_v48 = vsel %vm455_vm3, %v6856_v47, 0.0 }
 0x838   :  { %1484 = vadd.xlane.f32.xlu1 %v1483_v48 }
 0x849   :  { %6708 = vrot.lane.b32.xlu1 %v7400_v34, %s7192_s30 }
 0x84a   :  { %1769 = vrot.lane.b32.xlu0 %v7394_v32, %s7193_s22 }
 0x84d   :  { %6713 = vrot.lane.b32.xlu1 %v7410_v38, %s7192_s30 }
 0x851   :  { %6718 = vrot.lane.b32.xlu1 %v7400_v34, %s7194_s25 }
 0x855   :  { %6723 = vrot.lane.b32.xlu1 %v7410_v38, %s7194_s25 }
 0x859   :  { %1771 = vrot.lane.b32.xlu1 %v7392_v30, %s7193_s22 }
 0x85d   :  { %1860 = vrot.lane.b32.xlu1 %v7404_v37, %s7193_s22  ;;  %v6084_v49 = vpop.f32.mrb[8].mxu0 }
 0x85e   :  { %v978_v50 = vpop.f32.mrb[9].mxu0 }
 0x85f   :  { %6094 = vmatprep.mubr.msk.f32.mxu0 %vm282_vm1, %v978_v50 }
 0x860   :  { %6095 = vmatmul.mubr.msk.f32.vlgmr.msra.gmra.mrb[10].mxu0 %vm282_vm1, %v6084_v49 }
 0x861   :  { %1862 = vrot.lane.b32.xlu1 %v7402_v35, %s7193_s22  ;;  %6097 = vmatprep.mubr.msk.f32.mxu0 %vm282_vm1, %v7527_v5 }
 0x862   :  { %6101 = vmatpush3.msra.mxu0 %v272_v17 }
 0x864   :  { %6098 = vmatmul.mubr.msk.f32.gmra.mrb[12].mxu0 %vm282_vm1, %v7525_v59 }
 0x865   :  { %6102 = vmatprep.mubr.msk.f32.mxu0 %vm282_vm1, %v7476_v56 }
 0x868   :  { %6103 = vmatmul.mubr.msk.f32.vlgmr.msra.gmra.mrb[10].mxu0 %vm282_vm1, %v7474_v55 }
 0x869   :  { %6105 = vmatprep.mubr.msk.f32.mxu0 %vm282_vm1, %v7480_v58 }
 0x86c   :  { %6106 = vmatmul.mubr.msk.f32.gmra.mrb[12].mxu0 %vm282_vm1, %v7478_v57 }
 0x8b8   :  { %v1479_v30 = vpop.xlane.xlu1 %1478 }
 0x8bc   :  { %v1476_v32 = vpop.xlane.xlu1 %1475 }
 0x8bd   :  { %6857 = vrcp.f32 %v1476_v32 }
 0x8c1   :  { %v1482_v35 = vpop.xlane.xlu0 %1481 }
 0x8c2   :  { %6859 = vrcp.f32 %v1482_v35 }
 0x8c3   :  { %6861 = vrcp.f32 %v1479_v30 }
 0x8c5   :  { %v1485_v37 = vpop.xlane.xlu1 %1484  ;;  %v1770_v9 = vpop.permute.xlu0 %1769 }
 0x8c6   :  { %6863 = vrcp.f32 %v1485_v37 }
 0x8c7   :  { %v6858_v51 = vpop.eup %6857 }
 0x8c8   :  { %v1487_v52 = vmul.f32 %v6858_v51, %v6852_v43 }
 0x8c9   :  { %v6709_v56 = vpop.permute.xlu1 %6708 }
 0x8ca   :  { %v6711_v53 = vunpack.i.h.bf16 %v6709_v56  ;;  %v6710_v54 = vunpack.i.l.bf16 %v6709_v56  ;;  %6126 = vmatprep.mubr.msk.f32.mxu0 %vm455_vm3, %v1487_v52 }
 0x8cc   :  { %v6860_v55 = vpop.eup %6859  ;;  %v6437_v58 = vpack.c.bf16 %v6711_v53, %v6710_v54 }
 0x8cd   :  { %v6862_v60 = vpop.eup %6861  ;;  %v6714_v61 = vpop.permute.xlu1 %6713  ;;  %v1491_v57 = vmul.f32 %v6860_v55, %v6854_v45 }
 0x8ce   :  { %v6716_v63 = vunpack.i.h.bf16 %v6714_v61  ;;  %v6715_v0 = vunpack.i.l.bf16 %v6714_v61  ;;  %6438 = vmatprep.subr.bf16.mxu0 %v6437_v58  ;;  %v1489_v1 = vmul.f32 %v6862_v60, %v6850_v39 }
 0x8cf   :  { %6440 = vmatpush3.bf16.msra.mxu0 %v6437_v58  ;;  %6133 = vmatprep.mubr.msk.f32.mxu1 %vm455_vm3, %v1491_v57 }
 0x8d0   :  { %v6441_v2 = vpack.c.bf16 %v6716_v63, %v6715_v0  ;;  %6136 = vmatprep.subr.mxu0 %v274_v62  ;;  %v6864_v3 = vpop.eup %6863 }
 0x8d1   :  { %v6719_v4 = vpop.permute.xlu1 %6718  ;;  %v1493_v7 = vmul.f32 %v6864_v3, %v6856_v47 }
 0x8d2   :  { %v6721_v59 = vunpack.i.h.bf16 %v6719_v4  ;;  %v6720_v5 = vunpack.i.l.bf16 %v6719_v4  ;;  %6127 = vmatmul.mubr.msk.f32.vlgmr.msra.gmra.mrb[14].mxu0 %vm455_vm3, %v1489_v1  ;;  %6442 = vmatprep.subr.bf16.mxu1 %v6441_v2 }
 0x8d3   :  { %6444 = vmatpush3.bf16.msra.mxu1 %v6441_v2  ;;  %6137 = vmatpush3.msra.mxu0 %v274_v62 }
 0x8d4   :  { %v6445_v6 = vpack.c.bf16 %v6721_v59, %v6720_v5 }
 0x8d5   :  { %v6724_v8 = vpop.permute.xlu1 %6723 }
 0x8d6   :  { %v6726_v10 = vunpack.i.h.bf16 %v6724_v8  ;;  %v6725_v11 = vunpack.i.l.bf16 %v6724_v8  ;;  %6134 = vmatmul.mubr.msk.f32.vlgmr.msra.gmra.mrb[14].mxu1 %vm455_vm3, %v1493_v7  ;;  %6447 = vmatprep.subr.msk.bf16.mxu1 %vm7418_vm2, %v6445_v6 }
 0x8d7   :  { %6148 = vmatprep.mubr.msk.f32.mxu1 %vm282_vm1, %v1770_v9  ;;  %v275_v9 = vld [vmem:[#allocation8 + $0x18] sm:$0xff] }
 0x8d8   :  { %v6451_v12 = vpack.c.bf16 %v6726_v10, %v6725_v11 }
 0x8d9   :  { %v1772_v13 = vpop.permute.xlu1 %1771 }
 0x8da   :  { %6453 = vmatprep.subr.msk.bf16.mxu0 %vm7418_vm2, %v6451_v12 }
 0x8dc   :  { %6450 = vmatpush3.bf16.xpose.msk.msra.mxu1 %vm7418_vm2, %v6445_v6 }
 0x8dd   :  { %v1861_v16 = vpop.permute.xlu1 %1860 }
 0x8e1   :  { %v1863_v20 = vpop.permute.xlu1 %1862 }
 0x8e3   :  { %6149 = vmatmul.mubr.msk.f32.vlgmr.msra.gmra.mrb[16].mxu1 %vm282_vm1, %v1772_v13 }
 0x9a5   :  { %v6128_v14 = vpop.f32.mrb[14].mxu0 }
 0x9a6   :  { %v1572_v15 = vpop.f32.mrb[15].mxu0 }
 0x9a7   :  { %6138 = vmatprep.mubr.msk.f32.mxu0 %vm282_vm1, %v1572_v15 }
 0x9a8   :  { %6139 = vmatmul.mubr.msk.f32.vlgmr.msra.gmra.mrb[10].mxu0 %vm282_vm1, %v6128_v14  ;;  %v159_v14 = vlaneseq }
 0x9a9   :  { %6456 = vmatpush3.bf16.xpose.msk.msra.mxu0 %vm7418_vm2, %v6451_v12  ;;  %v6135_v17 = vpop.f32.mrb[14].mxu1 }
 0x9aa   :  { %v1659_v19 = vpop.f32.mrb[15].mxu1  ;;  %v7609_v15 = vshrl.u32 %v159_v14, 7 }
 0x9ab   :  { %6141 = vmatprep.mubr.msk.f32.mxu0 %vm282_vm1, %v1659_v19 }
 0x9ac   :  { %6142 = vmatmul.mubr.msk.f32.gmra.mrb[12].mxu0 %vm282_vm1, %v6135_v17  ;;  %v7615_v17 = vld [vmem:[%s8410_s7] sm:$0xff] }
 0x9ad   :  { %6155 = vmatprep.mubr.msk.f32.mxu0 %vm282_vm1, %v1861_v16  ;;  %v2276_v16 = vsub.s32 0, %v7609_v15 }
 0x9af   :  { %v2277_v19 = vrot.slane %v7615_v17, %v2276_v16 }
 0x9b0   :  { %6156 = vmatmul.mubr.msk.f32.vlgmr.msra.gmra.mrb[16].mxu0 %vm282_vm1, %v1863_v20 }
 0x9b6   :  { %v6150_v21 = vpop.f32.mrb[16].mxu1 }
 0x9b7   :  { %v1851_v22 = vpop.f32.mrb[17].mxu1  ;;  %v1954_v23 = vsel %vm455_vm3, %v6150_v21, -inf }
 0x9b8   :  { %1955 = vmax.xlane.f32.xlu0 %v1954_v23  ;;  %v1951_v25 = vsel %vm455_vm3, %v1851_v22, -inf }
 0x9b9   :  { %1952 = vmax.xlane.f32.xlu1 %v1951_v25 }
 0xa45   :  { %v1956_v28 = vpop.xlane.xlu0 %1955 }
 0xa46   :  { %v1953_v29 = vpop.xlane.xlu1 %1952  ;;  %v1964_v31 = vsub.f32 %v6150_v21, %v1956_v28 }
 0xa47   :  { %v1963_v33 = vsub.f32 %v1851_v22, %v1953_v29 }
 0xa48   :  { %v1969_v36 = vmul.f32 1.442695, %v1964_v31 }
 0xa49   :  { %v1967_v39 = vmul.f32 1.442695, %v1963_v33 }
 0xa4a   :  { %6865 = vpow2.f32 %v1969_v36 }
 0xa4b   :  { %6867 = vpow2.f32 %v1967_v39 }
 0xa54   :  { %v6866_v44 = vpop.eup %6865 }
 0xa55   :  { %v6868_v46 = vpop.eup %6867  ;;  %v1978_v47 = vsel %vm455_vm3, %v6866_v44, 0.0 }
 0xa56   :  { %v1975_v48 = vsel %vm455_vm3, %v6868_v46, 0.0 }
 0xa83   :  { %v6157_v40 = vpop.f32.mrb[16].mxu0 }
 0xa84   :  { %v1942_v41 = vpop.f32.mrb[17].mxu0  ;;  %v1960_v43 = vsel %vm455_vm3, %v6157_v40, -inf }
 0xa85   :  { %1961 = vmax.xlane.f32.xlu1 %v1960_v43  ;;  %v1957_v45 = vsel %vm455_vm3, %v1942_v41, -inf }
 0xa86   :  { %1958 = vmax.xlane.f32.xlu0 %v1957_v45 }
 0xa89   :  { %1979 = vadd.xlane.f32.xlu1 %v1978_v47 }
 0xa8a   :  { %1976 = vadd.xlane.f32.xlu0 %v1975_v48 }
 0xb12   :  { %v1962_v49 = vpop.xlane.xlu1 %1961 }
 0xb13   :  { %v1966_v50 = vsub.f32 %v6157_v40, %v1962_v49  ;;  %v1959_v30 = vpop.xlane.xlu0 %1958 }
 0xb14   :  { %v1965_v32 = vsub.f32 %v1942_v41, %v1959_v30 }
 0xb15   :  { %v1973_v35 = vmul.f32 1.442695, %v1966_v50 }
 0xb16   :  { %v1971_v37 = vmul.f32 1.442695, %v1965_v32  ;;  %v1980_v60 = vpop.xlane.xlu1 %1979 }
 0xb17   :  { %6869 = vpow2.f32 %v1973_v35  ;;  %v1977_v51 = vpop.xlane.xlu0 %1976 }
 0xb18   :  { %6871 = vpow2.f32 %v1971_v37 }
 0xb19   :  { %6873 = vrcp.f32 %v1977_v51 }
 0xb1a   :  { %6875 = vrcp.f32 %v1980_v60  ;;  %v2351_v60 = vld [vmem:[#allocation10] sm:$0xff] }
 0xb21   :  { %v6870_v52 = vpop.eup %6869 }
 0xb22   :  { %v6872_v56 = vpop.eup %6871  ;;  %v1984_v53 = vsel %vm455_vm3, %v6870_v52, 0.0 }
 0xb23   :  { %1985 = vadd.xlane.f32.xlu1 %v1984_v53  ;;  %v1981_v54 = vsel %vm455_vm3, %v6872_v56, 0.0  ;;  %v6874_v55 = vpop.eup %6873 }
 0xb24   :  { %1982 = vadd.xlane.f32.xlu0 %v1981_v54  ;;  %v1988_v58 = vmul.f32 %v6874_v55, %v6868_v46  ;;  %v6876_v5 = vpop.eup %6875 }
 0xb25   :  { %v1990_v6 = vmul.f32 %v6876_v5, %v6866_v44 }
 0xb26   :  { %6162 = vmatprep.mubr.msk.f32.mxu1 %vm455_vm3, %v1988_v58 }
 0xb34   :  { %6733 = vrot.lane.b32.xlu1 %v7410_v38, %s7195_s6 }
 0xb3a   :  { %6728 = vrot.lane.b32.xlu0 %v7400_v34, %s7195_s6 }
 0xbb0   :  { %v1986_v61 = vpop.xlane.xlu1 %1985 }
 0xbb1   :  { %6877 = vrcp.f32 %v1986_v61  ;;  %v1983_v57 = vpop.xlane.xlu0 %1982  ;;  %v2352_v61 = vld [vmem:[#allocation10 + $0x8] sm:$0xff] }
 0xbb2   :  { %6879 = vrcp.f32 %v1983_v57  ;;  %v6465_v57 = vpack.c.bf16 %v2352_v61, %v2351_v60 }
 0xbb4   :  { %v6734_v62 = vpop.permute.xlu1 %6733 }
 0xbb5   :  { %v6736_v63 = vunpack.i.h.bf16 %v6734_v62  ;;  %v6735_v0 = vunpack.i.l.bf16 %v6734_v62  ;;  %v6729_v1 = vpop.permute.xlu0 %6728  ;;  %v2353_v62 = vld [vmem:[#allocation10 + $0x10] sm:$0xff] }
 0xbb6   :  { %v6731_v2 = vunpack.i.h.bf16 %v6729_v1  ;;  %v6730_v3 = vunpack.i.l.bf16 %v6729_v1 }
 0xbb7   :  { %v6461_v4 = vpack.c.bf16 %v6736_v63, %v6735_v0  ;;  %v2354_v63 = vld [vmem:[#allocation10 + $0x18] sm:$0xff] }
 0xbb8   :  { %v6457_v59 = vpack.c.bf16 %v6731_v2, %v6730_v3  ;;  %v6469_v0 = vpack.c.bf16 %v2354_v63, %v2353_v62 }
 0xbb9   :  { %6462 = vmatprep.subr.bf16.mxu0 %v6461_v4 }
 0xbba   :  { %6458 = vmatprep.subr.bf16.mxu1 %v6457_v59  ;;  %6464 = vmatpush3.bf16.msra.mxu0 %v6461_v4 }
 0xbbb   :  { %v6878_v38 = vpop.eup %6877  ;;  %6460 = vmatpush3.bf16.msra.mxu1 %v6457_v59  ;;  %6172 = vmatprep.subr.mxu0 %v275_v9 }
 0xbbc   :  { %v6880_v34 = vpop.eup %6879  ;;  %v1994_v8 = vmul.f32 %v6878_v38, %v6870_v52  ;;  %6466 = vmatprep.subr.bf16.mxu1 %v6465_v57 }
 0xbbd   :  { %v1992_v7 = vmul.f32 %v6880_v34, %v6872_v56 }
 0xbbe   :  { %6163 = vmatmul.mubr.msk.f32.vlgmr.msra.gmra.mrb[18].mxu1 %vm455_vm3, %v1990_v6 }
 0xbbf   :  { %6169 = vmatprep.mubr.msk.f32.mxu0 %vm455_vm3, %v1992_v7  ;;  %6468 = vmatpush3.bf16.msra.mxu1 %v6465_v57 }
 0xbc0   :  { %6170 = vmatmul.mubr.msk.f32.vlgmr.msra.gmra.mrb[18].mxu0 %vm455_vm3, %v1994_v8  ;;  %6470 = vmatprep.subr.bf16.mxu1 %v6469_v0 }
 0xbc1   :  { %6173 = vmatpush3.msra.mxu0 %v275_v9 }
 0xbc3   :  { %6472 = vmatpush3.bf16.msra.mxu1 %v6469_v0 }
 0xc91   :  { %v6164_v10 = vpop.f32.mrb[18].mxu1 }
 0xc92   :  { %v2073_v11 = vpop.f32.mrb[19].mxu1 }
 0xc93   :  { %v6171_v12 = vpop.f32.mrb[18].mxu0  ;;  %6174 = vmatprep.mubr.msk.f32.mxu0 %vm282_vm1, %v2073_v11  ;;  %v2345_v11 = vsub.s32 2, %v7609_v15 }
 0xc94   :  { %v2160_v13 = vpop.f32.mrb[19].mxu0  ;;  %6175 = vmatmul.mubr.msk.f32.vlgmr.msra.gmra.mrb[10].mxu0 %vm282_vm1, %v6164_v10  ;;  %v2337_v10 = vsub.s32 1, %v7609_v15 }
 0xc95   :  { %6177 = vmatprep.mubr.msk.f32.mxu0 %vm282_vm1, %v2160_v13 }
 0xc98   :  { %6178 = vmatmul.mubr.msk.f32.gmra.mrb[12].mxu0 %vm282_vm1, %v6171_v12  ;;  %v2338_v12 = vrot.slane %v7615_v17, %v2337_v10 }
 0xd67   :  { %v6176_v20 = vpop.f32.mrb[10].mxu0 }
 0xd68   :  { %v2271_v21 = vadd.f32 %v6176_v20, %v7382_v26  ;;  %v2247_v22 = vpop.f32.mrb[11].mxu0 }
 0xd69   :  { %v2270_v23 = vadd.f32 %v2247_v22, %v7370_v18  ;;  %v2346_v22 = vrot.slane %v7615_v17, %v2345_v11 }
 0xd6a   :  { %v2279_v25 = vadd.f32 %v2277_v19, %v2271_v21 }
 0xd6b   :  { %v6179_v28 = vpop.f32.mrb[12].mxu0  ;;  %v2278_v29 = vadd.f32 %v2277_v19, %v2270_v23 }
 0xd6c   :  { %v2273_v31 = vadd.f32 %v6179_v28, %v7384_v27  ;;  %v2257_v33 = vpop.f32.mrb[13].mxu0  ;;  %v2285_v36 = vsel %vm174_vm0, %v2279_v25, 0.0 }
 0xd6d   :  { %v2272_v39 = vadd.f32 %v2257_v33, %v7377_v24  ;;  %2286 = vadd.xlane.f32.xlu0 %v2285_v36  ;;  %v2282_v40 = vsel %vm174_vm0, %v2278_v29, 0.0 }
 0xd6e   :  { %2283 = vadd.xlane.f32.xlu1 %v2282_v40  ;;  %v2281_v41 = vadd.f32 %v2277_v19, %v2273_v31 }
 0xd6f   :  { %v2280_v43 = vadd.f32 %v2277_v19, %v2272_v39 }
 0xd70   :  { %v2291_v26 = vsel %vm174_vm0, %v2281_v41, 0.0 }
 0xd71   :  { %v2288_v18 = vsel %vm174_vm0, %v2280_v43, 0.0 }
 0xd72   :  { %2292 = vadd.xlane.f32.xlu1 %v2291_v26  ;;  %2289 = vadd.xlane.f32.xlu0 %v2288_v18  ;;  %v2357_v18 = vsub.s32 3, %v7609_v15 }
 0xdfa   :  { %v2287_v44 = vpop.xlane.xlu0 %2286 }
 0xdfb   :  { %v2296_v45 = vmul.f32 0.03125, %v2287_v44  ;;  %v2284_v27 = vpop.xlane.xlu1 %2283  ;;  %v2358_v44 = vrot.slane %v7615_v17, %v2357_v18 }
 0xdfc   :  { %v2295_v46 = vmul.f32 0.03125, %v2284_v27 }
 0xdfd   :  { %v2300_v47 = vsub.f32 %v2279_v25, %v2296_v45 }
 0xdfe   :  { %v2299_v48 = vsub.f32 %v2278_v29, %v2295_v46 }
 0xdff   :  { %v2293_v49 = vpop.xlane.xlu1 %2292  ;;  %v2290_v24 = vpop.xlane.xlu0 %2289  ;;  %v2304_v50 = vmul.f32 %v2300_v47, %v2300_v47 }
 0xe00   :  { %v2298_v30 = vmul.f32 0.03125, %v2293_v49  ;;  %v2297_v32 = vmul.f32 0.03125, %v2290_v24  ;;  %v2303_v35 = vmul.f32 %v2299_v48, %v2299_v48 }
 0xe01   :  { %v2310_v37 = vsel %vm174_vm0, %v2304_v50, 0.0 }
 0xe02   :  { %v2302_v51 = vsub.f32 %v2281_v41, %v2298_v30  ;;  %v2301_v52 = vsub.f32 %v2280_v43, %v2297_v32  ;;  %2311 = vadd.xlane.f32.xlu1 %v2310_v37  ;;  %v2307_v56 = vsel %vm174_vm0, %v2303_v35, 0.0 }
 0xe03   :  { %2308 = vadd.xlane.f32.xlu0 %v2307_v56 }
 0xe04   :  { %v2306_v53 = vmul.f32 %v2302_v51, %v2302_v51  ;;  %v2305_v54 = vmul.f32 %v2301_v52, %v2301_v52 }
 0xe06   :  { %v2316_v55 = vsel %vm174_vm0, %v2306_v53, 0.0  ;;  %v2313_v58 = vsel %vm174_vm0, %v2305_v54, 0.0 }
 0xe07   :  { %2317 = vadd.xlane.f32.xlu1 %v2316_v55  ;;  %2314 = vadd.xlane.f32.xlu0 %v2313_v58 }
 0xe8f   :  { %v2312_v1 = vpop.xlane.xlu1 %2311 }
 0xe90   :  { %v2320_v2 = vmul.f32 0.03125, %v2312_v1  ;;  %v2309_v3 = vpop.xlane.xlu0 %2308 }
 0xe91   :  { %v2319_v4 = vmul.f32 0.03125, %v2309_v3 }
 0xe92   :  { %v2324_v59 = vadd.f32 1e-05, %v2320_v2 }
 0xe93   :  { %v2323_v5 = vadd.f32 1e-05, %v2319_v4 }
 0xe94   :  { %6881 = vrsqrt.f32 %v2324_v59  ;;  %v2318_v38 = vpop.xlane.xlu1 %2317  ;;  %v2315_v34 = vpop.xlane.xlu0 %2314 }
 0xe95   :  { %6883 = vrsqrt.f32 %v2323_v5  ;;  %v2322_v6 = vmul.f32 0.03125, %v2318_v38  ;;  %v2321_v7 = vmul.f32 0.03125, %v2315_v34  ;;  %v2898_v38 = vsub.s32 4, %v7609_v15 }
 0xe97   :  { %v2326_v8 = vadd.f32 1e-05, %v2322_v6  ;;  %v2325_v9 = vadd.f32 1e-05, %v2321_v7  ;;  %v7196_v6 = vmov 683565275  }
 0xe99   :  { %6885 = vrsqrt.f32 %v2326_v8  ;;  %v7197_v8 = vmov 2475754826  }
 0xe9a   :  { %6887 = vrsqrt.f32 %v2325_v9 }
 0xe9e   :  { %v6882_v13 = vpop.eup %6881 }
 0xe9f   :  { %v6884_v19 = vpop.eup %6883  ;;  %v2332_v20 = vmul.f32 %v6882_v13, %v2300_v47 }
 0xea0   :  { %v2331_v21 = vmul.f32 %v6884_v19, %v2299_v48 }
 0xea1   :  { %v2340_v23 = vmul.f32 %v2338_v12, %v2332_v20  ;;  %v7198_v20 = vmov 2131351028  }
 0xea2   :  { %v2339_v25 = vmul.f32 %v2338_v12, %v2331_v21 }
 0xea3   :  { %v6886_v28 = vpop.eup %6885  ;;  %v7642_v36 = vadd.f32 %v2346_v22, %v2340_v23 }
 0xea4   :  { %v6888_v29 = vpop.eup %6887  ;;  %v7640_v31 = vadd.f32 %v2346_v22, %v2339_v25  ;;  %v2334_v33 = vmul.f32 %v6886_v28, %v2302_v51 }
 0xea5   :  { %v2333_v39 = vmul.f32 %v6888_v29, %v2301_v52  ;;  %v7199_v29 = vmov 2102212464  }
 0xea6   :  { %6188 = vmatprep.mubr.msk.f32.mxu1 %vm174_vm0, %v7640_v31  ;;  %v2342_v40 = vmul.f32 %v2338_v12, %v2334_v33 }
 0xea7   :  { %6189 = vmatmul.mubr.msk.f32.vlgmr.msra.gmra.mrb[20].mxu1 %vm174_vm0, %v7642_v36  ;;  %v2341_v41 = vmul.f32 %v2338_v12, %v2333_v39 }
 0xea8   :  { %v7648_v43 = vadd.f32 %v2346_v22, %v2342_v40 }
 0xea9   :  { %v7650_v26 = vadd.f32 %v2346_v22, %v2341_v41  ;;  %v7200_v41 = vmov 920167782  }
 0xeab   :  { %6191 = vmatprep.mubr.msk.f32.mxu1 %vm174_vm0, %v7650_v26 }
 0xeac   :  { %6192 = vmatmul.mubr.msk.f32.gmra.mrb[22].mxu1 %vm174_vm0, %v7648_v43 }
 0xf7a   :  { %v6190_v45 = vpop.f32.mrb[20].mxu1 }
 0xf7b   :  { %v7660_v27 = vadd.f32 %v6190_v45, %v2358_v44  ;;  %v2437_v46 = vpop.f32.mrb[21].mxu1 }
 0xf7c   :  { %v7662_v47 = vadd.f32 %v2437_v46, %v2358_v44 }
 0xf7d   :  { %v2563_v48 = vand.u32 2139095040, %v7660_v27  ;;  %v2560_v30 = vand.u32 2147483647, %v7660_v27 }
 0xf7e   :  { %v2459_v49 = vand.u32 2139095040, %v7662_v47  ;;  %v2456_v51 = vand.u32 2147483647, %v7662_v47 }
 0xf7f   :  { %v2564_v24 = vshrl.u32 %v2563_v48, 23  ;;  %v6193_v50 = vpop.f32.mrb[22].mxu1  ;;  %v2567_v58 = vand.u32 8388607, %v2560_v30 }
 0xf80   :  { %v2460_v32 = vshrl.u32 %v2459_v49, 23  ;;  %v7667_v35 = vadd.f32 %v6193_v50, %v2358_v44  ;;  %v2447_v37 = vpop.f32.mrb[23].mxu1  ;;  %v2463_v57 = vand.u32 8388607, %v2456_v51  ;;  %v7201_v49 = vmov 1326507024  }
 0xf81   :  { %v5721_v52 = vadd.s32 4294967169, %v2564_v24  ;;  %v7671_v55 = vadd.f32 %v2447_v37, %v2358_v44  ;;  %v2568_v2 = vor.u32 8388608, %v2567_v58 }
 0xf82   :  { %v5717_v56 = vadd.s32 4294967169, %v2460_v32  ;;  %v2771_v53 = vand.u32 2139095040, %v7667_v35  ;;  %v2464_v3 = vor.u32 8388608, %v2463_v57 }
 0xf83   :  { %v2570_v54 = vadd.s32 1, %v5721_v52  ;;  %v2667_v1 = vand.u32 2139095040, %v7671_v55  ;;  %v7681_v12 = vshll.u32 %v2568_v2, 8 }
 0xf84   :  { %v2466_v60 = vadd.s32 1, %v5717_v56  ;;  %v2772_v61 = vshrl.u32 %v2771_v53, 23  ;;  %v7685_v22 = vshll.u32 %v2464_v3, 8 }
 0xf85   :  { %vm2571_vm4 = vcmp.gt.s32.totalorder %v2570_v54, 0  ;;  %v2668_v34 = vshrl.u32 %v2667_v1, 23 }
 0xf86   :  { %v2572_v62 = vsel %vm2571_vm4, %v2570_v54, 0  ;;  %v5729_v63 = vadd.s32 4294967169, %v2772_v61  ;;  %vm2467_vm5 = vcmp.gt.s32.totalorder %v2466_v60, 0 }
 0xf87   :  { %v2574_v0 = vand.u32 31, %v2572_v62  ;;  %v2468_v59 = vsel %vm2467_vm5, %v2466_v60, 0  ;;  %v2573_v13 = vshrl.u32 %v2572_v62, 5 }
 0xf88   :  { %v2778_v5 = vadd.s32 1, %v5729_v63  ;;  %v2470_v23 = vand.u32 31, %v2468_v59  ;;  %v2469_v61 = vshrl.u32 %v2468_v59, 5 }
 0xf89   :  { %v2575_v4 = vsub.s32 32, %v2574_v0  ;;  %v2577_v7 = vshll.u32 %v7196_v6, %v2574_v0  ;;  %v2580_v19 = vshll.u32 %v7197_v8, %v2574_v0  ;;  %v2583_v28 = vshll.u32 %v7198_v20, %v2574_v0 }
 0xf8a   :  { %vm2779_vm6 = vcmp.gt.s32.totalorder %v2778_v5, 0  ;;  %v2586_v40 = vshll.u32 %v7199_v29, %v2574_v0  ;;  %v2589_v48 = vshll.u32 %v7200_v41, %v2574_v0  ;;  %vm2592_vm7 = vcmp.lt.s32.totalorder %v2573_v13, 1 }
 0xf8b   :  { %v2578_v9 = vshrl.u32 %v7197_v8, %v2575_v4  ;;  %v2581_v21 = vshrl.u32 %v7198_v20, %v2575_v4  ;;  %v2584_v33 = vshrl.u32 %v7199_v29, %v2575_v4  ;;  %v2587_v44 = vshrl.u32 %v7200_v41, %v2575_v4 }
 0xf8c   :  { %v2576_v45 = vshrl.u32 %v7196_v6, %v2575_v4  ;;  %v2590_v24 = vshrl.u32 %v7201_v49, %v2575_v4  ;;  %vm2594_vm8 = vcmp.lt.s32.totalorder %v2573_v13, 3  ;;  %vm2595_vm9 = vcmp.lt.s32.totalorder %v2573_v13, 4 }
 0xf8d   :  { %v2579_v25 = vor.u32 %v2578_v9, %v2577_v7  ;;  %v2582_v39 = vor.u32 %v2581_v21, %v2580_v19  ;;  %v2585_v46 = vor.u32 %v2584_v33, %v2583_v28  ;;  %v2588_v50 = vor.u32 %v2587_v44, %v2586_v40 }
 0xf8e   :  { %v2591_v32 = vor.u32 %v2590_v24, %v2589_v48  ;;  %v2471_v53 = vsub.s32 32, %v2470_v23  ;;  %vm2593_vm10 = vcmp.lt.s32.totalorder %v2573_v13, 2  ;;  %v2780_v63 = vsel %vm2779_vm6, %v2778_v5, 0 }
 0xf8f   :  { %v2596_v37 = vsel %vm2592_vm7, %v2576_v45, %v2579_v25  ;;  %v2597_v52 = vsel %vm2595_vm9, %v2585_v46, 2102212464  ;;  %v2600_v56 = vsel %vm2592_vm7, %v2579_v25, %v2582_v39  ;;  %v2601_v58 = vsel %vm2595_vm9, %v2588_v50, 920167782 }
 0xf90   :  { %v2598_v54 = vsel %vm2594_vm8, %v2582_v39, %v2597_v52  ;;  %v2604_v60 = vsel %vm2592_vm7, %v2582_v39, %v2585_v46  ;;  %v2602_v57 = vsel %vm2594_vm8, %v2585_v46, %v2601_v58  ;;  %v2605_v62 = vsel %vm2595_vm9, %v2591_v32, 1326507024 }
 0xf91   :  { %v2599_v0 = vsel %vm2593_vm10, %v2596_v37, %v2598_v54  ;;  %v2603_v1 = vsel %vm2593_vm10, %v2600_v56, %v2602_v57  ;;  %v2606_v2 = vsel %vm2594_vm8, %v2588_v50, %v2605_v62  ;;  %v2473_v9 = vshll.u32 %v7196_v6, %v2470_v23 }
 0xf92   :  { %v2607_v3 = vsel %vm2593_vm10, %v2604_v60, %v2606_v2  ;;  %v7699_v4 = vmul.u32.u64.low %v7681_v12, %v2603_v1  ;;  %v7700_v7 = vmul.u32.u64.high %v7681_v12, %v2603_v1, %v7699_v4  ;;  %v2474_v21 = vshrl.u32 %v7197_v8, %v2471_v53 }
 0xf93   :  { %v7705_v59 = vmul.u32.u64.low %v7681_v12, %v2607_v3  ;;  %v7706_v19 = vmul.u32.u64.high %v7681_v12, %v2607_v3, %v7705_v59  ;;  %v2476_v5 = vshll.u32 %v7197_v8, %v2470_v23  ;;  %v2477_v25 = vshrl.u32 %v7198_v20, %v2471_v53 }
 0xf94   :  { %v2479_v13 = vshll.u32 %v7198_v20, %v2470_v23  ;;  %v2480_v28 = vshrl.u32 %v7199_v29, %v2471_v53  ;;  %v2482_v33 = vshll.u32 %v7199_v29, %v2470_v23  ;;  %v2475_v39 = vor.u32 %v2474_v21, %v2473_v9 }
 0xf95   :  { %v2483_v40 = vshrl.u32 %v7200_v41, %v2471_v53  ;;  %v2485_v44 = vshll.u32 %v7200_v41, %v2470_v23  ;;  %v2486_v45 = vshrl.u32 %v7201_v49, %v2471_v53  ;;  %v5725_v46 = vadd.s32 4294967169, %v2668_v34 }
 0xf96   :  { %v2618_v48 = vadd.s32 1, %v7700_v7  ;;  %v2478_v24 = vor.u32 %v2477_v25, %v2476_v5  ;;  %v2481_v50 = vor.u32 %v2480_v28, %v2479_v13  ;;  %v2615_v32 = vmul.u32 %v7681_v12, %v2599_v0 }
 0xf97   :  { %vm2617_vm11 = vc.u32 %v7706_v19, %v7699_v4  ;;  %v2484_v37 = vor.u32 %v2483_v40, %v2482_v33  ;;  %v2487_v52 = vor.u32 %v2486_v45, %v2485_v44  ;;  %v2782_v56 = vand.u32 31, %v2780_v63 }
 0xf98   :  { %v2619_v54 = vsel %vm2617_vm11, %v2618_v48, %v7700_v7  ;;  %vm2488_vm12 = vcmp.lt.s32.totalorder %v2469_v61, 1  ;;  %vm2491_vm13 = vcmp.lt.s32.totalorder %v2469_v61, 4  ;;  %v2472_v58 = vshrl.u32 %v7196_v6, %v2471_v53 }
 0xf99   :  { %v2620_v23 = vadd.s32 %v2619_v54, %v2615_v32  ;;  %v2493_v34 = vsel %vm2491_vm13, %v2481_v50, 2102212464  ;;  %v2496_v60 = vsel %vm2488_vm12, %v2475_v39, %v2478_v24  ;;  %vm2490_vm14 = vcmp.lt.s32.totalorder %v2469_v61, 3 }
 0xf9a   :  { %v2497_v57 = vsel %vm2491_vm13, %v2484_v37, 920167782  ;;  %v2500_v62 = vsel %vm2488_vm12, %v2478_v24, %v2481_v50  ;;  %v2501_v1 = vsel %vm2491_vm13, %v2487_v52, 1326507024  ;;  %vm2489_vm15 = vcmp.lt.s32.totalorder %v2469_v61, 2 }
 0xf9b   :  { %v2621_v12 = vadd.s32 536870912, %v2620_v23  ;;  %v2498_v0 = vsel %vm2490_vm14, %v2481_v50, %v2497_v57  ;;  %v2502_v2 = vsel %vm2490_vm14, %v2484_v37, %v2501_v1  ;;  %v2492_v3 = vsel %vm2488_vm12, %v2472_v58, %v2475_v39 }
 0xf9c   :  { %v2494_v9 = vsel %vm2490_vm14, %v2478_v24, %v2493_v34  ;;  %v2499_v59 = vsel %vm2489_vm15, %v2496_v60, %v2498_v0  ;;  %v2503_v21 = vsel %vm2489_vm15, %v2500_v62, %v2502_v2  ;;  %v2674_v7 = vadd.s32 1, %v5725_v46 }
 0xf9d   :  { %v7723_v5 = vshrl.u32 %v2621_v12, 30  ;;  %v7726_v25 = vmul.u32.u64.low %v7685_v22, %v2503_v21  ;;  %v7727_v53 = vmul.u32.u64.high %v7685_v22, %v2503_v21, %v7726_v25  ;;  %v2783_v13 = vsub.s32 32, %v2782_v56 }
 0xf9e   :  { %v7730_v28 = vmul.u32.u64.low %v7685_v22, %v2499_v59  ;;  %v7731_v33 = vmul.u32.u64.high %v7685_v22, %v2499_v59, %v7730_v28  ;;  %v2495_v40 = vsel %vm2489_vm15, %v2492_v3, %v2494_v9  ;;  %v7736_v39 = vand.u32 127, %v159_v14 }
 0xf9f   :  { %v2623_v61 = vshll.u32 %v7723_v5, 30  ;;  %v2877_v44 = vmul.f32 0.70710677, %v7660_v27  ;;  %v7742_v45 = vrot.slane %v7615_v17, %v2898_v38  ;;  %v2768_v46 = vand.u32 2147483647, %v7667_v35 }
 0xfa0   :  { %v7745_v48 = vshrl.u32 %v2780_v63, 5  ;;  %vm2675_vm4 = vcmp.gt.s32.totalorder %v2674_v7, 0  ;;  %vm2513_vm5 = vc.u32 %v7727_v53, %v7730_v28  ;;  %v2511_v14 = vmul.u32 %v7685_v22, %v2495_v40 }
 0xfa1   :  { %v7747_v24 = vsub.s32 %v2620_v23, %v2623_v61  ;;  %v2514_v50 = vadd.s32 1, %v7731_v33  ;;  %v2786_v32 = vshrl.u32 %v7197_v8, %v2783_v13  ;;  %v2789_v37 = vshrl.u32 %v7198_v20, %v2783_v13 }
 0xfa2   :  { %v2788_v52 = vshll.u32 %v7197_v8, %v2782_v56  ;;  %v2791_v63 = vshll.u32 %v7198_v20, %v2782_v56  ;;  %v2792_v54 = vshrl.u32 %v7199_v29, %v2783_v13  ;;  %v2794_v58 = vshll.u32 %v7199_v29, %v2782_v56 }
 0xfa3   :  { %v2626_v17 = vsub.s32 0, %v7747_v24  ;;  %v2515_v23 = vsel %vm2513_vm5, %v2514_v50, %v7731_v33  ;;  %v2795_v22 = vshrl.u32 %v7200_v41, %v2783_v13  ;;  %v2798_v34 = vshrl.u32 %v7201_v49, %v2783_v13 }
 0xfa4   :  { %v2516_v57 = vadd.s32 %v2515_v23, %v2511_v14  ;;  %v2785_v62 = vshll.u32 %v7196_v6, %v2782_v56  ;;  %v2797_v1 = vshll.u32 %v7200_v41, %v2782_v56  ;;  %v2775_v12 = vand.u32 8388607, %v2768_v46 }
 0xfa5   :  { %v5722_v60 = vmin.u32 %v2626_v17, %v7747_v24  ;;  %v2790_v0 = vor.u32 %v2789_v37, %v2788_v52  ;;  %v2793_v2 = vor.u32 %v2792_v54, %v2791_v63  ;;  %v2796_v3 = vor.u32 %v2795_v22, %v2794_v58 }
 0xfa6   :  { %6889 = verf.f32 %v2877_v44  ;;  %v2787_v59 = vor.u32 %v2786_v32, %v2785_v62  ;;  %v2799_v21 = vor.u32 %v2798_v34, %v2797_v1  ;;  %v7769_v25 = vsel %vm2675_vm4, %v2674_v7, 0 }
 0xfa7   :  { %v2628_v9 = vclz %v5722_v60  ;;  %v2616_v33 = vadd.s32 %v7699_v4, %v7706_v19  ;;  %v2517_v61 = vadd.s32 536870912, %v2516_v57  ;;  %vm2803_vm6 = vcmp.lt.s32.totalorder %v7745_v48, 4 }
 0xfa8   :  { %v2784_v40 = vshrl.u32 %v7196_v6, %v2783_v13  ;;  %vm2800_vm7 = vcmp.lt.s32.totalorder %v7745_v48, 1  ;;  %v2809_v14 = vsel %vm2803_vm6, %v2796_v3, 920167782  ;;  %vm2562_vm8 = vcmp.lt.s32.totalorder %v7660_v27, 0 }
 0xfa9   :  { %v5723_v56 = vadd.s32 4294967294, %v2628_v9  ;;  %v2518_v44 = vshrl.u32 %v2517_v61, 30  ;;  %v2776_v50 = vor.u32 8388608, %v2775_v12  ;;  %vm2802_vm9 = vcmp.lt.s32.totalorder %v7745_v48, 3 }
 0xfaa   :  { %v2812_v4 = vsel %vm2800_vm7, %v2790_v0, %v2793_v2  ;;  %v2808_v19 = vsel %vm2800_vm7, %v2787_v59, %v2790_v0  ;;  %v2810_v7 = vsel %vm2802_vm9, %v2793_v2, %v2809_v14  ;;  %v2813_v13 = vsel %vm2803_vm6, %v2799_v21, 1326507024 }
 0xfab   :  { %vm5724_vm10 = vcmp.lt.s32.totalorder %v5723_v56, 0  ;;  %v2519_v37 = vshll.u32 %v2518_v44, 30  ;;  %vm2801_vm11 = vcmp.lt.s32.totalorder %v7745_v48, 2  ;;  %v2814_v17 = vsel %vm2802_vm9, %v2796_v3, %v2813_v13 }
 0xfac   :  { %v2631_v32 = vsel %vm5724_vm10, 0, %v5723_v56  ;;  %v2805_v54 = vsel %vm2803_vm6, %v2793_v2, 2102212464  ;;  %v2815_v23 = vsel %vm2801_vm11, %v2812_v4, %v2814_v17  ;;  %v2646_v58 = vsub.s32 4, %v7723_v5 }
 0xfad   :  { %v2632_v52 = vsub.s32 32, %v2631_v32  ;;  %v2636_v63 = vsub.s32 4294967266, %v2631_v32  ;;  %v7796_v22 = vsub.s32 %v2516_v57, %v2519_v37  ;;  %v2811_v34 = vsel %vm2801_vm11, %v2808_v19, %v2810_v7 }
 0xfae   :  { %v2816_v60 = vshll.u32 %v2776_v50, 8  ;;  %v2633_v62 = vshll.u32 %v7747_v24, %v2631_v32  ;;  %v2804_v3 = vsel %vm2800_vm7, %v2784_v40, %v2787_v59  ;;  %v2806_v9 = vsel %vm2802_vm9, %v2790_v0, %v2805_v54 }
 0xfaf   :  { %v2634_v1 = vshrl.u32 %v2616_v33, %v2632_v52  ;;  %v2637_v12 = vadd.s32 127, %v2636_v63  ;;  %v2522_v2 = vsub.s32 0, %v7796_v22  ;;  %vm7815_vm12 = vcmp.le.f32.partialorder %v2560_v30, 0.7853982 }
 0xfb0   :  { %v7806_v21 = vmul.u32.u64.low %v2816_v60, %v2815_v23  ;;  %v7807_v61 = vmul.u32.u64.high %v2816_v60, %v2815_v23, %v7806_v21  ;;  %v6890_v57 = vpop.eup %6889  ;;  %v7809_v4 = vmul.u32.u64.low %v2816_v60, %v2811_v34  ;;  %v7810_v50 = vmul.u32.u64.high %v2816_v60, %v2811_v34, %v7809_v4 }
 0xfb1   :  { %v2635_v56 = vor.u32 %v2634_v1, %v2633_v62  ;;  %v2638_v14 = vshll.u32 %v2637_v12, 23  ;;  %v2873_v59 = vmul.f32 0.5, %v7660_v27  ;;  %v5718_v0 = vmin.u32 %v2522_v2, %v7796_v22 }
 0xfb2   :  { %v2876_v33 = vmul.f32 0.70710677, %v7662_v47  ;;  %v2647_v19 = vsel %vm2562_vm8, %v2646_v58, %v7723_v5  ;;  %v2542_v7 = vsub.s32 4, %v2518_v44  ;;  %v2807_v13 = vsel %vm2801_vm11, %v2804_v3, %v2806_v9 }
 0xfb3   :  { %v2639_v40 = vor.u32 4788187, %v2638_v14  ;;  %v7828_v30 = vand.u32 31, %v7769_v25  ;;  %vm7832_vm13 = vcmp.le.f32.partialorder %v2456_v51, 0.7853982  ;;  %vm2458_vm14 = vcmp.lt.s32.totalorder %v7662_v47, 0 }
 0xfb4   :  { %v2524_v37 = vclz %v5718_v0  ;;  %v2642_v52 = vcvt.s32.f32 %v2635_v56  ;;  %vm2825_vm15 = vc.u32 %v7807_v61, %v7809_v4  ;;  %v2826_v5 = vadd.s32 1, %v7810_v50 }
 0xfb5   :  { %v2640_v17 = vand.u32 2147483647, %v2639_v40  ;;  %v2649_v48 = vsel %vm7815_vm12, 0, %v2647_v19  ;;  %6891 = verf.f32 %v2876_v33  ;;  %v2823_v54 = vmul.u32 %v2816_v60, %v2807_v13 }
 0xfb6   :  { %v5719_v63 = vadd.s32 4294967294, %v2524_v37  ;;  %v2885_v23 = vadd.f32 1.0, %v6890_v57  ;;  %v2543_v58 = vsel %vm2458_vm14, %v2542_v7, %v2518_v44  ;;  %v2827_v34 = vsel %vm2825_vm15, %v2826_v5, %v7810_v50 }
 0xfb7   :  { %v2643_v51 = vmul.f32 %v2642_v52, %v2640_v17  ;;  %v7846_v62 = vshrl.u32 %v7769_v25, 5  ;;  %v2679_v1 = vsub.s32 32, %v7828_v30  ;;  %v2828_v12 = vadd.s32 %v2827_v34, %v2823_v54 }
 0xfb8   :  { %vm5720_vm4 = vcmp.lt.s32.totalorder %v5719_v63, 0  ;;  %v2653_v2 = vadd.s32 3, %v2649_v48  ;;  %v2512_v9 = vadd.s32 %v7730_v28, %v7727_v53  ;;  %v2545_v44 = vsel %vm7832_vm13, 0, %v2543_v58 }
 0xfb9   :  { %v2644_v3 = vxor.u32 2147483648, %v2643_v51  ;;  %v2527_v60 = vsel %vm5720_vm4, 0, %v5719_v63  ;;  %v2829_v56 = vadd.s32 536870912, %v2828_v12  ;;  %v7855_v14 = vmul.f32 %v2885_v23, %v2873_v59 }
 0xfba   :  { %v2528_v21 = vsub.s32 32, %v2527_v60  ;;  %v2532_v57 = vsub.s32 4294967266, %v2527_v60  ;;  %v2529_v50 = vshll.u32 %v7796_v22, %v2527_v60  ;;  %v2664_v0 = vand.u32 2147483647, %v7671_v55 }
 0xfbb   :  { %v2645_v25 = vsel %vm2562_vm8, %v2644_v3, %v2643_v51  ;;  %v7862_v40 = vshrl.u32 %v2829_v56, 30  ;;  %v7864_v19 = vand.u32 3, %v2653_v2  ;;  %v7866_v7 = vadd.s32 3, %v2545_v44 }
 0xfbc   :  { %v2648_v53 = vsel %vm7815_vm12, %v7660_v27, %v2645_v25  ;;  %v2530_v28 = vshrl.u32 %v2512_v9, %v2528_v21  ;;  %v2533_v33 = vadd.s32 127, %v2532_v57  ;;  %v2691_v59 = vshrl.u32 %v7200_v41, %v2679_v1 }
 0xfbd   :  { %6893 = vcosq.f32 %v2648_v53  ;;  %v2831_v37 = vshll.u32 %v7862_v40, 30  ;;  %v2682_v17 = vshrl.u32 %v7197_v8, %v2679_v1  ;;  %v2685_v24 = vshrl.u32 %v7198_v20, %v2679_v1 }
 0xfbe   :  { %6895 = vsinq.f32 %v2648_v53  ;;  %v2531_v13 = vor.u32 %v2530_v28, %v2529_v50  ;;  %v2534_v22 = vshll.u32 %v2533_v33, 23  ;;  %v2688_v52 = vshrl.u32 %v7199_v29, %v2679_v1 }
 0xfbf   :  { %v2690_v5 = vshll.u32 %v7199_v29, %v7828_v30  ;;  %v7875_v48 = vpop.eup %6891  ;;  %v7877_v54 = vsub.s32 %v2828_v12, %v2831_v37  ;;  %v2671_v51 = vand.u32 8388607, %v2664_v0  ;;  %v2681_v23 = vshll.u32 %v7196_v6, %v7828_v30 }
 0xfc0   :  { %v2535_v63 = vor.u32 4788187, %v2534_v22  ;;  %vm2659_vm5 = vcmp.eq.s32.totalorder %v7864_v19, 2  ;;  %v2684_v58 = vshll.u32 %v7197_v8, %v7828_v30  ;;  %v2687_v34 = vshll.u32 %v7198_v20, %v7828_v30 }
 0xfc1   :  { %v2692_v3 = vor.u32 %v2691_v59, %v2690_v5  ;;  %v2694_v2 = vshrl.u32 %v7201_v49, %v2679_v1  ;;  %vm2656_vm6 = vcmp.eq.s32.totalorder %v7864_v19, 0  ;;  %v2538_v9 = vcvt.s32.f32 %v2531_v13 }
 0xfc2   :  { %v2536_v12 = vand.u32 2147483647, %v2535_v63  ;;  %v2824_v60 = vadd.s32 %v7809_v4, %v7807_v61  ;;  %v2834_v21 = vsub.s32 0, %v7877_v54  ;;  %vm161_vm7 = vcmp.lt.s32.totalorder %v7736_v39, 16 }
 0xfc3   :  { %vm2655_vm8 = vcmp.lt.s32.totalorder %v7864_v19, 2  ;;  %v2683_v57 = vor.u32 %v2682_v17, %v2681_v23  ;;  %v2686_v44 = vor.u32 %v2685_v24, %v2684_v58  ;;  %v2689_v56 = vor.u32 %v2688_v52, %v2687_v34 }
 0xfc4   :  { %v2693_v25 = vshll.u32 %v7200_v41, %v7828_v30  ;;  %vm2652_vm9 = vweird.f32 %v7660_v27  ;;  %v2539_v50 = vmul.f32 %v2538_v9, %v2536_v12  ;;  %v5730_v53 = vmin.u32 %v2834_v21, %v7877_v54 }
 0xfc5   :  { %v2680_v28 = vshrl.u32 %v7196_v6, %v2679_v1  ;;  %vm2699_vm10 = vcmp.lt.s32.totalorder %v7846_v62, 4  ;;  %v2672_v61 = vor.u32 8388608, %v2671_v51  ;;  %vm2696_vm11 = vcmp.lt.s32.totalorder %v7846_v62, 1 }
 0xfc6   :  { %v2695_v4 = vor.u32 %v2694_v2, %v2693_v25  ;;  %v2705_v33 = vsel %vm2699_vm10, %v2692_v3, 920167782  ;;  %v2540_v59 = vxor.u32 2147483648, %v2539_v50  ;;  %v2836_v13 = vclz %v5730_v53 }
 0xfc7   :  { %vm2697_vm12 = vcmp.lt.s32.totalorder %v7846_v62, 2  ;;  %vm2698_vm15 = vcmp.lt.s32.totalorder %v7846_v62, 3  ;;  %v6894_v30 = vpop.eup %6893  ;;  %v2700_v22 = vsel %vm2696_vm11, %v2680_v28, %v2683_v57  ;;  %v2701_v1 = vsel %vm2699_vm10, %v2689_v56, 2102212464 }
 0xfc8   :  { %v2704_v37 = vsel %vm2696_vm11, %v2683_v57, %v2686_v44  ;;  %v2706_v17 = vsel %vm2698_vm15, %v2689_v56, %v2705_v33  ;;  %v6896_v24 = vpop.eup %6895  ;;  %v2660_v52 = vxor.u32 2147483648, %v6894_v30  ;;  %v2541_v5 = vsel %vm2458_vm14, %v2540_v59, %v2539_v50 }
 0xfc9   :  { %v5731_v63 = vadd.s32 4294967294, %v2836_v13  ;;  %v2708_v51 = vsel %vm2696_vm11, %v2686_v44, %v2689_v56  ;;  %v2657_v23 = vxor.u32 2147483648, %v6896_v24  ;;  %v2544_v58 = vsel %vm7832_vm13, %v7662_v47, %v2541_v5 }
 0xfca   :  { %v2709_v34 = vsel %vm2699_vm10, %v2695_v4, 1326507024  ;;  %v2712_v2 = vshll.u32 %v2672_v61, 8  ;;  %v2661_v12 = vsel %vm2659_vm5, %v2660_v52, %v6896_v24  ;;  %6897 = vcosq.f32 %v2544_v58 }
 0xfcb   :  { %vm5732_vm4 = vcmp.lt.s32.totalorder %v5731_v63, 0  ;;  %v2710_v9 = vsel %vm2698_vm15, %v2692_v3, %v2709_v34  ;;  %v2658_v21 = vsel %vm2656_vm6, %v6894_v30, %v2657_v23  ;;  %6899 = vsinq.f32 %v2544_v58 }
 0xfcc   :  { %v2839_v57 = vsel %vm5732_vm4, 0, %v5731_v63  ;;  %v2711_v32 = vsel %vm2697_vm12, %v2708_v51, %v2710_v9  ;;  %v2662_v56 = vsel %vm2655_vm8, %v2658_v21, %v2661_v12  ;;  %v2707_v53 = vsel %vm2697_vm12, %v2704_v37, %v2706_v17 }
 0xfcd   :  { %v2840_v25 = vsub.s32 32, %v2839_v57  ;;  %v2844_v50 = vsub.s32 4294967266, %v2839_v57  ;;  %v2663_v28 = vsel %vm2652_vm9, nan, %v2662_v56  ;;  %v2702_v3 = vsel %vm2698_vm15, %v2686_v44, %v2701_v1 }
 0xfce   :  { %v7933_v61 = vmul.u32.u64.low %v2712_v2, %v2711_v32  ;;  %v7934_v4 = vmul.u32.u64.high %v2712_v2, %v2711_v32, %v7933_v61  ;;  %v2893_v33 = vsel %vm161_vm7, %v2663_v28, %v7855_v14  ;;  %v2841_v19 = vshll.u32 %v7877_v54, %v2839_v57 }
 0xfcf   :  { %v2842_v59 = vshrl.u32 %v2824_v60, %v2840_v25  ;;  %v2845_v13 = vadd.s32 127, %v2844_v50  ;;  %v2901_v30 = vmul.f32 %v7742_v45, %v2893_v33  ;;  %v2550_v1 = vand.u32 3, %v7866_v7 }
 0xfd0   :  { %v7941_v37 = vmul.u32.u64.low %v2712_v2, %v2707_v53  ;;  %v7942_v17 = vmul.u32.u64.high %v2712_v2, %v2707_v53, %v7941_v37  ;;  %v2703_v14 = vsel %vm2697_vm12, %v2700_v22, %v2702_v3  ;;  %vm2548_vm14 = vweird.f32 %v7662_v47 }
 0xfd1   :  { %v2843_v27 = vor.u32 %v2842_v59, %v2841_v19  ;;  %v2846_v24 = vshll.u32 %v2845_v13, 23  ;;  %v7946_v44 = vadd.f32 %v2901_v30, %v7642_v36  ;;  %v2884_v36 = vadd.f32 1.0, %v7875_v48 }
 0xfd2   :  { %vm2721_vm13 = vc.u32 %v7934_v4, %v7941_v37  ;;  %v2722_v60 = vadd.s32 1, %v7942_v17  ;;  %v2719_v51 = vmul.u32 %v2712_v2, %v2703_v14  ;;  %vm2555_vm5 = vcmp.eq.s32.totalorder %v2550_v1, 2 }
 0xfd3   :  { %v2847_v52 = vor.u32 4788187, %v2846_v24  ;;  %v2911_v54 = vsel %vm174_vm0, %v7946_v44, 0.0  ;;  %v2850_v7 = vcvt.s32.f32 %v2843_v27  ;;  %v2879_v23 = vmul.f32 0.70710677, %v7667_v35 }
 0xfd4   :  { %v6898_v5 = vpop.eup %6897  ;;  %2912 = vadd.xlane.f32.xlu1 %v2911_v54  ;;  %v2723_v58 = vsel %vm2721_vm13, %v2722_v60, %v7942_v17  ;;  %v2854_v9 = vsub.s32 4, %v7862_v40  ;;  %vm2552_vm6 = vcmp.eq.s32.totalorder %v2550_v1, 0  ;;  %v2872_v32 = vmul.f32 0.5, %v7662_v47 }
 0xfd5   :  { %v2848_v63 = vand.u32 2147483647, %v2847_v52  ;;  %v6900_v62 = vpop.eup %6899  ;;  %v2556_v22 = vxor.u32 2147483648, %v6898_v5  ;;  %v2724_v21 = vadd.s32 %v2723_v58, %v2719_v51  ;;  %vm2770_vm8 = vcmp.lt.s32.totalorder %v7667_v35, 0 }
 0xfd6   :  { %v2553_v34 = vxor.u32 2147483648, %v6900_v62  ;;  %vm2551_vm9 = vcmp.lt.s32.totalorder %v2550_v1, 2  ;;  %v2888_v50 = vmul.f32 %v2884_v36, %v2872_v32  ;;  %vm7965_vm10 = vcmp.le.f32.partialorder %v2768_v46, 0.7853982 }
 0xfd7   :  { %v2851_v12 = vmul.f32 %v2850_v7, %v2848_v63  ;;  %v2557_v57 = vsel %vm2555_vm5, %v2556_v22, %v6900_v62  ;;  %v2725_v56 = vadd.s32 536870912, %v2724_v21  ;;  %6901 = verf.f32 %v2879_v23 }
 0xfd8   :  { %v2554_v48 = vsel %vm2552_vm6, %v6898_v5, %v2553_v34  ;;  %v2855_v61 = vsel %vm2770_vm8, %v2854_v9, %v7862_v40  ;;  %v2720_v58 = vadd.s32 %v7941_v37, %v7934_v4  ;;  %vm2860_vm13 = vweird.f32 %v7667_v35 }
 0xfd9   :  { %v2852_v2 = vxor.u32 2147483648, %v2851_v12  ;;  %v2558_v25 = vsel %vm2551_vm9, %v2554_v48, %v2557_v57  ;;  %v2726_v33 = vshrl.u32 %v2725_v56, 30  ;;  %v2857_v30 = vsel %vm7965_vm10, 0, %v2855_v61 }
 0xfda   :  { %v2559_v28 = vsel %vm2548_vm14, nan, %v2558_v25  ;;  %v2861_v27 = vadd.s32 3, %v2857_v30  ;;  %vm2666_vm14 = vcmp.lt.s32.totalorder %v7671_v55, 0  ;;  %vm2665_vm5 = vcmp.le.f32.partialorder %v2664_v0, 0.7853982 }
 0xfdb   :  { %v2853_v3 = vsel %vm2770_vm8, %v2852_v2, %v2851_v12  ;;  %v2892_v19 = vsel %vm161_vm7, %v2559_v28, %v2888_v50  ;;  %v2727_v13 = vshll.u32 %v2726_v33, 30  ;;  %v2874_v0 = vmul.f32 0.5, %v7671_v55 }
 0xfdc   :  { %v2856_v59 = vsel %vm7965_vm10, %v7667_v35, %v2853_v3  ;;  %v2900_v46 = vmul.f32 %v7742_v45, %v2892_v19  ;;  %v2862_v52 = vand.u32 3, %v2861_v27  ;;  %v2750_v19 = vsub.s32 4, %v2726_v33 }
 0xfdd   :  { %6903 = vcosq.f32 %v2856_v59  ;;  %v2728_v40 = vsub.s32 %v2724_v21, %v2727_v13  ;;  %vm2756_vm10 = vweird.f32 %v7671_v55 }
 0xfde   :  { %6905 = vsinq.f32 %v2856_v59  ;;  %v7981_v47 = vadd.f32 %v2900_v46, %v7640_v31  ;;  %vm2867_vm11 = vcmp.eq.s32.totalorder %v2862_v52, 2  ;;  %v2875_v31 = vmul.f32 0.5, %v7667_v35 }
 0xfdf   :  { %v2730_v24 = vsub.s32 0, %v2728_v40  ;;  %vm2863_vm15 = vcmp.lt.s32.totalorder %v2862_v52, 2  ;;  %vm2864_vm4 = vcmp.eq.s32.totalorder %v2862_v52, 0  ;;  %v2878_v59 = vmul.f32 0.70710677, %v7671_v55 }
 0xfe0   :  { %v2908_v17 = vsel %vm174_vm0, %v7981_v47, 0.0  ;;  %v2751_v30 = vsel %vm2666_vm14, %v2750_v19, %v2726_v33  ;;  %v2982_v19 = vld [vmem:[#allocation5 + $0x38] sm:$0xff] }
 0xfe1   :  { %2909 = vadd.xlane.f32.xlu0 %v2908_v17  ;;  %v5726_v1 = vmin.u32 %v2730_v24, %v2728_v40  ;;  %v6902_v14 = vpop.eup %6901  ;;  %6907 = verf.f32 %v2878_v59 }
 0xfe2   :  { %v2887_v7 = vadd.f32 1.0, %v6902_v14 }
 0xfe3   :  { %v2732_v54 = vclz %v5726_v1 }
 0xfe4   :  { %v2891_v21 = vmul.f32 %v2887_v7, %v2875_v31 }
 0xfe5   :  { %v5727_v5 = vadd.s32 4294967294, %v2732_v54 }
 0xfe7   :  { %v6904_v60 = vpop.eup %6903  ;;  %vm5728_vm12 = vcmp.lt.s32.totalorder %v5727_v5, 0 }
 0xfe8   :  { %v6906_v36 = vpop.eup %6905  ;;  %v2868_v63 = vxor.u32 2147483648, %v6904_v60  ;;  %v2735_v22 = vsel %vm5728_vm12, 0, %v5727_v5 }
 0xfe9   :  { %v2865_v51 = vxor.u32 2147483648, %v6906_v36  ;;  %v2736_v34 = vsub.s32 32, %v2735_v22  ;;  %v2740_v12 = vsub.s32 4294967266, %v2735_v22  ;;  %v2737_v32 = vshll.u32 %v2728_v40, %v2735_v22 }
 0xfea   :  { %v2869_v62 = vsel %vm2867_vm11, %v2868_v63, %v6906_v36  ;;  %v2753_v40 = vsel %vm2665_vm5, 0, %v2751_v30 }
 0xfeb   :  { %v2866_v23 = vsel %vm2864_vm4, %v6904_v60, %v2865_v51  ;;  %v2738_v48 = vshrl.u32 %v2720_v58, %v2736_v34  ;;  %v2741_v2 = vadd.s32 127, %v2740_v12  ;;  %v2757_v17 = vadd.s32 3, %v2753_v40  ;;  %v6908_v27 = vpop.eup %6907 }
 0xfec   :  { %v2870_v9 = vsel %vm2863_vm15, %v2866_v23, %v2869_v62  ;;  %v2886_v54 = vadd.f32 1.0, %v6908_v27 }
 0xfed   :  { %v2871_v57 = vsel %vm2860_vm13, nan, %v2870_v9  ;;  %v2739_v50 = vor.u32 %v2738_v48, %v2737_v32  ;;  %v2742_v53 = vshll.u32 %v2741_v2, 23  ;;  %v2758_v24 = vand.u32 3, %v2757_v17 }
 0xfee   :  { %v2895_v56 = vsel %vm161_vm7, %v2871_v57, %v2891_v21  ;;  %v2890_v63 = vmul.f32 %v2886_v54, %v2874_v0  ;;  %v2962_v17 = vsub.s32 5, %v7609_v15 }
 0xfef   :  { %v2903_v25 = vmul.f32 %v7742_v45, %v2895_v56  ;;  %v2743_v4 = vor.u32 4788187, %v2742_v53  ;;  %v2746_v35 = vcvt.s32.f32 %v2739_v50  ;;  %vm2763_vm6 = vcmp.eq.s32.totalorder %v2758_v24, 2 }
 0xff0   :  { %vm2760_vm8 = vcmp.eq.s32.totalorder %v2758_v24, 0  ;;  %vm2759_vm9 = vcmp.lt.s32.totalorder %v2758_v24, 2  ;;  %v2970_v24 = vsub.s32 6, %v7609_v15 }
 0xff1   :  { %v2907_v28 = vadd.f32 %v2903_v25, %v7648_v43  ;;  %v2744_v3 = vand.u32 2147483647, %v2743_v4 }
 0xff3   :  { %v2917_v37 = vsel %vm174_vm0, %v2907_v28, 0.0  ;;  %v2747_v61 = vmul.f32 %v2746_v35, %v2744_v3  ;;  %v2979_v3 = vld [vmem:[#allocation5 + $0x20] sm:$0xff]  ;;  %v2981_v35 = vld [vmem:[#allocation5 + $0x30] sm:$0xff] }
 0xff4   :  { %2918 = vadd.xlane.f32.xlu1 %v2917_v37  ;;  %v6477_v59 = vpack.c.bf16 %v2982_v19, %v2981_v35 }
 0xff5   :  { %v2748_v46 = vxor.u32 2147483648, %v2747_v61 }
 0xff7   :  { %v2749_v13 = vsel %vm2666_vm14, %v2748_v46, %v2747_v61 }
 0xff8   :  { %v2752_v43 = vsel %vm2665_vm5, %v7671_v55, %v2749_v13 }
 0xff9   :  { %6909 = vcosq.f32 %v2752_v43 }
 0xffa   :  { %6911 = vsinq.f32 %v2752_v43 }
0x1003   :  { %v6910_v1 = vpop.eup %6909 }
0x1004   :  { %v6912_v14 = vpop.eup %6911  ;;  %v2764_v52 = vxor.u32 2147483648, %v6910_v1 }
0x1005   :  { %v2761_v60 = vxor.u32 2147483648, %v6912_v14 }
0x1006   :  { %v2765_v5 = vsel %vm2763_vm6, %v2764_v52, %v6912_v14 }
0x1007   :  { %v2762_v33 = vsel %vm2760_vm8, %v6910_v1, %v2761_v60  ;;  %v7009_v1 = vld [vmem:[%s8410_s7] sm:$0xff] }
0x1008   :  { %v2766_v36 = vsel %vm2759_vm9, %v2762_v33, %v2765_v5  ;;  %v2963_v14 = vrot.slane %v7009_v1, %v2962_v17  ;;  %v2971_v5 = vrot.slane %v7009_v1, %v2970_v24 }
0x1009   :  { %v2767_v7 = vsel %vm2756_vm10, nan, %v2766_v36 }
0x100a   :  { %v2894_v51 = vsel %vm161_vm7, %v2767_v7, %v2890_v63 }
0x100b   :  { %v2902_v31 = vmul.f32 %v7742_v45, %v2894_v51 }
0x100d   :  { %v2906_v62 = vadd.f32 %v2902_v31, %v7650_v26 }
0x100f   :  { %v2914_v22 = vsel %vm174_vm0, %v2906_v62, 0.0 }
0x1010   :  { %2915 = vadd.xlane.f32.xlu0 %v2914_v22 }
0x1061   :  { %v2913_v23 = vpop.xlane.xlu1 %2912 }
0x1062   :  { %v2921_v58 = vmul.f32 0.03125, %v2913_v23 }
0x1064   :  { %v2925_v34 = vsub.f32 %v7946_v44, %v2921_v58 }
0x1066   :  { %v2929_v12 = vmul.f32 %v2925_v34, %v2925_v34 }
0x1068   :  { %v2935_v55 = vsel %vm174_vm0, %v2929_v12, 0.0 }
0x1069   :  { %2936 = vadd.xlane.f32.xlu1 %v2935_v55 }
0x106e   :  { %v2910_v9 = vpop.xlane.xlu0 %2909 }
0x106f   :  { %v2920_v21 = vmul.f32 0.03125, %v2910_v9 }
0x1071   :  { %v2924_v57 = vsub.f32 %v7981_v47, %v2920_v21  ;;  %v2980_v47 = vld [vmem:[#allocation5 + $0x28] sm:$0xff] }
0x1072   :  { %v6473_v61 = vpack.c.bf16 %v2980_v47, %v2979_v3 }
0x1073   :  { %v2928_v32 = vmul.f32 %v2924_v57, %v2924_v57 }
0x1074   :  { %6474 = vmatprep.subr.bf16.mxu0 %v6473_v61 }
0x1075   :  { %v2932_v45 = vsel %vm174_vm0, %v2928_v32, 0.0  ;;  %6476 = vmatpush3.bf16.msra.mxu0 %v6473_v61 }
0x1076   :  { %2933 = vadd.xlane.f32.xlu0 %v2932_v45  ;;  %6478 = vmatprep.subr.bf16.mxu0 %v6477_v59  ;;  %v5734_v45 = vld [vmem:[#allocation7 + $0x1] ss:$0 sm:$0xff] }
0x1079   :  { %6480 = vmatpush3.bf16.msra.mxu0 %v6477_v59 }
0x1081   :  { %v2919_v26 = vpop.xlane.xlu1 %2918 }
0x1082   :  { %v2923_v48 = vmul.f32 0.03125, %v2919_v26 }
0x1084   :  { %v2927_v2 = vsub.f32 %v2907_v28, %v2923_v48 }
0x1086   :  { %v2931_v56 = vmul.f32 %v2927_v2, %v2927_v2 }
0x1088   :  { %v2941_v25 = vsel %vm174_vm0, %v2931_v56, 0.0 }
0x1089   :  { %2942 = vadd.xlane.f32.xlu1 %v2941_v25 }
0x109d   :  { %v2916_v44 = vpop.xlane.xlu0 %2915 }
0x109e   :  { %v2922_v50 = vmul.f32 0.03125, %v2916_v44 }
0x10a0   :  { %v2926_v53 = vsub.f32 %v2906_v62, %v2922_v50 }
0x10a2   :  { %v2930_v4 = vmul.f32 %v2926_v53, %v2926_v53 }
0x10a4   :  { %v2938_v37 = vsel %vm174_vm0, %v2930_v4, 0.0 }
0x10a5   :  { %2939 = vadd.xlane.f32.xlu0 %v2938_v37 }
0x10f6   :  { %v2937_v28 = vpop.xlane.xlu1 %2936 }
0x10f7   :  { %v2945_v46 = vmul.f32 0.03125, %v2937_v28 }
0x10f9   :  { %v2949_v13 = vadd.f32 1e-05, %v2945_v46 }
0x10fb   :  { %6913 = vrsqrt.f32 %v2949_v13 }
0x1103   :  { %v2934_v30 = vpop.xlane.xlu0 %2933 }
0x1104   :  { %v2944_v43 = vmul.f32 0.03125, %v2934_v30 }
0x1105   :  { %v6914_v27 = vpop.eup %6913 }
0x1106   :  { %v2948_v40 = vadd.f32 1e-05, %v2944_v43  ;;  %v2957_v52 = vmul.f32 %v6914_v27, %v2925_v34 }
0x1108   :  { %6915 = vrsqrt.f32 %v2948_v40  ;;  %v2965_v0 = vmul.f32 %v2963_v14, %v2957_v52 }
0x110a   :  { %v8023_v63 = vadd.f32 %v2971_v5, %v2965_v0 }
0x1112   :  { %v6916_v54 = vpop.eup %6915 }
0x1113   :  { %v2956_v60 = vmul.f32 %v6916_v54, %v2924_v57 }
0x1115   :  { %v2964_v33 = vmul.f32 %v2963_v14, %v2956_v60 }
0x1116   :  { %v2943_v7 = vpop.xlane.xlu1 %2942 }
0x1117   :  { %v8021_v36 = vadd.f32 %v2971_v5, %v2964_v33  ;;  %v2947_v51 = vmul.f32 0.03125, %v2943_v7 }
0x1119   :  { %6202 = vmatprep.mubr.msk.f32.mxu0 %vm174_vm0, %v8021_v36  ;;  %v2951_v31 = vadd.f32 1e-05, %v2947_v51 }
0x111a   :  { %6203 = vmatmul.mubr.msk.f32.vlgmr.msra.gmra.mrb[20].mxu0 %vm174_vm0, %v8023_v63 }
0x111b   :  { %6917 = vrsqrt.f32 %v2951_v31 }
0x1125   :  { %v6918_v58 = vpop.eup %6917 }
0x1126   :  { %v2959_v34 = vmul.f32 %v6918_v58, %v2927_v2 }
0x1128   :  { %v2967_v9 = vmul.f32 %v2963_v14, %v2959_v34 }
0x112a   :  { %v8031_v32 = vadd.f32 %v2971_v5, %v2967_v9 }
0x1132   :  { %v2940_v62 = vpop.xlane.xlu0 %2939 }
0x1133   :  { %v2946_v22 = vmul.f32 0.03125, %v2940_v62 }
0x1135   :  { %v2950_v23 = vadd.f32 1e-05, %v2946_v22 }
0x1137   :  { %6919 = vrsqrt.f32 %v2950_v23 }
0x1141   :  { %v6920_v12 = vpop.eup %6919 }
0x1142   :  { %v2958_v55 = vmul.f32 %v6920_v12, %v2926_v53 }
0x1144   :  { %v2966_v21 = vmul.f32 %v2963_v14, %v2958_v55 }
0x1146   :  { %v8029_v57 = vadd.f32 %v2971_v5, %v2966_v21 }
0x1148   :  { %6205 = vmatprep.mubr.msk.f32.mxu0 %vm174_vm0, %v8029_v57 }
0x1149   :  { %6206 = vmatmul.mubr.msk.f32.gmra.mrb[22].mxu0 %vm174_vm0, %v8031_v32 }
0x11ed   :  { %v6204_v26 = vpop.f32.mrb[20].mxu0 }
0x11ee   :  { %v8037_v48 = vadd.f32 %v6204_v26, %v5734_v45  ;;  %v3069_v56 = vpop.f32.mrb[21].mxu0 }
0x11ef   :  { %v8039_v2 = vadd.f32 %v5734_v45, %v3069_v56 }
0x11f1   :  { %6212 = vmatprep.mubr.msk.f32.mxu1 %vm282_vm1, %v8039_v2  ;;  %v8045_v25 = vpack.i.bf16 %v8037_v48, %v8039_v2 }
0x11f3   :  { %6738 = vrot.lane.b32.xlu0 %v8045_v25, %s7185_s2 }
0x121c   :  { %v6207_v44 = vpop.f32.mrb[22].mxu0 }
0x121d   :  { %v8049_v50 = vadd.f32 %v6207_v44, %v5734_v45  ;;  %v3079_v53 = vpop.f32.mrb[23].mxu0 }
0x121e   :  { %v8051_v4 = vadd.f32 %v5734_v45, %v3079_v53 }
0x1220   :  { %6219 = vmatprep.mubr.msk.f32.mxu0 %vm282_vm1, %v8051_v4  ;;  %v8057_v37 = vpack.i.bf16 %v8049_v50, %v8051_v4 }
0x1222   :  { %6743 = vrot.lane.b32.xlu1 %v8057_v37, %s7185_s2 }
0x1265   :  { %v6739_v3 = vpop.permute.xlu0 %6738 }
0x1266   :  { %v6741_v47 = vunpack.i.h.bf16 %v6739_v3  ;;  %v6740_v35 = vunpack.i.l.bf16 %v6739_v3 }
0x1268   :  { %v6481_v61 = vpack.c.bf16 %v6741_v47, %v6740_v35 }
0x126a   :  { %6483 = vmatprep.subr.msk.bf16.mxu1 %vm7418_vm2, %v6481_v61 }
0x126b   :  { %6486 = vmatpush3.bf16.xpose.msk.msra.mxu1 %vm7418_vm2, %v6481_v61 }
0x1272   :  { %6213 = vmatmul.mubr.msk.f32.vlgmr.msra.gmra.mrb[24].mxu1 %vm282_vm1, %v8037_v48 }
0x1294   :  { %v6744_v19 = vpop.permute.xlu1 %6743 }
0x1295   :  { %v6746_v59 = vunpack.i.h.bf16 %v6744_v19  ;;  %v6745_v28 = vunpack.i.l.bf16 %v6744_v19 }
0x1297   :  { %v6487_v46 = vpack.c.bf16 %v6746_v59, %v6745_v28 }
0x1299   :  { %6489 = vmatprep.subr.msk.bf16.mxu0 %vm7418_vm2, %v6487_v46 }
0x129a   :  { %6492 = vmatpush3.bf16.xpose.msk.msra.mxu0 %vm7418_vm2, %v6487_v46 }
0x12a1   :  { %6220 = vmatmul.mubr.msk.f32.vlgmr.msra.gmra.mrb[24].mxu0 %vm282_vm1, %v8049_v50 }
0x1345   :  { %v6214_v13 = vpop.f32.mrb[24].mxu1 }
0x1346   :  { %v3173_v30 = vpop.f32.mrb[25].mxu1  ;;  %v3274_v43 = vsel %vm455_vm3, %v6214_v13, -inf }
0x1347   :  { %3275 = vmax.xlane.f32.xlu0 %v3274_v43  ;;  %v3271_v40 = vsel %vm455_vm3, %v3173_v30, -inf }
0x1348   :  { %3272 = vmax.xlane.f32.xlu1 %v3271_v40 }
0x1374   :  { %v6221_v27 = vpop.f32.mrb[24].mxu0 }
0x1375   :  { %v3262_v1 = vpop.f32.mrb[25].mxu0  ;;  %v3280_v14 = vsel %vm455_vm3, %v6221_v27, -inf }
0x1376   :  { %v3277_v52 = vsel %vm455_vm3, %v3262_v1, -inf  ;;  %3281 = vmax.xlane.f32.xlu1 %v3280_v14 }
0x1377   :  { %3278 = vmax.xlane.f32.xlu0 %v3277_v52 }
0x13d4   :  { %v3276_v54 = vpop.xlane.xlu0 %3275 }
0x13d5   :  { %v3284_v60 = vsub.f32 %v6214_v13, %v3276_v54  ;;  %v3273_v5 = vpop.xlane.xlu1 %3272 }
0x13d6   :  { %v3283_v0 = vsub.f32 %v3173_v30, %v3273_v5 }
0x13d7   :  { %v3289_v33 = vmul.f32 1.442695, %v3284_v60 }
0x13d8   :  { %v3287_v7 = vmul.f32 1.442695, %v3283_v0 }
0x13d9   :  { %6921 = vpow2.f32 %v3289_v33 }
0x13da   :  { %6923 = vpow2.f32 %v3287_v7 }
0x13e3   :  { %v6922_v51 = vpop.eup %6921 }
0x13e4   :  { %v6924_v31 = vpop.eup %6923  ;;  %v3298_v62 = vsel %vm455_vm3, %v6922_v51, 0.0 }
0x13e5   :  { %3299 = vadd.xlane.f32.xlu1 %v3298_v62  ;;  %v3295_v22 = vsel %vm455_vm3, %v6924_v31, 0.0 }
0x13e6   :  { %3296 = vadd.xlane.f32.xlu0 %v3295_v22 }
0x1403   :  { %v3282_v23 = vpop.xlane.xlu1 %3281 }
0x1404   :  { %v3279_v58 = vpop.xlane.xlu0 %3278  ;;  %v3286_v34 = vsub.f32 %v6221_v27, %v3282_v23 }
0x1405   :  { %v3285_v12 = vsub.f32 %v3262_v1, %v3279_v58 }
0x1406   :  { %v3293_v55 = vmul.f32 1.442695, %v3286_v34 }
0x1407   :  { %v3291_v9 = vmul.f32 1.442695, %v3285_v12 }
0x1408   :  { %6925 = vpow2.f32 %v3293_v55 }
0x1409   :  { %6927 = vpow2.f32 %v3291_v9 }
0x1412   :  { %v6926_v21 = vpop.eup %6925 }
0x1413   :  { %v6928_v45 = vpop.eup %6927  ;;  %v3304_v26 = vsel %vm455_vm3, %v6926_v21, 0.0 }
0x1414   :  { %v3301_v56 = vsel %vm455_vm3, %v6928_v45, 0.0  ;;  %3305 = vadd.xlane.f32.xlu1 %v3304_v26 }
0x1415   :  { %3302 = vadd.xlane.f32.xlu0 %v3301_v56 }
0x1425   :  { %6753 = vrot.lane.b32.xlu1 %v8057_v37, %s7186_s3 }
0x1429   :  { %6758 = vrot.lane.b32.xlu1 %v8057_v37, %s7187_s14 }
0x142b   :  { %6748 = vrot.lane.b32.xlu0 %v8045_v25, %s7186_s3 }
0x142d   :  { %3580 = vrot.lane.b32.xlu1 %v8051_v4, %s7188_s19 }
0x142f   :  { %3582 = vrot.lane.b32.xlu0 %v8049_v50, %s7188_s19 }
0x1431   :  { %6763 = vrot.lane.b32.xlu1 %v8045_v25, %s7187_s14 }
0x1433   :  { %3489 = vrot.lane.b32.xlu0 %v8039_v2, %s7188_s19 }
0x1435   :  { %3491 = vrot.lane.b32.xlu1 %v8037_v48, %s7188_s19 }
0x1472   :  { %v3300_v47 = vpop.xlane.xlu1 %3299 }
0x1473   :  { %v3297_v44 = vpop.xlane.xlu0 %3296 }
0x1474   :  { %6929 = vrcp.f32 %v3297_v44 }
0x1475   :  { %6931 = vrcp.f32 %v3300_v47 }
0x147e   :  { %v6930_v53 = vpop.eup %6929 }
0x147f   :  { %v3308_v3 = vmul.f32 %v6930_v53, %v6924_v31  ;;  %v6932_v27 = vpop.eup %6931 }
0x1480   :  { %v3310_v5 = vmul.f32 %v6932_v27, %v6922_v51 }
0x1481   :  { %6226 = vmatprep.mubr.msk.f32.mxu1 %vm455_vm3, %v3308_v3 }
0x14a1   :  { %v3306_v35 = vpop.xlane.xlu1 %3305 }
0x14a2   :  { %v3303_v61 = vpop.xlane.xlu0 %3302 }
0x14a3   :  { %6933 = vrcp.f32 %v3303_v61 }
0x14a4   :  { %6935 = vrcp.f32 %v3306_v35 }
0x14a5   :  { %v6754_v19 = vpop.permute.xlu1 %6753 }
0x14a6   :  { %v6749_v59 = vpop.permute.xlu0 %6748  ;;  %v6756_v13 = vunpack.i.h.bf16 %v6754_v19  ;;  %v6755_v30 = vunpack.i.l.bf16 %v6754_v19 }
0x14a7   :  { %v6751_v28 = vunpack.i.h.bf16 %v6749_v59  ;;  %v6750_v46 = vunpack.i.l.bf16 %v6749_v59 }
0x14a8   :  { %v6497_v14 = vpack.c.bf16 %v6756_v13, %v6755_v30 }
0x14a9   :  { %v6493_v43 = vpack.c.bf16 %v6751_v28, %v6750_v46  ;;  %v6759_v40 = vpop.permute.xlu1 %6758 }
0x14aa   :  { %v3583_v1 = vpop.permute.xlu0 %3582  ;;  %v6761_v52 = vunpack.i.h.bf16 %v6759_v40  ;;  %v6760_v54 = vunpack.i.l.bf16 %v6759_v40 }
0x14ab   :  { %6494 = vmatprep.subr.bf16.mxu1 %v6493_v43 }
0x14ac   :  { %6496 = vmatpush3.bf16.msra.mxu1 %v6493_v43  ;;  %v6507_v62 = vpack.c.bf16 %v6761_v52, %v6760_v54 }
0x14ad   :  { %v6934_v60 = vpop.eup %6933  ;;  %6498 = vmatprep.subr.bf16.mxu1 %v6497_v14  ;;  %v3581_v0 = vpop.permute.xlu1 %3580 }
0x14ae   :  { %v6936_v33 = vpop.eup %6935  ;;  %v3490_v7 = vpop.permute.xlu0 %3489  ;;  %v3312_v31 = vmul.f32 %v6934_v60, %v6928_v45 }
0x14af   :  { %6227 = vmatmul.mubr.msk.f32.vlgmr.msra.gmra.mrb[26].mxu1 %vm455_vm3, %v3310_v5  ;;  %6240 = vmatprep.mubr.msk.f32.mxu0 %vm282_vm1, %v3490_v7  ;;  %v3314_v22 = vmul.f32 %v6936_v33, %v6926_v21 }
0x14b0   :  { %6500 = vmatpush3.bf16.msra.mxu1 %v6497_v14  ;;  %6233 = vmatprep.mubr.msk.f32.mxu1 %vm455_vm3, %v3312_v31 }
0x14b1   :  { %6509 = vmatprep.subr.msk.bf16.mxu1 %vm7418_vm2, %v6507_v62  ;;  %v6764_v23 = vpop.permute.xlu1 %6763 }
0x14b2   :  { %v6766_v58 = vunpack.i.h.bf16 %v6764_v23  ;;  %v6765_v51 = vunpack.i.l.bf16 %v6764_v23 }
0x14b3   :  { %6234 = vmatmul.mubr.msk.f32.vlgmr.msra.gmra.mrb[28].mxu1 %vm455_vm3, %v3314_v22 }
0x14b4   :  { %v6501_v34 = vpack.c.bf16 %v6766_v58, %v6765_v51  ;;  %6247 = vmatprep.mubr.msk.f32.mxu1 %vm282_vm1, %v3581_v0 }
0x14b5   :  { %v3492_v12 = vpop.permute.xlu1 %3491 }
0x14b6   :  { %6503 = vmatprep.subr.msk.bf16.mxu0 %vm7418_vm2, %v6501_v34 }
0x14b7   :  { %6506 = vmatpush3.bf16.xpose.msk.msra.mxu0 %vm7418_vm2, %v6501_v34 }
0x14b9   :  { %6512 = vmatpush3.bf16.xpose.msk.msra.mxu1 %vm7418_vm2, %v6507_v62 }
0x14be   :  { %6241 = vmatmul.mubr.msk.f32.vlgmr.msra.gmra.mrb[26].mxu0 %vm282_vm1, %v3492_v12 }
0x14c0   :  { %6248 = vmatmul.mubr.msk.f32.vlgmr.msra.gmra.mrb[30].mxu1 %vm282_vm1, %v3583_v1 }
0x1582   :  { %v8113_v55 = vpop.f32.mrb[26].mxu1 }
0x1583   :  { %v8115_v9 = vpop.f32.mrb[27].mxu1 }
0x1586   :  { %v8117_v21 = vpop.f32.mrb[28].mxu1 }
0x1587   :  { %v8119_v45 = vpop.f32.mrb[29].mxu1 }
0x1591   :  { %v8121_v26 = vpop.f32.mrb[26].mxu0 }
0x1592   :  { %v3571_v56 = vpop.f32.mrb[27].mxu0  ;;  %v3674_v22 = vsel %vm455_vm3, %v8121_v26, -inf }
0x1593   :  { %v6249_v44 = vpop.f32.mrb[30].mxu1  ;;  %v3671_v35 = vsel %vm455_vm3, %v3571_v56, -inf }
0x1594   :  { %v3662_v53 = vpop.f32.mrb[31].mxu1  ;;  %v3680_v3 = vsel %vm455_vm3, %v6249_v44, -inf }
0x1595   :  { %3681 = vmax.xlane.f32.xlu1 %v3680_v3  ;;  %v3677_v47 = vsel %vm455_vm3, %v3662_v53, -inf }
0x1596   :  { %3678 = vmax.xlane.f32.xlu0 %v3677_v47 }
0x15a6   :  { %6773 = vrot.lane.b32.xlu1 %v8045_v25, %s7190_s21 }
0x15aa   :  { %6778 = vrot.lane.b32.xlu1 %v8057_v37, %s7190_s21 }
0x15ae   :  { %4083 = vrot.lane.b32.xlu1 %v8039_v2, %s7191_s1 }
0x15b2   :  { %4174 = vrot.lane.b32.xlu1 %v8051_v4, %s7191_s1 }
0x15d6   :  { %3672 = vmax.xlane.f32.xlu1 %v3671_v35 }
0x15e7   :  { %6783 = vrot.lane.b32.xlu1 %v8045_v25, %s7189_s20 }
0x1622   :  { %v3682_v61 = vpop.xlane.xlu1 %3681 }
0x1623   :  { %v3686_v19 = vsub.f32 %v6249_v44, %v3682_v61  ;;  %v3679_v59 = vpop.xlane.xlu0 %3678 }
0x1624   :  { %v3685_v28 = vsub.f32 %v3662_v53, %v3679_v59 }
0x1625   :  { %v3693_v46 = vmul.f32 1.442695, %v3686_v19 }
0x1626   :  { %v3691_v13 = vmul.f32 1.442695, %v3685_v28  ;;  %v6774_v1 = vpop.permute.xlu1 %6773 }
0x1627   :  { %6937 = vpow2.f32 %v3693_v46  ;;  %v6775_v44 = vunpack.i.l.bf16 %v6774_v1 }
0x1628   :  { %6939 = vpow2.f32 %v3691_v13 }
0x162a   :  { %v6779_v14 = vpop.permute.xlu1 %6778 }
0x162b   :  { %v6781_v46 = vunpack.i.h.bf16 %v6779_v14  ;;  %v6780_v13 = vunpack.i.l.bf16 %v6779_v14 }
0x162e   :  { %v4084_v52 = vpop.permute.xlu1 %4083 }
0x1631   :  { %v6938_v30 = vpop.eup %6937 }
0x1632   :  { %v3704_v43 = vsel %vm455_vm3, %v6938_v30, 0.0  ;;  %v6940_v40 = vpop.eup %6939  ;;  %v4175_v54 = vpop.permute.xlu1 %4174 }
0x1633   :  { %3705 = vadd.xlane.f32.xlu0 %v3704_v43  ;;  %v3701_v27 = vsel %vm455_vm3, %v6940_v40, 0.0  ;;  %v6527_v43 = vpack.c.bf16 %v6781_v46, %v6780_v13 }
0x1637   :  { %3702 = vadd.xlane.f32.xlu0 %v3701_v27 }
0x164d   :  { %6768 = vrot.lane.b32.xlu0 %v8057_v37, %s7189_s20 }
0x1651   :  { %4085 = vrot.lane.b32.xlu0 %v8037_v48, %s7191_s1 }
0x1655   :  { %4176 = vrot.lane.b32.xlu0 %v8049_v50, %s7191_s1 }
0x1663   :  { %v3673_v60 = vpop.xlane.xlu1 %3672 }
0x1664   :  { %v3683_v5 = vsub.f32 %v3571_v56, %v3673_v60  ;;  %v6776_v56 = vunpack.i.h.bf16 %v6774_v1 }
0x1666   :  { %v3687_v0 = vmul.f32 1.442695, %v3683_v5  ;;  %v6521_v35 = vpack.c.bf16 %v6776_v56, %v6775_v44 }
0x1667   :  { %v6784_v33 = vpop.permute.xlu1 %6783 }
0x1668   :  { %v6786_v7 = vunpack.i.h.bf16 %v6784_v33  ;;  %v6785_v31 = vunpack.i.l.bf16 %v6784_v33  ;;  %6941 = vpow2.f32 %v3687_v0 }
0x166a   :  { %v6513_v62 = vpack.c.bf16 %v6786_v7, %v6785_v31 }
0x166c   :  { %6514 = vmatprep.subr.bf16.mxu0 %v6513_v62 }
0x166d   :  { %6516 = vmatpush3.bf16.msra.mxu0 %v6513_v62 }
0x1672   :  { %v6942_v23 = vpop.eup %6941 }
0x1673   :  { %v3695_v58 = vsel %vm455_vm3, %v6942_v23, 0.0 }
0x1674   :  { %3675 = vmax.xlane.f32.xlu0 %v3674_v22 }
0x1678   :  { %3696 = vadd.xlane.f32.xlu0 %v3695_v58 }
0x16c0   :  { %v3706_v51 = vpop.xlane.xlu0 %3705 }
0x16c1   :  { %6943 = vrcp.f32 %v3706_v51 }
0x16c4   :  { %v3703_v34 = vpop.xlane.xlu0 %3702 }
0x16c5   :  { %6945 = vrcp.f32 %v3703_v34 }
0x16c8   :  { %v6769_v12 = vpop.permute.xlu0 %6768 }
0x16c9   :  { %v6771_v53 = vunpack.i.h.bf16 %v6769_v12  ;;  %v6770_v3 = vunpack.i.l.bf16 %v6769_v12 }
0x16cb   :  { %v6517_v47 = vpack.c.bf16 %v6771_v53, %v6770_v3  ;;  %v6944_v61 = vpop.eup %6943  ;;  %v3090_v53 = vld [vmem:[#allocation8 + $0x28] sm:$0xff]  ;;  %v3089_v3 = vld [vmem:[#allocation8 + $0x20] sm:$0xff] }
0x16cc   :  { %v3714_v28 = vmul.f32 %v6944_v61, %v6938_v30  ;;  %v4086_v27 = vpop.permute.xlu0 %4085  ;;  %6264 = vmatprep.subr.mxu0 %v3090_v53 }
0x16cd   :  { %6518 = vmatprep.subr.bf16.mxu1 %v6517_v47 }
0x16ce   :  { %6520 = vmatpush3.bf16.msra.mxu1 %v6517_v47 }
0x16cf   :  { %v6946_v19 = vpop.eup %6945  ;;  %6523 = vmatprep.subr.msk.bf16.mxu1 %vm7418_vm2, %v6521_v35 }
0x16d0   :  { %v3712_v59 = vmul.f32 %v6946_v19, %v6940_v40  ;;  %v4177_v30 = vpop.permute.xlu0 %4176 }
0x16d2   :  { %6261 = vmatprep.mubr.msk.f32.mxu1 %vm455_vm3, %v3712_v59 }
0x16d3   :  { %6262 = vmatmul.mubr.msk.f32.vlgmr.msra.gmra.mrb[32].mxu1 %vm455_vm3, %v3714_v28 }
0x16d4   :  { %6284 = vmatprep.mubr.msk.f32.mxu1 %vm282_vm1, %v4084_v52 }
0x16d7   :  { %6526 = vmatpush3.bf16.xpose.msk.msra.mxu1 %vm7418_vm2, %v6521_v35 }
0x16d8   :  { %6529 = vmatprep.subr.msk.bf16.mxu1 %vm7418_vm2, %v6527_v43 }
0x16de   :  { %6285 = vmatmul.mubr.msk.f32.vlgmr.msra.gmra.mrb[34].mxu1 %vm282_vm1, %v4086_v27 }
0x16df   :  { %6532 = vmatpush3.bf16.xpose.msk.msra.mxu1 %vm7418_vm2, %v6527_v43  ;;  %6291 = vmatprep.mubr.msk.f32.mxu1 %vm282_vm1, %v4175_v54 }
0x16e6   :  { %6292 = vmatmul.mubr.msk.f32.vlgmr.msra.gmra.mrb[36].mxu1 %vm282_vm1, %v4177_v30 }
0x1701   :  { %v3676_v40 = vpop.xlane.xlu0 %3675 }
0x1702   :  { %v3684_v1 = vsub.f32 %v8121_v26, %v3676_v40 }
0x1704   :  { %v3689_v14 = vmul.f32 1.442695, %v3684_v1 }
0x1705   :  { %v3697_v52 = vpop.xlane.xlu0 %3696 }
0x1706   :  { %6947 = vpow2.f32 %v3689_v14 }
0x1707   :  { %6949 = vrcp.f32 %v3697_v52 }
0x1710   :  { %v6948_v60 = vpop.eup %6947 }
0x1711   :  { %v6950_v5 = vpop.eup %6949  ;;  %v3698_v0 = vsel %vm455_vm3, %v6948_v60, 0.0 }
0x1712   :  { %3699 = vadd.xlane.f32.xlu0 %v3698_v0  ;;  %v3708_v33 = vmul.f32 %v6950_v5, %v6942_v23 }
0x1714   :  { %6254 = vmatprep.mubr.msk.f32.mxu0 %vm455_vm3, %v3708_v33 }
0x179f   :  { %v3700_v7 = vpop.xlane.xlu0 %3699 }
0x17a0   :  { %6951 = vrcp.f32 %v3700_v7 }
0x17a6   :  { %v6263_v54 = vpop.f32.mrb[32].mxu1 }
0x17a7   :  { %v3880_v31 = vpop.f32.mrb[33].mxu1 }
0x17aa   :  { %v6952_v62 = vpop.eup %6951 }
0x17ab   :  { %v3710_v22 = vmul.f32 %v6952_v62, %v6948_v60 }
0x17ad   :  { %6255 = vmatmul.mubr.msk.f32.vlgmr.msra.gmra.mrb[28].mxu0 %vm455_vm3, %v3710_v22 }
0x17ae   :  { %6265 = vmatpush3.msra.mxu0 %v3090_v53 }
0x17af   :  { %6272 = vmatprep.subr.mxu0 %v3089_v3 }
0x17b1   :  { %v6286_v26 = vpop.f32.mrb[34].mxu1 }
0x17b2   :  { %v4165_v58 = vpop.f32.mrb[35].mxu1  ;;  %v4268_v51 = vsel %vm455_vm3, %v6286_v26, -inf }
0x17b3   :  { %4269 = vmax.xlane.f32.xlu0 %v4268_v51  ;;  %v4265_v34 = vsel %vm455_vm3, %v4165_v58, -inf }
0x17b7   :  { %4266 = vmax.xlane.f32.xlu0 %v4265_v34 }
0x17b9   :  { %v6293_v12 = vpop.f32.mrb[36].mxu1 }
0x17ba   :  { %v4256_v23 = vpop.f32.mrb[37].mxu1  ;;  %v4274_v44 = vsel %vm455_vm3, %v6293_v12, -inf }
0x17bb   :  { %v4271_v56 = vsel %vm455_vm3, %v4256_v23, -inf }
0x17bc   :  { %4272 = vmax.xlane.f32.xlu0 %v4271_v56  ;;  %v3091_v56 = vld [vmem:[#allocation8 + $0x30] sm:$0xff] }
0x17c0   :  { %4275 = vmax.xlane.f32.xlu0 %v4274_v44 }
0x1840   :  { %v4270_v47 = vpop.xlane.xlu0 %4269 }
0x1841   :  { %v4278_v35 = vsub.f32 %v6286_v26, %v4270_v47 }
0x1843   :  { %v4283_v61 = vmul.f32 1.442695, %v4278_v35 }
0x1844   :  { %v4267_v19 = vpop.xlane.xlu0 %4266 }
0x1845   :  { %6953 = vpow2.f32 %v4283_v61  ;;  %v4277_v59 = vsub.f32 %v4165_v58, %v4267_v19 }
0x1847   :  { %v4281_v28 = vmul.f32 1.442695, %v4277_v59 }
0x1849   :  { %6955 = vpow2.f32 %v4281_v28  ;;  %v4273_v46 = vpop.xlane.xlu0 %4272 }
0x184a   :  { %v4279_v13 = vsub.f32 %v4256_v23, %v4273_v46 }
0x184c   :  { %v4285_v40 = vmul.f32 1.442695, %v4279_v13 }
0x184d   :  { %v4276_v43 = vpop.xlane.xlu0 %4275 }
0x184e   :  { %v4280_v27 = vsub.f32 %v6293_v12, %v4276_v43 }
0x184f   :  { %v8169_v30 = vpop.eup %6953 }
0x1850   :  { %v4287_v1 = vmul.f32 1.442695, %v4280_v27  ;;  %v4292_v14 = vsel %vm455_vm3, %v8169_v30, 0.0 }
0x1851   :  { %4293 = vadd.xlane.f32.xlu0 %v4292_v14 }
0x1852   :  { %6957 = vpow2.f32 %v4287_v1 }
0x1853   :  { %v6956_v52 = vpop.eup %6955  ;;  %6959 = vpow2.f32 %v4285_v40 }
0x1854   :  { %v4289_v60 = vsel %vm455_vm3, %v6956_v52, 0.0 }
0x1855   :  { %4290 = vadd.xlane.f32.xlu1 %v4289_v60 }
0x185c   :  { %v6958_v5 = vpop.eup %6957 }
0x185d   :  { %v4298_v0 = vsel %vm455_vm3, %v6958_v5, 0.0  ;;  %v6960_v33 = vpop.eup %6959 }
0x185e   :  { %4299 = vadd.xlane.f32.xlu0 %v4298_v0  ;;  %v4295_v7 = vsel %vm455_vm3, %v6960_v33, 0.0 }
0x1862   :  { %4296 = vadd.xlane.f32.xlu0 %v4295_v7 }
0x1866   :  { %6793 = vrot.lane.b32.xlu1 %v8057_v37, %s7192_s30 }
0x186a   :  { %4677 = vrot.lane.b32.xlu1 %v8049_v50, %s7193_s22 }
0x1878   :  { %6788 = vrot.lane.b32.xlu0 %v8045_v25, %s7192_s30 }
0x187c   :  { %6798 = vrot.lane.b32.xlu0 %v8045_v25, %s7194_s25 }
0x1880   :  { %v6256_v62 = vpop.f32.mrb[28].mxu0  ;;  %6803 = vrot.lane.b32.xlu0 %v8057_v37, %s7194_s25 }
0x1881   :  { %v3793_v22 = vpop.f32.mrb[29].mxu0 }
0x1882   :  { %6266 = vmatprep.mubr.msk.f32.mxu0 %vm282_vm1, %v3793_v22 }
0x1883   :  { %6267 = vmatmul.mubr.msk.f32.vlgmr.msra.gmra.mrb[30].mxu0 %vm282_vm1, %v6256_v62 }
0x1884   :  { %4584 = vrot.lane.b32.xlu0 %v8039_v2, %s7193_s22  ;;  %6269 = vmatprep.mubr.msk.f32.mxu0 %vm282_vm1, %v3880_v31 }
0x1885   :  { %6273 = vmatpush3.msra.mxu0 %v3089_v3 }
0x1887   :  { %6270 = vmatmul.mubr.msk.f32.gmra.mrb[32].mxu0 %vm282_vm1, %v6263_v54 }
0x1888   :  { %4586 = vrot.lane.b32.xlu0 %v8037_v48, %s7193_s22  ;;  %6274 = vmatprep.mubr.msk.f32.mxu0 %vm282_vm1, %v8115_v9 }
0x188b   :  { %6275 = vmatmul.mubr.msk.f32.vlgmr.msra.gmra.mrb[30].mxu0 %vm282_vm1, %v8113_v55 }
0x188c   :  { %4675 = vrot.lane.b32.xlu0 %v8051_v4, %s7193_s22  ;;  %6277 = vmatprep.mubr.msk.f32.mxu0 %vm282_vm1, %v8119_v45 }
0x188f   :  { %6278 = vmatmul.mubr.msk.f32.gmra.mrb[32].mxu0 %vm282_vm1, %v8117_v21 }
0x18de   :  { %v4294_v54 = vpop.xlane.xlu0 %4293 }
0x18e2   :  { %v4291_v2 = vpop.xlane.xlu1 %4290 }
0x18e3   :  { %6961 = vrcp.f32 %v4291_v2 }
0x18e4   :  { %6963 = vrcp.f32 %v4294_v54 }
0x18e6   :  { %v6794_v50 = vpop.permute.xlu1 %6793 }
0x18e7   :  { %v6796_v48 = vunpack.i.h.bf16 %v6794_v50  ;;  %v6795_v31 = vunpack.i.l.bf16 %v6794_v50 }
0x18e9   :  { %v6537_v26 = vpack.c.bf16 %v6796_v48, %v6795_v31 }
0x18eb   :  { %6538 = vmatprep.subr.bf16.mxu1 %v6537_v26  ;;  %v4300_v9 = vpop.xlane.xlu0 %4299 }
0x18ec   :  { %6540 = vmatpush3.bf16.msra.mxu1 %v6537_v26  ;;  %6965 = vrcp.f32 %v4300_v9 }
0x18ed   :  { %v6962_v55 = vpop.eup %6961 }
0x18ee   :  { %v4302_v58 = vmul.f32 %v6962_v55, %v6956_v52  ;;  %v6964_v12 = vpop.eup %6963 }
0x18ef   :  { %v4297_v4 = vpop.xlane.xlu0 %4296  ;;  %v4304_v35 = vmul.f32 %v6964_v12, %v8169_v30 }
0x18f0   :  { %6967 = vrcp.f32 %v4297_v4  ;;  %6298 = vmatprep.mubr.msk.f32.mxu0 %vm455_vm3, %v4302_v58 }
0x18f3   :  { %v6789_v45 = vpop.permute.xlu0 %6788 }
0x18f4   :  { %v6791_v21 = vunpack.i.h.bf16 %v6789_v45  ;;  %v6790_v51 = vunpack.i.l.bf16 %v6789_v45 }
0x18f6   :  { %v6533_v34 = vpack.c.bf16 %v6791_v21, %v6790_v51  ;;  %v6966_v3 = vpop.eup %6965 }
0x18f7   :  { %v6799_v23 = vpop.permute.xlu0 %6798  ;;  %v4308_v28 = vmul.f32 %v6966_v3, %v6958_v5  ;;  %v4678_v5 = vpop.permute.xlu1 %4677 }
0x18f8   :  { %v6801_v44 = vunpack.i.h.bf16 %v6799_v23  ;;  %v6800_v53 = vunpack.i.l.bf16 %v6799_v23  ;;  %6534 = vmatprep.subr.bf16.mxu0 %v6533_v34 }
0x18f9   :  { %6536 = vmatpush3.bf16.msra.mxu0 %v6533_v34 }
0x18fa   :  { %v6968_v47 = vpop.eup %6967  ;;  %v6541_v61 = vpack.c.bf16 %v6801_v44, %v6800_v53  ;;  %6308 = vmatprep.subr.mxu0 %v3091_v56 }
0x18fb   :  { %v6804_v19 = vpop.permute.xlu0 %6803  ;;  %v4306_v59 = vmul.f32 %v6968_v47, %v6960_v33 }
0x18fc   :  { %v6806_v46 = vunpack.i.h.bf16 %v6804_v19  ;;  %v6805_v13 = vunpack.i.l.bf16 %v6804_v19  ;;  %6299 = vmatmul.mubr.msk.f32.vlgmr.msra.gmra.mrb[34].mxu0 %vm455_vm3, %v4304_v35  ;;  %6543 = vmatprep.subr.msk.bf16.mxu1 %vm7418_vm2, %v6541_v61 }
0x18fd   :  { %6305 = vmatprep.mubr.msk.f32.mxu1 %vm455_vm3, %v4306_v59  ;;  %6309 = vmatpush3.msra.mxu0 %v3091_v56 }
0x18fe   :  { %v6547_v43 = vpack.c.bf16 %v6806_v46, %v6805_v13  ;;  %6306 = vmatmul.mubr.msk.f32.vlgmr.msra.gmra.mrb[38].mxu1 %vm455_vm3, %v4308_v28 }
0x18ff   :  { %6546 = vmatpush3.bf16.xpose.msk.msra.mxu1 %vm7418_vm2, %v6541_v61  ;;  %v4585_v27 = vpop.permute.xlu0 %4584 }
0x1900   :  { %6320 = vmatprep.mubr.msk.f32.mxu1 %vm282_vm1, %v4585_v27  ;;  %6549 = vmatprep.subr.msk.bf16.mxu0 %vm7418_vm2, %v6547_v43 }
0x1903   :  { %v4587_v30 = vpop.permute.xlu0 %4586 }
0x1906   :  { %6321 = vmatmul.mubr.msk.f32.vlgmr.msra.gmra.mrb[40].mxu1 %vm282_vm1, %v4587_v30 }
0x1907   :  { %v4676_v60 = vpop.permute.xlu0 %4675 }
0x19cf   :  { %v6300_v40 = vpop.f32.mrb[34].mxu0 }
0x19d0   :  { %v4387_v1 = vpop.f32.mrb[35].mxu0 }
0x19d1   :  { %v6307_v14 = vpop.f32.mrb[38].mxu1  ;;  %6310 = vmatprep.mubr.msk.f32.mxu0 %vm282_vm1, %v4387_v1 }
0x19d2   :  { %v4474_v52 = vpop.f32.mrb[39].mxu1  ;;  %6311 = vmatmul.mubr.msk.f32.vlgmr.msra.gmra.mrb[30].mxu0 %vm282_vm1, %v6300_v40 }
0x19d3   :  { %6552 = vmatpush3.bf16.xpose.msk.msra.mxu0 %vm7418_vm2, %v6547_v43  ;;  %6313 = vmatprep.mubr.msk.f32.mxu0 %vm282_vm1, %v4474_v52 }
0x19d6   :  { %6314 = vmatmul.mubr.msk.f32.gmra.mrb[32].mxu0 %vm282_vm1, %v6307_v14 }
0x19d7   :  { %6327 = vmatprep.mubr.msk.f32.mxu0 %vm282_vm1, %v4676_v60 }
0x19d9   :  { %v6322_v0 = vpop.f32.mrb[40].mxu1 }
0x19da   :  { %v4666_v33 = vpop.f32.mrb[41].mxu1  ;;  %v4769_v7 = vsel %vm455_vm3, %v6322_v0, -inf  ;;  %6328 = vmatmul.mubr.msk.f32.vlgmr.msra.gmra.mrb[36].mxu0 %vm282_vm1, %v4678_v5 }
0x19db   :  { %4770 = vmax.xlane.f32.xlu1 %v4769_v7  ;;  %v4766_v62 = vsel %vm455_vm3, %v4666_v33, -inf }
0x19dc   :  { %4767 = vmax.xlane.f32.xlu0 %v4766_v62  ;;  %v3092_v62 = vld [vmem:[#allocation8 + $0x38] sm:$0xff] }
0x1a68   :  { %v4771_v48 = vpop.xlane.xlu1 %4770 }
0x1a69   :  { %v4768_v42 = vpop.xlane.xlu0 %4767  ;;  %v4779_v31 = vsub.f32 %v6322_v0, %v4771_v48 }
0x1a6a   :  { %v4778_v22 = vsub.f32 %v4666_v33, %v4768_v42 }
0x1a6b   :  { %v4784_v26 = vmul.f32 1.442695, %v4779_v31 }
0x1a6c   :  { %v4782_v2 = vmul.f32 1.442695, %v4778_v22 }
0x1a6e   :  { %6969 = vpow2.f32 %v4782_v2 }
0x1a6f   :  { %6971 = vpow2.f32 %v4784_v26 }
0x1a78   :  { %v6970_v50 = vpop.eup %6969 }
0x1a79   :  { %v4790_v54 = vsel %vm455_vm3, %v6970_v50, 0.0  ;;  %v6972_v45 = vpop.eup %6971 }
0x1a7a   :  { %4791 = vadd.xlane.f32.xlu1 %v4790_v54  ;;  %v4793_v21 = vsel %vm455_vm3, %v6972_v45, 0.0  ;;  %v8248_v54 = vld [vmem:[%s8410_s7 + $0x8] sm:$0xff] }
0x1a7b   :  { %v5092_v48 = vrot.slane %v8248_v54, %v2276_v16 }
0x1aad   :  { %v6329_v9 = vpop.f32.mrb[36].mxu0 }
0x1aae   :  { %v4757_v55 = vpop.f32.mrb[37].mxu0  ;;  %v4775_v4 = vsel %vm455_vm3, %v6329_v9, -inf }
0x1aaf   :  { %v4772_v58 = vsel %vm455_vm3, %v4757_v55, -inf }
0x1ab0   :  { %4773 = vmax.xlane.f32.xlu0 %v4772_v58 }
0x1ab4   :  { %4776 = vmax.xlane.f32.xlu0 %v4775_v4 }
0x1ab8   :  { %4794 = vadd.xlane.f32.xlu0 %v4793_v21 }
0x1b07   :  { %v4792_v51 = vpop.xlane.xlu1 %4791 }
0x1b08   :  { %6973 = vrcp.f32 %v4792_v51 }
0x1b12   :  { %v6974_v34 = vpop.eup %6973 }
0x1b13   :  { %v4803_v12 = vmul.f32 %v6974_v34, %v6970_v50 }
0x1b15   :  { %6334 = vmatprep.mubr.msk.f32.mxu1 %vm455_vm3, %v4803_v12 }
0x1b3d   :  { %v4774_v23 = vpop.xlane.xlu0 %4773 }
0x1b3e   :  { %v4780_v56 = vsub.f32 %v4757_v55, %v4774_v23 }
0x1b40   :  { %v4786_v44 = vmul.f32 1.442695, %v4780_v56 }
0x1b41   :  { %v4777_v53 = vpop.xlane.xlu0 %4776 }
0x1b42   :  { %6975 = vpow2.f32 %v4786_v44  ;;  %v4781_v3 = vsub.f32 %v6329_v9, %v4777_v53 }
0x1b44   :  { %v4788_v47 = vmul.f32 1.442695, %v4781_v3 }
0x1b45   :  { %v4795_v28 = vpop.xlane.xlu0 %4794 }
0x1b46   :  { %6977 = vpow2.f32 %v4788_v47 }
0x1b47   :  { %6979 = vrcp.f32 %v4795_v28 }
0x1b4c   :  { %v6976_v35 = vpop.eup %6975 }
0x1b4d   :  { %v4796_v61 = vsel %vm455_vm3, %v6976_v35, 0.0 }
0x1b4e   :  { %4797 = vadd.xlane.f32.xlu1 %v4796_v61 }
0x1b50   :  { %v6978_v19 = vpop.eup %6977 }
0x1b51   :  { %v4799_v59 = vsel %vm455_vm3, %v6978_v19, 0.0  ;;  %v6980_v1 = vpop.eup %6979 }
0x1b52   :  { %4800 = vadd.xlane.f32.xlu0 %v4799_v59  ;;  %v4805_v5 = vmul.f32 %v6980_v1, %v6972_v45 }
0x1b5f   :  { %6808 = vrot.lane.b32.xlu1 %v8045_v25, %s7195_s6 }
0x1b68   :  { %6813 = vrot.lane.b32.xlu0 %v8057_v37, %s7195_s6 }
0x1bdb   :  { %v4798_v46 = vpop.xlane.xlu1 %4797 }
0x1bdc   :  { %6981 = vrcp.f32 %v4798_v46 }
0x1bdf   :  { %v6809_v13 = vpop.permute.xlu1 %6808  ;;  %v4801_v43 = vpop.xlane.xlu0 %4800 }
0x1be0   :  { %v6811_v27 = vunpack.i.h.bf16 %v6809_v13  ;;  %v6810_v30 = vunpack.i.l.bf16 %v6809_v13  ;;  %6983 = vrcp.f32 %v4801_v43 }
0x1be2   :  { %v6553_v40 = vpack.c.bf16 %v6811_v27, %v6810_v30 }
0x1be3   :  { %v6814_v14 = vpop.permute.xlu0 %6813 }
0x1be4   :  { %v6816_v52 = vunpack.i.h.bf16 %v6814_v14  ;;  %v6815_v60 = vunpack.i.l.bf16 %v6814_v14  ;;  %6554 = vmatprep.subr.bf16.mxu1 %v6553_v40 }
0x1be5   :  { %6556 = vmatpush3.bf16.msra.mxu1 %v6553_v40 }
0x1be6   :  { %v6982_v25 = vpop.eup %6981  ;;  %v6557_v0 = vpack.c.bf16 %v6816_v52, %v6815_v60  ;;  %v5166_v60 = vld [vmem:[#allocation10 + $0x20] sm:$0xff] }
0x1be7   :  { %v4807_v37 = vmul.f32 %v6982_v25, %v6976_v35  ;;  %v5167_v25 = vld [vmem:[#allocation10 + $0x28] sm:$0xff] }
0x1be8   :  { %6335 = vmatmul.mubr.msk.f32.vlgmr.msra.gmra.mrb[42].mxu1 %vm455_vm3, %v4805_v5  ;;  %6558 = vmatprep.subr.bf16.mxu0 %v6557_v0  ;;  %v5168_v5 = vld [vmem:[#allocation10 + $0x30] sm:$0xff] }
0x1be9   :  { %6560 = vmatpush3.bf16.msra.mxu0 %v6557_v0  ;;  %6341 = vmatprep.mubr.msk.f32.mxu0 %vm455_vm3, %v4807_v37  ;;  %v6561_v0 = vpack.c.bf16 %v5167_v25, %v5166_v60  ;;  %v5169_v37 = vld [vmem:[#allocation10 + $0x38] sm:$0xff] }
0x1bea   :  { %v6984_v33 = vpop.eup %6983  ;;  %6344 = vmatprep.subr.mxu0 %v3092_v62 }
0x1beb   :  { %v4809_v7 = vmul.f32 %v6984_v33, %v6978_v19  ;;  %v6565_v33 = vpack.c.bf16 %v5169_v37, %v5168_v5  ;;  %6562 = vmatprep.subr.bf16.mxu1 %v6561_v0 }
0x1bec   :  { %6564 = vmatpush3.bf16.msra.mxu1 %v6561_v0 }
0x1bed   :  { %6342 = vmatmul.mubr.msk.f32.vlgmr.msra.gmra.mrb[38].mxu0 %vm455_vm3, %v4809_v7  ;;  %6566 = vmatprep.subr.bf16.mxu1 %v6565_v33 }
0x1bee   :  { %6345 = vmatpush3.msra.mxu0 %v3092_v62 }
0x1bf0   :  { %6568 = vmatpush3.bf16.msra.mxu1 %v6565_v33 }
0x1cbb   :  { %v6336_v42 = vpop.f32.mrb[42].mxu1 }
0x1cbc   :  { %v4888_v22 = vpop.f32.mrb[43].mxu1 }
0x1cbd   :  { %6346 = vmatprep.mubr.msk.f32.mxu0 %vm282_vm1, %v4888_v22 }
0x1cbe   :  { %6347 = vmatmul.mubr.msk.f32.vlgmr.msra.gmra.mrb[30].mxu0 %vm282_vm1, %v6336_v42 }
0x1cc0   :  { %v6343_v2 = vpop.f32.mrb[38].mxu0 }
0x1cc1   :  { %v4975_v50 = vpop.f32.mrb[39].mxu0 }
0x1cc2   :  { %6349 = vmatprep.mubr.msk.f32.mxu0 %vm282_vm1, %v4975_v50 }
0x1cc3   :  { %6350 = vmatmul.mubr.msk.f32.gmra.mrb[32].mxu0 %vm282_vm1, %v6343_v2 }
0x1d91   :  { %v6348_v31 = vpop.f32.mrb[30].mxu0 }
0x1d92   :  { %v5086_v26 = vadd.f32 %v6348_v31, %v8023_v63  ;;  %v5062_v9 = vpop.f32.mrb[31].mxu0 }
0x1d93   :  { %v5085_v55 = vadd.f32 %v5062_v9, %v8021_v36 }
0x1d94   :  { %v5094_v58 = vadd.f32 %v5092_v48, %v5086_v26 }
0x1d95   :  { %v5093_v4 = vadd.f32 %v5092_v48, %v5085_v55 }
0x1d96   :  { %v6351_v45 = vpop.f32.mrb[32].mxu0  ;;  %v5100_v21 = vsel %vm174_vm0, %v5094_v58, 0.0 }
0x1d97   :  { %v5088_v51 = vadd.f32 %v6351_v45, %v8031_v32  ;;  %5101 = vadd.xlane.f32.xlu0 %v5100_v21  ;;  %v5072_v34 = vpop.f32.mrb[33].mxu0  ;;  %v5097_v12 = vsel %vm174_vm0, %v5093_v4, 0.0 }
0x1d98   :  { %v5087_v23 = vadd.f32 %v5072_v34, %v8029_v57  ;;  %5098 = vadd.xlane.f32.xlu1 %v5097_v12  ;;  %v5160_v12 = vrot.slane %v8248_v54, %v2345_v11  ;;  %v5173_v11 = vrot.slane %v8248_v54, %v2357_v18 }
0x1d99   :  { %v5096_v16 = vadd.f32 %v5092_v48, %v5088_v51 }
0x1d9a   :  { %v5095_v56 = vadd.f32 %v5092_v48, %v5087_v23 }
0x1d9b   :  { %v5106_v63 = vsel %vm174_vm0, %v5096_v16, 0.0 }
0x1d9c   :  { %5107 = vadd.xlane.f32.xlu0 %v5106_v63  ;;  %v5103_v36 = vsel %vm174_vm0, %v5095_v56, 0.0 }
0x1d9d   :  { %5104 = vadd.xlane.f32.xlu1 %v5103_v36 }
0x1e24   :  { %v5102_v44 = vpop.xlane.xlu0 %5101 }
0x1e25   :  { %v5110_v53 = vmul.f32 0.03125, %v5102_v44  ;;  %v5099_v3 = vpop.xlane.xlu1 %5098 }
0x1e26   :  { %v5109_v47 = vmul.f32 0.03125, %v5099_v3 }
0x1e27   :  { %v5114_v32 = vsub.f32 %v5094_v58, %v5110_v53 }
0x1e28   :  { %v5113_v35 = vsub.f32 %v5093_v4, %v5109_v47  ;;  %v5152_v4 = vrot.slane %v8248_v54, %v2337_v10 }
0x1e29   :  { %v5108_v61 = vpop.xlane.xlu0 %5107  ;;  %v5118_v19 = vmul.f32 %v5114_v32, %v5114_v32 }
0x1e2a   :  { %v5112_v59 = vmul.f32 0.03125, %v5108_v61  ;;  %v5105_v28 = vpop.xlane.xlu1 %5104  ;;  %v5117_v57 = vmul.f32 %v5113_v35, %v5113_v35 }
0x1e2b   :  { %v5111_v46 = vmul.f32 0.03125, %v5105_v28  ;;  %v5124_v13 = vsel %vm174_vm0, %v5118_v19, 0.0 }
0x1e2c   :  { %v5116_v43 = vsub.f32 %v5096_v16, %v5112_v59  ;;  %5125 = vadd.xlane.f32.xlu0 %v5124_v13  ;;  %v5121_v27 = vsel %vm174_vm0, %v5117_v57, 0.0 }
0x1e2d   :  { %v5115_v30 = vsub.f32 %v5095_v56, %v5111_v46  ;;  %5122 = vadd.xlane.f32.xlu1 %v5121_v27 }
0x1e2e   :  { %v5120_v40 = vmul.f32 %v5116_v43, %v5116_v43 }
0x1e2f   :  { %v5119_v1 = vmul.f32 %v5115_v30, %v5115_v30 }
0x1e30   :  { %v5130_v14 = vsel %vm174_vm0, %v5120_v40, 0.0 }
0x1e31   :  { %5131 = vadd.xlane.f32.xlu0 %v5130_v14  ;;  %v5127_v52 = vsel %vm174_vm0, %v5119_v1, 0.0 }
0x1e32   :  { %5128 = vadd.xlane.f32.xlu1 %v5127_v52 }
0x1eb9   :  { %v5126_v7 = vpop.xlane.xlu0 %5125 }
0x1eba   :  { %v5134_v62 = vmul.f32 0.03125, %v5126_v7  ;;  %v5123_v42 = vpop.xlane.xlu1 %5122 }
0x1ebb   :  { %v5133_v22 = vmul.f32 0.03125, %v5123_v42 }
0x1ebc   :  { %v5138_v2 = vadd.f32 1e-05, %v5134_v62 }
0x1ebd   :  { %v5137_v50 = vadd.f32 1e-05, %v5133_v22 }
0x1ebe   :  { %6985 = vrsqrt.f32 %v5138_v2  ;;  %v5132_v48 = vpop.xlane.xlu0 %5131 }
0x1ebf   :  { %6987 = vrsqrt.f32 %v5137_v50  ;;  %v5136_v31 = vmul.f32 0.03125, %v5132_v48  ;;  %v5129_v26 = vpop.xlane.xlu1 %5128 }
0x1ec0   :  { %v5135_v9 = vmul.f32 0.03125, %v5129_v26 }
0x1ec1   :  { %v5140_v55 = vadd.f32 1e-05, %v5136_v31 }
0x1ec2   :  { %v5139_v58 = vadd.f32 1e-05, %v5135_v9 }
0x1ec3   :  { %6989 = vrsqrt.f32 %v5140_v55 }
0x1ec4   :  { %6991 = vrsqrt.f32 %v5139_v58 }
0x1ec8   :  { %v6986_v45 = vpop.eup %6985 }
0x1ec9   :  { %v6988_v21 = vpop.eup %6987  ;;  %v5146_v51 = vmul.f32 %v6986_v45, %v5114_v32 }
0x1eca   :  { %v5145_v34 = vmul.f32 %v6988_v21, %v5113_v35 }
0x1ecb   :  { %v5154_v23 = vmul.f32 %v5152_v4, %v5146_v51 }
0x1ecc   :  { %v5153_v16 = vmul.f32 %v5152_v4, %v5145_v34 }
0x1ecd   :  { %v6990_v56 = vpop.eup %6989  ;;  %v8271_v53 = vadd.f32 %v5160_v12, %v5154_v23 }
0x1ece   :  { %v6992_v63 = vpop.eup %6991  ;;  %v5161_v36 = vadd.f32 %v5160_v12, %v5153_v16  ;;  %v5148_v44 = vmul.f32 %v6990_v56, %v5116_v43 }
0x1ecf   :  { %v5147_v3 = vmul.f32 %v6992_v63, %v5115_v30 }
0x1ed0   :  { %6360 = vmatprep.mubr.msk.f32.mxu1 %vm174_vm0, %v5161_v36  ;;  %v5156_v10 = vmul.f32 %v5152_v4, %v5148_v44 }
0x1ed1   :  { %6361 = vmatmul.mubr.msk.f32.vlgmr.msra.gmra.mrb[44].mxu1 %vm174_vm0, %v8271_v53  ;;  %v5155_v47 = vmul.f32 %v5152_v4, %v5147_v3 }
0x1ed2   :  { %v8276_v35 = vadd.f32 %v5160_v12, %v5156_v10 }
0x1ed3   :  { %v5163_v32 = vadd.f32 %v5160_v12, %v5155_v47 }
0x1ed5   :  { %6363 = vmatprep.mubr.msk.f32.mxu1 %vm174_vm0, %v5163_v32 }
0x1ed6   :  { %6364 = vmatmul.mubr.msk.f32.gmra.mrb[46].mxu1 %vm174_vm0, %v8276_v35 }
0x1fa4   :  { %v6362_v61 = vpop.f32.mrb[44].mxu1 }
0x1fa5   :  { %v8284_v19 = vadd.f32 %v6362_v61, %v5173_v11  ;;  %v5252_v59 = vpop.f32.mrb[45].mxu1 }
0x1fa7   :  { %v5272_v28 = vand.u32 2139095040, %v8284_v19  ;;  %v5269_v57 = vand.u32 2147483647, %v8284_v19 }
0x1fa9   :  { %v5273_v46 = vshrl.u32 %v5272_v28, 23  ;;  %v6365_v13 = vpop.f32.mrb[46].mxu1  ;;  %v5276_v40 = vand.u32 8388607, %v5269_v57 }
0x1faa   :  { %v8288_v43 = vadd.f32 %v6365_v13, %v5173_v11  ;;  %v5261_v27 = vpop.f32.mrb[47].mxu1 }
0x1fab   :  { %v5807_v30 = vadd.s32 4294967169, %v5273_v46  ;;  %v5277_v52 = vor.u32 8388608, %v5276_v40 }
0x1fac   :  { %v5376_v1 = vand.u32 2139095040, %v8288_v43  ;;  %v5373_v60 = vand.u32 2147483647, %v8288_v43 }
0x1fad   :  { %v5279_v18 = vadd.s32 1, %v5807_v30  ;;  %v8294_v62 = vshll.u32 %v5277_v52, 8 }
0x1fae   :  { %v5377_v14 = vshrl.u32 %v5376_v1, 23  ;;  %v5380_v42 = vand.u32 8388607, %v5373_v60 }
0x1faf   :  { %vm5280_vm1 = vcmp.gt.s32.totalorder %v5279_v18, 0 }
0x1fb0   :  { %v5281_v25 = vsel %vm5280_vm1, %v5279_v18, 0  ;;  %v5811_v5 = vadd.s32 4294967169, %v5377_v14  ;;  %v5381_v13 = vor.u32 8388608, %v5380_v42  ;;  %vm5271_vm1 = vcmp.lt.s32.totalorder %v8284_v19, 0 }
0x1fb1   :  { %v5283_v0 = vand.u32 31, %v5281_v25  ;;  %v5282_v33 = vshrl.u32 %v5281_v25, 5 }
0x1fb2   :  { %v5383_v37 = vadd.s32 1, %v5811_v5 }
0x1fb3   :  { %v5284_v7 = vsub.s32 32, %v5283_v0  ;;  %v5286_v22 = vshll.u32 %v7196_v6, %v5283_v0  ;;  %v5289_v2 = vshll.u32 %v7197_v8, %v5283_v0  ;;  %v5292_v50 = vshll.u32 %v7198_v20, %v5283_v0 }
0x1fb4   :  { %vm5384_vm2 = vcmp.gt.s32.totalorder %v5383_v37, 0  ;;  %v5295_v9 = vshll.u32 %v7199_v29, %v5283_v0  ;;  %v5298_v45 = vshll.u32 %v7200_v41, %v5283_v0  ;;  %vm5301_vm3 = vcmp.lt.s32.totalorder %v5282_v33, 1 }
0x1fb5   :  { %v5385_v48 = vsel %vm5384_vm2, %v5383_v37, 0  ;;  %v5287_v31 = vshrl.u32 %v7197_v8, %v5284_v7  ;;  %v5290_v26 = vshrl.u32 %v7198_v20, %v5284_v7  ;;  %v5293_v58 = vshrl.u32 %v7199_v29, %v5284_v7 }
0x1fb6   :  { %v5387_v55 = vand.u32 31, %v5385_v48  ;;  %v5296_v4 = vshrl.u32 %v7200_v41, %v5284_v7  ;;  %v5299_v34 = vshrl.u32 %v7201_v49, %v5284_v7  ;;  %v5285_v23 = vshrl.u32 %v7196_v6, %v5284_v7 }
0x1fb7   :  { %v5288_v21 = vor.u32 %v5287_v31, %v5286_v22  ;;  %v5291_v51 = vor.u32 %v5290_v26, %v5289_v2  ;;  %v5294_v16 = vor.u32 %v5293_v58, %v5292_v50  ;;  %vm5303_vm11 = vcmp.lt.s32.totalorder %v5282_v33, 3 }
0x1fb8   :  { %v5388_v12 = vsub.s32 32, %v5387_v55  ;;  %v5297_v56 = vor.u32 %v5296_v4, %v5295_v9  ;;  %v5300_v63 = vor.u32 %v5299_v34, %v5298_v45  ;;  %vm5304_vm12 = vcmp.lt.s32.totalorder %v5282_v33, 4 }
0x1fb9   :  { %v5309_v36 = vsel %vm5301_vm3, %v5288_v21, %v5291_v51  ;;  %v5305_v44 = vsel %vm5301_vm3, %v5285_v23, %v5288_v21  ;;  %v5306_v3 = vsel %vm5304_vm12, %v5294_v16, 2102212464  ;;  %v5313_v47 = vsel %vm5301_vm3, %v5291_v51, %v5294_v16 }
0x1fba   :  { %v5310_v10 = vsel %vm5304_vm12, %v5297_v56, 920167782  ;;  %vm5302_vm15 = vcmp.lt.s32.totalorder %v5282_v33, 2  ;;  %v5307_v32 = vsel %vm5303_vm11, %v5291_v51, %v5306_v3  ;;  %v5314_v61 = vsel %vm5304_vm12, %v5300_v63, 1326507024 }
0x1fbb   :  { %v5311_v11 = vsel %vm5303_vm11, %v5294_v16, %v5310_v10  ;;  %v5386_v59 = vshrl.u32 %v5385_v48, 5  ;;  %v5315_v46 = vsel %vm5303_vm11, %v5297_v56, %v5314_v61  ;;  %v5308_v27 = vsel %vm5302_vm15, %v5305_v44, %v5307_v32 }
0x1fbc   :  { %v5312_v28 = vsel %vm5302_vm15, %v5309_v36, %v5311_v11  ;;  %v5316_v30 = vsel %vm5302_vm15, %v5313_v47, %v5315_v46  ;;  %v5390_v52 = vshll.u32 %v7196_v6, %v5387_v55  ;;  %v5391_v25 = vshrl.u32 %v7197_v8, %v5388_v12 }
0x1fbd   :  { %v8310_v40 = vmul.u32.u64.low %v8294_v62, %v5312_v28  ;;  %v8311_v1 = vmul.u32.u64.high %v8294_v62, %v5312_v28, %v8310_v40  ;;  %v8315_v18 = vmul.u32.u64.low %v8294_v62, %v5316_v30  ;;  %v8316_v14 = vmul.u32.u64.high %v8294_v62, %v5316_v30, %v8315_v18 }
0x1fbe   :  { %v5393_v5 = vshll.u32 %v7197_v8, %v5387_v55  ;;  %v5394_v0 = vshrl.u32 %v7198_v20, %v5388_v12  ;;  %v5396_v37 = vshll.u32 %v7198_v20, %v5387_v55  ;;  %v5397_v33 = vshrl.u32 %v7199_v29, %v5388_v12 }
0x1fbf   :  { %v5392_v7 = vor.u32 %v5391_v25, %v5390_v52  ;;  %v5399_v42 = vshll.u32 %v7199_v29, %v5387_v55  ;;  %v5400_v22 = vshrl.u32 %v7200_v41, %v5388_v12  ;;  %v5402_v2 = vshll.u32 %v7200_v41, %v5387_v55 }
0x1fc0   :  { %v5327_v50 = vadd.s32 1, %v8311_v1  ;;  %v5395_v48 = vor.u32 %v5394_v0, %v5393_v5  ;;  %v5398_v31 = vor.u32 %v5397_v33, %v5396_v37  ;;  %v5403_v26 = vshrl.u32 %v7201_v49, %v5388_v12 }
0x1fc1   :  { %v5324_v8 = vmul.u32 %v8294_v62, %v5308_v27  ;;  %vm5326_vm4 = vc.u32 %v8316_v14, %v8310_v40  ;;  %v5401_v20 = vor.u32 %v5400_v22, %v5399_v42  ;;  %v5421_v9 = vshll.u32 %v5381_v13, 8 }
0x1fc2   :  { %v5328_v58 = vsel %vm5326_vm4, %v5327_v50, %v8311_v1  ;;  %v5389_v29 = vshrl.u32 %v7196_v6, %v5388_v12  ;;  %v5404_v4 = vor.u32 %v5403_v26, %v5402_v2  ;;  %vm5405_vm13 = vcmp.lt.s32.totalorder %v5386_v59, 1 }
0x1fc3   :  { %v5329_v41 = vadd.s32 %v5328_v58, %v5324_v8  ;;  %vm5407_vm14 = vcmp.lt.s32.totalorder %v5386_v59, 3  ;;  %vm5408_vm5 = vcmp.lt.s32.totalorder %v5386_v59, 4  ;;  %v5413_v55 = vsel %vm5405_vm13, %v5392_v7, %v5395_v48 }
0x1fc4   :  { %v5410_v45 = vsel %vm5408_vm5, %v5398_v31, 2102212464  ;;  %v5414_v21 = vsel %vm5408_vm5, %v5401_v20, 920167782  ;;  %v5417_v49 = vsel %vm5405_vm13, %v5395_v48, %v5398_v31  ;;  %v5418_v51 = vsel %vm5408_vm5, %v5404_v4, 1326507024 }
0x1fc5   :  { %v5330_v62 = vadd.s32 536870912, %v5329_v41  ;;  %vm5406_vm6 = vcmp.lt.s32.totalorder %v5386_v59, 2  ;;  %v5415_v34 = vsel %vm5407_vm14, %v5398_v31, %v5414_v21  ;;  %v5419_v23 = vsel %vm5407_vm14, %v5401_v20, %v5418_v51 }
0x1fc6   :  { %v5409_v16 = vsel %vm5405_vm13, %v5389_v29, %v5392_v7  ;;  %v5416_v56 = vsel %vm5406_vm6, %v5413_v55, %v5415_v34  ;;  %v5420_v63 = vsel %vm5406_vm6, %v5417_v49, %v5419_v23  ;;  %v5411_v44 = vsel %vm5407_vm14, %v5395_v48, %v5410_v45 }
0x1fc7   :  { %v5331_v36 = vshrl.u32 %v5330_v62, 30  ;;  %v8334_v6 = vmul.u32.u64.low %v5421_v9, %v5420_v63  ;;  %v8335_v12 = vmul.u32.u64.high %v5421_v9, %v5420_v63, %v8334_v6  ;;  %v5412_v32 = vsel %vm5406_vm6, %v5409_v16, %v5411_v44 }
0x1fc8   :  { %v8337_v3 = vmul.u32.u64.low %v5421_v9, %v5416_v56  ;;  %v8338_v10 = vmul.u32.u64.high %v5421_v9, %v5416_v56, %v8337_v3  ;;  %v5428_v28 = vmul.u32 %v5421_v9, %v5412_v32  ;;  %v5325_v0 = vadd.s32 %v8310_v40, %v8316_v14 }
0x1fc9   :  { %v5332_v47 = vshll.u32 %v5331_v36, 30  ;;  %v5479_v55 = vmul.f32 0.70710677, %v8284_v19  ;;  %vm5270_vm2 = vcmp.le.f32.partialorder %v5269_v57, 0.7853982  ;;  %vm5375_vm11 = vcmp.lt.s32.totalorder %v8288_v43, 0 }
0x1fca   :  { %vm5430_vm8 = vc.u32 %v8335_v12, %v8337_v3  ;;  %v5431_v61 = vadd.s32 1, %v8338_v10  ;;  %v5429_v45 = vadd.s32 %v8337_v3, %v8335_v12  ;;  %v5480_v32 = vmul.f32 0.70710677, %v8288_v43 }
0x1fcb   :  { %v5333_v11 = vsub.s32 %v5329_v41, %v5332_v47  ;;  %v5355_v41 = vsub.s32 4, %v5331_v36  ;;  %6993 = verf.f32 %v5479_v55  ;;  %vm8354_vm3 = vcmp.le.f32.partialorder %v5373_v60, 0.7853982 }
0x1fcc   :  { %v5432_v46 = vsel %vm5430_vm8, %v5431_v61, %v8338_v10  ;;  %vm5361_vm13 = vweird.f32 %v8284_v19  ;;  %vm5465_vm8 = vweird.f32 %v8288_v43 }
0x1fcd   :  { %v5335_v59 = vsub.s32 0, %v5333_v11  ;;  %v5433_v27 = vadd.s32 %v5432_v46, %v5428_v28  ;;  %v5356_v62 = vsel %vm5271_vm1, %v5355_v41, %v5331_v36  ;;  %v5478_v41 = vmul.f32 0.5, %v8288_v43 }
0x1fce   :  { %v5358_v63 = vsel %vm5270_vm2, 0, %v5356_v62 }
0x1fcf   :  { %v5808_v13 = vmin.u32 %v5335_v59, %v5333_v11  ;;  %v5434_v1 = vadd.s32 536870912, %v5433_v27  ;;  %v5362_v12 = vadd.s32 3, %v5358_v63 }
0x1fd1   :  { %v5337_v30 = vclz %v5808_v13  ;;  %v5435_v52 = vshrl.u32 %v5434_v1, 30  ;;  %v5363_v61 = vand.u32 3, %v5362_v12  ;;  %v5536_v12 = vld [vmem:[#allocation11 + $0x8] sm:$0xff] }
0x1fd3   :  { %v5809_v18 = vadd.s32 4294967294, %v5337_v30  ;;  %v5436_v5 = vshll.u32 %v5435_v52, 30  ;;  %vm5368_vm12 = vcmp.eq.s32.totalorder %v5363_v61, 2  ;;  %vm5365_vm15 = vcmp.eq.s32.totalorder %v5363_v61, 0 }
0x1fd4   :  { %vm5364_vm4 = vcmp.lt.s32.totalorder %v5363_v61, 2 }
0x1fd5   :  { %vm5810_vm9 = vcmp.lt.s32.totalorder %v5809_v18, 0  ;;  %v5437_v7 = vsub.s32 %v5433_v27, %v5436_v5  ;;  %v6994_v36 = vpop.eup %6993  ;;  %v5492_v5 = vrot.slane %v8248_v54, %v2898_v38 }
0x1fd6   :  { %v5340_v25 = vsel %vm5810_vm9, 0, %v5809_v18  ;;  %v5483_v30 = vadd.f32 1.0, %v6994_v36  ;;  %vm5550_vm9 = vcmask 1041409  }
0x1fd7   :  { %v5341_v37 = vsub.s32 32, %v5340_v25  ;;  %v5345_v33 = vsub.s32 4294967266, %v5340_v25  ;;  %v5342_v42 = vshll.u32 %v5333_v11, %v5340_v25  ;;  %v5439_v50 = vsub.s32 0, %v5437_v7 }
0x1fd8   :  { %v5459_v11 = vsub.s32 4, %v5435_v52 }
0x1fd9   :  { %v5343_v22 = vshrl.u32 %v5325_v0, %v5341_v37  ;;  %v5346_v2 = vadd.s32 127, %v5345_v33  ;;  %v5812_v26 = vmin.u32 %v5439_v50, %v5437_v7  ;;  %v5477_v37 = vmul.f32 0.5, %v8284_v19 }
0x1fda   :  { %v5460_v18 = vsel %vm5375_vm11, %v5459_v11, %v5435_v52 }
0x1fdb   :  { %v5344_v48 = vor.u32 %v5343_v22, %v5342_v42  ;;  %v5347_v31 = vshll.u32 %v5346_v2, 23  ;;  %v5441_v20 = vclz %v5812_v26  ;;  %v5462_v52 = vsel %vm8354_vm3, 0, %v5460_v18 }
0x1fdc   :  { %v5485_v42 = vmul.f32 %v5483_v30, %v5477_v37  ;;  %v5466_v2 = vadd.s32 3, %v5462_v52  ;;  %v5526_v30 = vrot.slane %v8248_v54, %v2962_v17  ;;  %v5815_v17 = vld [vmem:[%s8412_s9] ss:$0 sm:$0xff] }
0x1fdd   :  { %v5348_v8 = vor.u32 4788187, %v5347_v31  ;;  %v5351_v58 = vcvt.s32.f32 %v5344_v48  ;;  %v5813_v29 = vadd.s32 4294967294, %v5441_v20 }
0x1fde   :  { %v5467_v26 = vand.u32 3, %v5466_v2 }
0x1fdf   :  { %v5349_v9 = vand.u32 2147483647, %v5348_v8  ;;  %vm5814_vm10 = vcmp.lt.s32.totalorder %v5813_v29, 0 }
0x1fe0   :  { %v5444_v14 = vsel %vm5814_vm10, 0, %v5813_v29  ;;  %vm5472_vm14 = vcmp.eq.s32.totalorder %v5467_v26, 2  ;;  %vm5469_vm5 = vcmp.eq.s32.totalorder %v5467_v26, 0  ;;  %vm5468_vm6 = vcmp.lt.s32.totalorder %v5467_v26, 2 }
0x1fe1   :  { %v5352_v4 = vmul.f32 %v5351_v58, %v5349_v9  ;;  %v5445_v21 = vsub.s32 32, %v5444_v14  ;;  %v5449_v49 = vsub.s32 4294967266, %v5444_v14  ;;  %v5446_v23 = vshll.u32 %v5437_v7, %v5444_v14 }
0x1fe3   :  { %v5353_v40 = vxor.u32 2147483648, %v5352_v4  ;;  %v5447_v16 = vshrl.u32 %v5429_v45, %v5445_v21  ;;  %v5450_v56 = vadd.s32 127, %v5449_v49 }
0x1fe5   :  { %v5354_v51 = vsel %vm5271_vm1, %v5353_v40, %v5352_v4  ;;  %v5448_v44 = vor.u32 %v5447_v16, %v5446_v23  ;;  %v5451_v6 = vshll.u32 %v5450_v56, 23 }
0x1fe6   :  { %v5357_v34 = vsel %vm5270_vm2, %v8284_v19, %v5354_v51 }
0x1fe7   :  { %6995 = vcosq.f32 %v5357_v34  ;;  %v5452_v10 = vor.u32 4788187, %v5451_v6  ;;  %v5455_v47 = vcvt.s32.f32 %v5448_v44 }
0x1fe8   :  { %6997 = vsinq.f32 %v5357_v34 }
0x1fe9   :  { %v5453_v3 = vand.u32 2147483647, %v5452_v10  ;;  %6999 = verf.f32 %v5480_v32  ;;  %v5535_v10 = vld [vmem:[#allocation11] sm:$0xff]  ;;  %v5538_v32 = vld [vmem:[#allocation11 + $0x18] sm:$0xff] }
0x1feb   :  { %v5456_v57 = vmul.f32 %v5455_v47, %v5453_v3  ;;  %v7202_v3 = vmov 0.0|0.0   ;;  %v6570_v47 = vpack.c.bf16 %v5536_v12, %v5535_v10 }
0x1fec   :  { %6569 = vmatprep.subr.bf16.mxu0 %v7202_v3 }
0x1fed   :  { %v5457_v59 = vxor.u32 2147483648, %v5456_v57  ;;  %6571 = vmatpush3.bf16.msra.mxu0 %v6570_v47 }
0x1fee   :  { %6572 = vmatprep.subr.bf16.mxu0 %v7202_v3 }
0x1fef   :  { %v5458_v1 = vsel %vm5375_vm11, %v5457_v59, %v5456_v57  ;;  %v7204_v57 = vmov 0.0  }
0x1ff0   :  { %v5461_v60 = vsel %vm8354_vm3, %v8288_v43, %v5458_v1 }
0x1ff1   :  { %v6996_v28 = vpop.eup %6995  ;;  %7001 = vcosq.f32 %v5461_v60 }
0x1ff2   :  { %v6998_v13 = vpop.eup %6997  ;;  %v5369_v27 = vxor.u32 2147483648, %v6996_v28  ;;  %7003 = vsinq.f32 %v5461_v60 }
0x1ff3   :  { %v5366_v25 = vxor.u32 2147483648, %v6998_v13  ;;  %v7000_v48 = vpop.eup %6999 }
0x1ff4   :  { %v5370_v0 = vsel %vm5368_vm12, %v5369_v27, %v6998_v13  ;;  %v5484_v29 = vadd.f32 1.0, %v7000_v48 }
0x1ff5   :  { %v5367_v33 = vsel %vm5365_vm15, %v6996_v28, %v5366_v25  ;;  %v5532_v25 = vrot.slane %v8248_v54, %v2970_v24 }
0x1ff6   :  { %v5371_v7 = vsel %vm5364_vm4, %v5367_v33, %v5370_v0 }
0x1ff7   :  { %v5372_v38 = vsel %vm5361_vm13, nan, %v5371_v7 }
0x1ff8   :  { %v5487_v22 = vsel %vm161_vm7, %v5372_v38, %v5485_v42 }
0x1ff9   :  { %v5493_v50 = vmul.f32 %v5492_v5, %v5487_v22 }
0x1ffb   :  { %v5495_v31 = vadd.f32 %v5493_v50, %v8271_v53  ;;  %v7002_v20 = vpop.eup %7001  ;;  %v5486_v53 = vmul.f32 %v5484_v29, %v5478_v41 }
0x1ffc   :  { %v7004_v9 = vpop.eup %7003  ;;  %v5473_v58 = vxor.u32 2147483648, %v7002_v20 }
0x1ffd   :  { %v5497_v8 = vsel %vm174_vm0, %v5495_v31, 0.0  ;;  %v5470_v19 = vxor.u32 2147483648, %v7004_v9 }
0x1ffe   :  { %5498 = vadd.xlane.f32.xlu1 %v5497_v8  ;;  %v5474_v4 = vsel %vm5472_vm14, %v5473_v58, %v7004_v9 }
0x1fff   :  { %v5471_v55 = vsel %vm5469_vm5, %v7002_v20, %v5470_v19 }
0x2000   :  { %v5475_v40 = vsel %vm5468_vm6, %v5471_v55, %v5474_v4 }
0x2001   :  { %v5476_v14 = vsel %vm5465_vm8, nan, %v5475_v40 }
0x2002   :  { %v5488_v45 = vsel %vm161_vm7, %v5476_v14, %v5486_v53  ;;  %vm7203_vm7 = vmmov 0  }
0x2003   :  { %v5494_v21 = vmul.f32 %v5492_v5, %v5488_v45  ;;  %6374 = vmatprep.mubr.msk.f32.mxu0 %vm7203_vm7, %v7204_v57 }
0x2005   :  { %v5496_v49 = vadd.f32 %v5494_v21, %v8276_v35  ;;  %v5537_v35 = vld [vmem:[#allocation11 + $0x10] sm:$0xff] }
0x2006   :  { %v6573_v11 = vpack.c.bf16 %v5538_v32, %v5537_v35 }
0x2007   :  { %v5500_v51 = vsel %vm174_vm0, %v5496_v49, 0.0 }
0x2008   :  { %5501 = vadd.xlane.f32.xlu0 %v5500_v51  ;;  %6574 = vmatpush3.bf16.msra.mxu0 %v6573_v11 }
0x208b   :  { %v5499_v62 = vpop.xlane.xlu1 %5498 }
0x208c   :  { %v5503_v34 = vmul.f32 0.03125, %v5499_v62 }
0x208e   :  { %v5505_v23 = vsub.f32 %v5495_v31, %v5503_v34 }
0x2090   :  { %v5507_v16 = vmul.f32 %v5505_v23, %v5505_v23 }
0x2092   :  { %v5509_v56 = vsel %vm174_vm0, %v5507_v16, 0.0 }
0x2093   :  { %5510 = vadd.xlane.f32.xlu1 %v5509_v56 }
0x2095   :  { %v5502_v43 = vpop.xlane.xlu0 %5501 }
0x2096   :  { %v5504_v63 = vmul.f32 0.03125, %v5502_v43 }
0x2098   :  { %v5506_v44 = vsub.f32 %v5496_v49, %v5504_v63 }
0x209a   :  { %v5508_v6 = vmul.f32 %v5506_v44, %v5506_v44 }
0x209c   :  { %v5512_v39 = vsel %vm174_vm0, %v5508_v6, 0.0 }
0x209d   :  { %5513 = vadd.xlane.f32.xlu0 %v5512_v39 }
0x2120   :  { %v5511_v36 = vpop.xlane.xlu1 %5510 }
0x2121   :  { %v5515_v61 = vmul.f32 0.03125, %v5511_v36 }
0x2123   :  { %v5517_v59 = vadd.f32 1e-05, %v5515_v61 }
0x2125   :  { %7005 = vrsqrt.f32 %v5517_v59 }
0x212a   :  { %v5514_v28 = vpop.xlane.xlu0 %5513 }
0x212b   :  { %v5516_v46 = vmul.f32 0.03125, %v5514_v28 }
0x212d   :  { %v5518_v13 = vadd.f32 1e-05, %v5516_v46 }
0x212f   :  { %7007 = vrsqrt.f32 %v5518_v13  ;;  %v7006_v27 = vpop.eup %7005 }
0x2130   :  { %v5521_v1 = vmul.f32 %v7006_v27, %v5505_v23 }
0x2132   :  { %v5527_v18 = vmul.f32 %v5526_v30, %v5521_v1 }
0x2134   :  { %v5533_v37 = vadd.f32 %v5532_v25, %v5527_v18 }
0x2136   :  { %v5548_v52 = vrot.slane %v5533_v37, 7 }
0x2139   :  { %v7008_v5 = vpop.eup %7007 }
0x213a   :  { %v5522_v60 = vmul.f32 %v7008_v5, %v5506_v44 }
0x213c   :  { %v5528_v0 = vmul.f32 %v5526_v30, %v5522_v60 }
0x213e   :  { %v5534_v33 = vadd.f32 %v5532_v25, %v5528_v0 }
0x2140   :  { %v5549_v7 = vrot.slane %v5534_v33, 6 }
0x2142   :  { %v5551_v42 = vsel %vm5550_vm9, %v5549_v7, %v5548_v52 }
0x2143   :  { %6375 = vmatmul.mubr.msk.f32.vlgmr.msra.gmra.mrb[40].mxu0 %vm174_vm0, %v5551_v42 }
0x2216   :  { %v5620_v15 = vpop.f32.mrb[40].mxu0 }
0x2217   :  { %v5621_v38 = vadd.f32 %v5815_v17, %v5620_v15  ;;  %v6376_v24 = vpop.f32.mrb[41].mxu0 }
0x2219   :  { %5624 = vst [vmem:[#allocation13] sm:$0x3] %v5621_v38 }
0x221a   :  { %7153 = shalt.err (!%p7150_p10)
}
0x221b   :  { %s7154_s16 = scalar_lea.hbm %s8413_s10, 32 }
0x221c   :  { %p7155_p11 = scmp.ne.s32.totalorder %s8413_s10, %s7154_s16  ;;  %p7158_p12 = scmp.lt.u32.totalorder %s7154_s16, %s8413_s10 }
0x221e   :  { %p7160_p13 = pnand %p7158_p12, %p7155_p11 }
0x2220   :  { %7163 = shalt.err (!%p7160_p13)
}
0x2221   :  { %5634 = dma.vmem_to_hbm [thread:$0]  %s5632_s11, 32, %s8413_s10, [#allocation4]  }
0x2222   :  { %7172 = dma.done.wait [#allocation4], 32  }
0x2223   :  { %7173 = vsyncadd [#allocation4], 4294967264 }
0x2224   :  { %5638 = vsyncpa [#allocation3], 1 }
0x2225   :  { %5639 = vsyncpa [#allocation6], 1 }
0x2226   :  { %5640 = vsyncpa [#allocation9], 1 }
0x2227   :  { %5641 = vsyncpa [#allocation12], 1 }
0x2228   :  { %5642 = vsyncpa [#allocation4], 1 }

</bundles_post_ra>
